<compile_context>
chip_gen: v7x
topology: tpu7x:2x2x1
jax: 0.10.0
libtpu: 0.0.40
codegen_flags: <defaults>
</compile_context>

<pallas_src>
import functools

import jax
import jax.numpy as jnp
from jax.experimental import pallas as pl
from jax.experimental.pallas import tpu as pltpu

CN_LAYERS = 3
LANE = 128


def _round_up(x, m):
    return (x + m - 1) // m * m


def _vmem_cap_bytes():
    """Chip-generation-aware VMEM budget cap (leaves Mosaic headroom)."""
    try:
        kind = jax.devices()[0].device_kind.lower()
    except Exception:
        kind = ""
    if "v7" in kind or "7x" in kind:
        return 48 << 20           # v7x: 64 MiB physical per TensorCore
    if "v5" in kind or "v6" in kind:
        return 112 << 20          # v5e / v6e: 128 MiB physical
    return 64 << 20               # unknown generation: conservative


def _resident_spec(block_shape, index_map, single_buffer):
    """BlockSpec for a constant-index (VMEM-resident) operand.

    Requests single buffering (saves a full extra weight copy in VMEM); falls
    back to the default pipeline if this Pallas build rejects the kwarg.
    """
    if single_buffer:
        try:
            return pl.BlockSpec(block_shape, index_map,
                                pipeline_mode=pl.Buffered(1))
        except TypeError:
            pass
    return pl.BlockSpec(block_shape, index_map)


def gdcn_kernel(x_ref, wc_ref, b_ref, wp_ref, bp_ref, out_ref):
    """Fused GateCrossLayer (CN_LAYERS) + prediction head for one batch tile.

    x_ref  : (TB, Dp)       f32 embedded-input tile
    wc_ref : (L, Dp, 2*Dp)  packed [w_i | wg_i], pre-transposed, f32/bf16
    b_ref  : (L, 1, Dp)     cross biases (f32, resident)
    wp_ref : (1, Dp)        prediction weight row (f32, resident)
    bp_ref : (1,)           prediction bias (SMEM scalar)
    out_ref: (1, TB)        lane-dense prediction tile
    """
    L, Dp, _ = wc_ref.shape
    TB = x_ref.shape[0]
    H = TB // 2
    mm_dtype = wc_ref.dtype
    bp = bp_ref[0]

    # Two independent half-tiles: the layer recurrence serialises MXU then
    # VPU/EUP work, so interleaving two halves lets the scheduler overlap one
    # half's matmul with the other half's sigmoid / elementwise gate chain.
    x0s = [x_ref[0:H, :], x_ref[H:TB, :]]             # f32
    xs = list(x0s)
    for i in range(L):                                # static unroll
        wc_i = wc_ref[i]                              # (Dp, 2*Dp), resident
        b_i = b_ref[i]                                # (1, Dp)
        for h in range(2):
            xm = xs[h].astype(mm_dtype)               # cast MXU operand only
            # One fused dot for cross + gate; split at lane-aligned offset Dp.
            xwg = jnp.dot(xm, wc_i, preferred_element_type=jnp.float32)
            xw = xwg[:, :Dp] + b_i                    # cross branch (VPU)
            xg = jax.nn.sigmoid(xwg[:, Dp:])          # gate branch (EUP)
            xs[h] = x0s[h] * xw * xg + xs[h]          # f32 VPU chain

    # Prediction head: VPU multiply + lane reduction (no N=1 matmul), written
    # lane-dense as a full (1, TB) row.
    wp = wp_ref[...]                                  # (1, Dp)
    rows = [jnp.sum(xs[h] * wp, axis=-1)[None, :] for h in range(2)]
    out_ref[...] = jnp.concatenate(rows, axis=-1) + bp


@functools.partial(
    jax.jit, static_argnames=("tb", "mm_dtype", "single_buffer_weights"))
def _gdcn_pallas_impl(x_embed, w, wg, b, wp, bp, *, tb, mm_dtype,
                      single_buffer_weights):
    B, D = x_embed.shape
    L = w.shape[0]

    Dp = _round_up(max(D, LANE), LANE)                # pad feature dim to lanes

    # --- batch tiling: big tiles for small Dp, >= 2 tiles when possible -----
    if tb is None:
        tb = 1024 if Dp <= 256 else (512 if Dp <= 512 else 256)
    B_aligned = _round_up(B, LANE)
    n_blocks = B_aligned // LANE
    blocks_per_tile = max(1, min(tb // LANE, n_blocks))
    if n_blocks >= 2:
        # Keep at least two batch tiles so v7x's second TensorCore has work.
        blocks_per_tile = min(blocks_per_tile, max(1, n_blocks // 2))
    TB = blocks_per_tile * LANE
    num_tiles = -(-B_aligned // TB)
    Bp = num_tiles * TB

    # --- zero-padded operands (zeros are inert through the cross layers) ----
    x_p = jnp.zeros((Bp, Dp), jnp.float32).at[:B, :D].set(
        x_embed.astype(jnp.float32))
    # Packed [w | wg] along the output dim, each at a lane-aligned offset.
    wc_p = jnp.zeros((L, Dp, 2 * Dp), mm_dtype)
    wc_p = wc_p.at[:, :D, :D].set(w.astype(mm_dtype))
    wc_p = wc_p.at[:, :D, Dp:Dp + D].set(wg.astype(mm_dtype))
    b_p = jnp.zeros((L, 1, Dp), jnp.float32).at[:, 0, :D].set(
        b.astype(jnp.float32))
    wp_p = jnp.zeros((1, Dp), jnp.float32).at[0, :D].set(wp.astype(jnp.float32))
    bp_p = jnp.reshape(bp, (1,)).astype(jnp.float32)

    # --- VMEM budget (chip-generation aware) ---------------------------------
    itemsize = jnp.dtype(mm_dtype).itemsize
    weight_bufs = 1 if single_buffer_weights else 2
    resident_bytes = weight_bufs * (L * Dp * 2 * Dp * itemsize
                                    + L * Dp * 4 + Dp * 4)
    act_bytes = (2 * TB * Dp * 4            # double-buffered x tiles
                 + 2 * TB * 4               # double-buffered output rows
                 + 2 * TB * Dp * 4          # x0 / x live f32 copies
                 + TB * Dp * itemsize       # cast MXU-operand copies
                 + 2 * TB * (2 * Dp) * 4)   # fused-dot outputs + gate temps
    cap = _vmem_cap_bytes()
    if resident_bytes + act_bytes + (4 << 20) > cap:
        # TODO(synk): for very large embed_output_dim add an output-column
        # tile axis over Dp so [w|wg] need not be fully VMEM-resident (v7x).
        raise ValueError(
            "GDCN Pallas kernel: resident weights (%.1f MiB) + activations "
            "(%.1f MiB) exceed the VMEM budget (%d MiB); use bf16 weights, a "
            "smaller tb, or add weight tiling." %
            (resident_bytes / 2**20, act_bytes / 2**20, cap >> 20))
    vmem_limit = int(min(resident_bytes + act_bytes + (8 << 20), cap))

    flops = Bp * (L * (4 * Dp * Dp + 6 * Dp) + 2 * Dp)
    bytes_accessed = (x_p.size * 4 + wc_p.size * itemsize + b_p.size * 4
                      + wp_p.size * 4 + 4 + Bp * 4)

    out = pl.pallas_call(
        gdcn_kernel,
        out_shape=jax.ShapeDtypeStruct((1, Bp), jnp.float32),
        grid_spec=pltpu.PrefetchScalarGridSpec(
            num_scalar_prefetch=0,
            grid=(num_tiles,),
            in_specs=[
                pl.BlockSpec((TB, Dp), lambda i: (i, 0)),          # batch tile
                _resident_spec((L, Dp, 2 * Dp), lambda i: (0, 0, 0),
                               single_buffer_weights),             # packed w|wg
                _resident_spec((L, 1, Dp), lambda i: (0, 0, 0),
                               single_buffer_weights),             # biases
                _resident_spec((1, Dp), lambda i: (0, 0),
                               single_buffer_weights),             # pred weight
                pl.BlockSpec(memory_space=pltpu.MemorySpace.SMEM),  # pred bias
            ],
            out_specs=pl.BlockSpec((1, TB), lambda i: (0, i)),     # lane-dense
        ),
        compiler_params=pltpu.CompilerParams(
            dimension_semantics=("parallel",),
            vmem_limit_bytes=vmem_limit,
        ),
        cost_estimate=pl.CostEstimate(
            flops=int(flops),
            transcendentals=int(Bp * L * Dp),
            bytes_accessed=int(bytes_accessed),
        ),
    )(x_p, wc_p, b_p, wp_p, bp_p)

    return out[0, :B][:, None]


def gdcn_pallas(x_embed, w, wg, b, wp, bp, *, tb=None, mm_dtype=jnp.bfloat16):
    """GateCorssLayer (3 layers) + prediction head.

    x_embed: (B, D); w/wg: (L, D, D) pre-transposed (== Linear.weight.T, i.e.
    (D_in, D_out) layout -- passing raw PyTorch (D_out, D_in) weights is
    wrong); b: (L, D); wp: (D,); bp: scalar.  Returns (B, 1) predictions.
    mm_dtype controls the MXU operand dtype (bf16 default; accumulation and
    gate math stay f32).
    """
    try:
        return _gdcn_pallas_impl(x_embed, w, wg, b, wp, bp, tb=tb,
                                 mm_dtype=mm_dtype, single_buffer_weights=True)
    except ValueError:
        raise
    except Exception:
        # Some Pallas builds reject single-buffered (Buffered(1)) resident
        # weights at lowering; retry with the default double-buffered pipeline.
        return _gdcn_pallas_impl(x_embed, w, wg, b, wp, bp, tb=tb,
                                 mm_dtype=mm_dtype,
                                 single_buffer_weights=False)


def features_embedding(x_idx, table, offsets, num_fields, embed_dim):
    # FeaturesEmbedding(field_dims, embed_dim, concat=True): per-field offset
    # into one big table, lookup, concat along the feature axis.
    # TODO(synk): the embedding gather stays as plain-JAX glue (data-dependent
    # HBM gather; not worth a custom Pallas kernel at these sizes).
    idx = x_idx + offsets[None, :]                 # (B, F)
    emb = jnp.take(table, idx, axis=0)             # (B, F, E)
    return emb.reshape(x_idx.shape[0], num_fields * embed_dim)


def init_params(key, field_dims, embed_dim):
    num_fields = len(field_dims)
    D = num_fields * embed_dim
    vocab = sum(field_dims)
    ks = jax.random.split(key, 4 + 3 * CN_LAYERS)
    table = jax.random.normal(ks[0], (vocab, embed_dim), jnp.float32) * 0.1
    # cross / gate weights, stored as (D_in, D_out) == Linear.weight.T
    w = jnp.stack([jax.random.normal(ks[1 + i], (D, D), jnp.float32) * 0.05
                   for i in range(CN_LAYERS)])
    wg = jnp.stack([jax.random.normal(ks[1 + CN_LAYERS + i], (D, D),
                                      jnp.float32) * 0.05
                    for i in range(CN_LAYERS)])
    # torch.nn.init.uniform_ -> U[0, 1)
    b = jnp.stack([jax.random.uniform(ks[1 + 2 * CN_LAYERS + i], (D,),
                                      jnp.float32)
                   for i in range(CN_LAYERS)])
    wp = jax.random.normal(ks[-2], (D,), jnp.float32) * 0.05
    bp = jax.random.normal(ks[-1], (), jnp.float32) * 0.05
    offs = [0]
    for fd in field_dims[:-1]:
        offs.append(offs[-1] + fd)
    offsets = jnp.asarray(offs, jnp.int32)
    return table, offsets, w, wg, b, wp, bp


def reference_forward(x_embed, w, wg, b, wp, bp):
    # pure-JAX reference of GateCorssLayer + pred head (full-precision f32)
    hp = jax.lax.Precision.HIGHEST
    x0 = x_embed
    x = x0
    for i in range(CN_LAYERS):
        xw = jnp.dot(x, w[i], precision=hp)
        xg = jax.nn.sigmoid(jnp.dot(x, wg[i], precision=hp))
        x = x0 * (xw + b[i][None, :]) * xg + x
    return jnp.dot(x, wp, precision=hp)[:, None] + bp


if __name__ == "__main__":
    field_dims = [5, 7, 11, 13]
    embed_dim = 8
    num_fields = len(field_dims)
    batch = 8

    key = jax.random.PRNGKey(0)
    k_param, k_x = jax.random.split(key)
    table, offsets, w, wg, b, wp, bp = init_params(k_param, field_dims,
                                                   embed_dim)

    # categorical indices, one column per field, valid within each field's dim
    cols = []
    kk = jax.random.split(k_x, num_fields)
    for f, fd in enumerate(field_dims):
        cols.append(jax.random.randint(kk[f], (batch,), 0, fd, jnp.int32))
    x_idx = jnp.stack(cols, axis=1)                # (B, F)

    x_embed = features_embedding(x_idx, table, offsets, num_fields, embed_dim)
    ref = reference_forward(x_embed, w, wg, b, wp, bp)

    # f32 MXU-operand path (numerically closest to the PyTorch module).
    out_f32 = gdcn_pallas(x_embed, w, wg, b, wp, bp, mm_dtype=jnp.float32)
    out_f32 = jax.block_until_ready(out_f32)
    assert out_f32.shape == (batch, 1)
    assert jnp.allclose(out_f32, ref, atol=2e-3, rtol=2e-3)

    # default bf16 MXU-operand path (f32 accumulation + f32 gate math).
    out_bf16 = gdcn_pallas(x_embed, w, wg, b, wp, bp)
    out_bf16 = jax.block_until_ready(out_bf16)
    assert out_bf16.shape == (batch, 1)
    assert jnp.allclose(out_bf16, ref, atol=5e-2, rtol=5e-2)

    print("KERNEL_OK")
</pallas_src>

<mosaic_0001>
module attributes {stable_mosaic.version = 11 : i64} {
  func.func @gdcn_kernel(%arg0: i32, %arg1: memref<128x128xf32, #tpu.memory_space<vmem>>, %arg2: memref<3x128x256xf32, #tpu.memory_space<vmem>>, %arg3: memref<3x1x128xf32, #tpu.memory_space<vmem>>, %arg4: memref<1x128xf32, #tpu.memory_space<vmem>>, %arg5: memref<1xf32, #tpu.memory_space<smem>>, %arg6: memref<1x128xf32, #tpu.memory_space<vmem>>) attributes {dimension_semantics = [#tpu.dimension_semantics<parallel>], iteration_bounds = array<i64: 1>, scalar_prefetch = 0 : i64, scratch_operands = 0 : i64, tpu.core_type = #tpu.core_type<tc>, window_params = [{transform_indices = @transform_0, window_bounds = array<i64: 128, 128>}, {pipeline_mode = #tpu.pipeline_mode<synchronous>, transform_indices = @transform_1, window_bounds = array<i64: 3, 128, 256>}, {pipeline_mode = #tpu.pipeline_mode<synchronous>, transform_indices = @transform_2, window_bounds = array<i64: 3, 1, 128>}, {pipeline_mode = #tpu.pipeline_mode<synchronous>, transform_indices = @transform_3, window_bounds = array<i64: 1, 128>}, {transform_indices = @transform_4, window_bounds = array<i64: 1>}, {transform_indices = @transform_5, window_bounds = array<i64: 1, 128>}]} {
    %c0 = arith.constant 0 : index
    %0 = memref.load %arg5[%c0] : memref<1xf32, #tpu.memory_space<smem>>
    %c0_0 = arith.constant 0 : index
    %c0_1 = arith.constant 0 : index
    %1 = vector.load %arg1[%c0_0, %c0_1] : memref<128x128xf32, #tpu.memory_space<vmem>>, vector<64x128xf32>
    %c64 = arith.constant 64 : index
    %c0_2 = arith.constant 0 : index
    %2 = vector.load %arg1[%c64, %c0_2] : memref<128x128xf32, #tpu.memory_space<vmem>>, vector<64x128xf32>
    %c0_3 = arith.constant 0 : index
    %c0_4 = arith.constant 0 : index
    %c0_5 = arith.constant 0 : index
    %3 = vector.load %arg2[%c0_3, %c0_4, %c0_5] : memref<3x128x256xf32, #tpu.memory_space<vmem>>, vector<1x128x256xf32>
    %4 = vector.shape_cast %3 : vector<1x128x256xf32> to vector<128x256xf32>
    %c0_6 = arith.constant 0 : index
    %c0_7 = arith.constant 0 : index
    %c0_8 = arith.constant 0 : index
    %5 = vector.load %arg3[%c0_6, %c0_7, %c0_8] : memref<3x1x128xf32, #tpu.memory_space<vmem>>, vector<1x1x128xf32>
    %6 = vector.shape_cast %5 : vector<1x1x128xf32> to vector<1x128xf32>
    %cst = arith.constant dense<0.000000e+00> : vector<64x256xf32>
    %7 = tpu.matmul %1, %4, %cst {dimension_numbers = #tpu.dot_dimension_numbers<[1], [0], [0], [1], [0, 0, 1, 1], [], []>} : vector<64x128xf32>, vector<128x256xf32>, vector<64x256xf32> -> vector<64x256xf32>
    %8 = vector.extract_strided_slice %7 {offsets = [0, 0], sizes = [64, 128], strides = [1, 1]} : vector<64x256xf32> to vector<64x128xf32>
    %9 = vector.broadcast %6 : vector<1x128xf32> to vector<64x128xf32>
    %10 = arith.addf %8, %9 : vector<64x128xf32>
    %11 = vector.extract_strided_slice %7 {offsets = [0, 128], sizes = [64, 128], strides = [1, 1]} : vector<64x256xf32> to vector<64x128xf32>
    %12 = arith.negf %11 : vector<64x128xf32>
    %13 = math.exp %12 : vector<64x128xf32>
    %cst_9 = arith.constant 1.000000e+00 : f32
    %14 = vector.broadcast %cst_9 : f32 to vector<64x128xf32>
    %15 = arith.addf %14, %13 : vector<64x128xf32>
    %16 = arith.divf %14, %15 : vector<64x128xf32>
    %17 = arith.mulf %1, %10 : vector<64x128xf32>
    %18 = arith.mulf %17, %16 : vector<64x128xf32>
    %19 = arith.addf %18, %1 : vector<64x128xf32>
    %cst_10 = arith.constant dense<0.000000e+00> : vector<64x256xf32>
    %20 = tpu.matmul %2, %4, %cst_10 {dimension_numbers = #tpu.dot_dimension_numbers<[1], [0], [0], [1], [0, 0, 1, 1], [], []>} : vector<64x128xf32>, vector<128x256xf32>, vector<64x256xf32> -> vector<64x256xf32>
    %21 = vector.extract_strided_slice %20 {offsets = [0, 0], sizes = [64, 128], strides = [1, 1]} : vector<64x256xf32> to vector<64x128xf32>
    %22 = vector.broadcast %6 : vector<1x128xf32> to vector<64x128xf32>
    %23 = arith.addf %21, %22 : vector<64x128xf32>
    %24 = vector.extract_strided_slice %20 {offsets = [0, 128], sizes = [64, 128], strides = [1, 1]} : vector<64x256xf32> to vector<64x128xf32>
    %25 = arith.negf %24 : vector<64x128xf32>
    %26 = math.exp %25 : vector<64x128xf32>
    %cst_11 = arith.constant 1.000000e+00 : f32
    %27 = vector.broadcast %cst_11 : f32 to vector<64x128xf32>
    %28 = arith.addf %27, %26 : vector<64x128xf32>
    %29 = arith.divf %27, %28 : vector<64x128xf32>
    %30 = arith.mulf %2, %23 : vector<64x128xf32>
    %31 = arith.mulf %30, %29 : vector<64x128xf32>
    %32 = arith.addf %31, %2 : vector<64x128xf32>
    %c1 = arith.constant 1 : index
    %c0_12 = arith.constant 0 : index
    %c0_13 = arith.constant 0 : index
    %33 = vector.load %arg2[%c1, %c0_12, %c0_13] : memref<3x128x256xf32, #tpu.memory_space<vmem>>, vector<1x128x256xf32>
    %34 = vector.shape_cast %33 : vector<1x128x256xf32> to vector<128x256xf32>
    %c1_14 = arith.constant 1 : index
    %c0_15 = arith.constant 0 : index
    %c0_16 = arith.constant 0 : index
    %35 = vector.load %arg3[%c1_14, %c0_15, %c0_16] : memref<3x1x128xf32, #tpu.memory_space<vmem>>, vector<1x1x128xf32>
    %36 = vector.shape_cast %35 : vector<1x1x128xf32> to vector<1x128xf32>
    %cst_17 = arith.constant dense<0.000000e+00> : vector<64x256xf32>
    %37 = tpu.matmul %19, %34, %cst_17 {dimension_numbers = #tpu.dot_dimension_numbers<[1], [0], [0], [1], [0, 0, 1, 1], [], []>} : vector<64x128xf32>, vector<128x256xf32>, vector<64x256xf32> -> vector<64x256xf32>
    %38 = vector.extract_strided_slice %37 {offsets = [0, 0], sizes = [64, 128], strides = [1, 1]} : vector<64x256xf32> to vector<64x128xf32>
    %39 = vector.broadcast %36 : vector<1x128xf32> to vector<64x128xf32>
    %40 = arith.addf %38, %39 : vector<64x128xf32>
    %41 = vector.extract_strided_slice %37 {offsets = [0, 128], sizes = [64, 128], strides = [1, 1]} : vector<64x256xf32> to vector<64x128xf32>
    %42 = arith.negf %41 : vector<64x128xf32>
    %43 = math.exp %42 : vector<64x128xf32>
    %cst_18 = arith.constant 1.000000e+00 : f32
    %44 = vector.broadcast %cst_18 : f32 to vector<64x128xf32>
    %45 = arith.addf %44, %43 : vector<64x128xf32>
    %46 = arith.divf %44, %45 : vector<64x128xf32>
    %47 = arith.mulf %1, %40 : vector<64x128xf32>
    %48 = arith.mulf %47, %46 : vector<64x128xf32>
    %49 = arith.addf %48, %19 : vector<64x128xf32>
    %cst_19 = arith.constant dense<0.000000e+00> : vector<64x256xf32>
    %50 = tpu.matmul %32, %34, %cst_19 {dimension_numbers = #tpu.dot_dimension_numbers<[1], [0], [0], [1], [0, 0, 1, 1], [], []>} : vector<64x128xf32>, vector<128x256xf32>, vector<64x256xf32> -> vector<64x256xf32>
    %51 = vector.extract_strided_slice %50 {offsets = [0, 0], sizes = [64, 128], strides = [1, 1]} : vector<64x256xf32> to vector<64x128xf32>
    %52 = vector.broadcast %36 : vector<1x128xf32> to vector<64x128xf32>
    %53 = arith.addf %51, %52 : vector<64x128xf32>
    %54 = vector.extract_strided_slice %50 {offsets = [0, 128], sizes = [64, 128], strides = [1, 1]} : vector<64x256xf32> to vector<64x128xf32>
    %55 = arith.negf %54 : vector<64x128xf32>
    %56 = math.exp %55 : vector<64x128xf32>
    %cst_20 = arith.constant 1.000000e+00 : f32
    %57 = vector.broadcast %cst_20 : f32 to vector<64x128xf32>
    %58 = arith.addf %57, %56 : vector<64x128xf32>
    %59 = arith.divf %57, %58 : vector<64x128xf32>
    %60 = arith.mulf %2, %53 : vector<64x128xf32>
    %61 = arith.mulf %60, %59 : vector<64x128xf32>
    %62 = arith.addf %61, %32 : vector<64x128xf32>
    %c2 = arith.constant 2 : index
    %c0_21 = arith.constant 0 : index
    %c0_22 = arith.constant 0 : index
    %63 = vector.load %arg2[%c2, %c0_21, %c0_22] : memref<3x128x256xf32, #tpu.memory_space<vmem>>, vector<1x128x256xf32>
    %64 = vector.shape_cast %63 : vector<1x128x256xf32> to vector<128x256xf32>
    %c2_23 = arith.constant 2 : index
    %c0_24 = arith.constant 0 : index
    %c0_25 = arith.constant 0 : index
    %65 = vector.load %arg3[%c2_23, %c0_24, %c0_25] : memref<3x1x128xf32, #tpu.memory_space<vmem>>, vector<1x1x128xf32>
    %66 = vector.shape_cast %65 : vector<1x1x128xf32> to vector<1x128xf32>
    %cst_26 = arith.constant dense<0.000000e+00> : vector<64x256xf32>
    %67 = tpu.matmul %49, %64, %cst_26 {dimension_numbers = #tpu.dot_dimension_numbers<[1], [0], [0], [1], [0, 0, 1, 1], [], []>} : vector<64x128xf32>, vector<128x256xf32>, vector<64x256xf32> -> vector<64x256xf32>
    %68 = vector.extract_strided_slice %67 {offsets = [0, 0], sizes = [64, 128], strides = [1, 1]} : vector<64x256xf32> to vector<64x128xf32>
    %69 = vector.broadcast %66 : vector<1x128xf32> to vector<64x128xf32>
    %70 = arith.addf %68, %69 : vector<64x128xf32>
    %71 = vector.extract_strided_slice %67 {offsets = [0, 128], sizes = [64, 128], strides = [1, 1]} : vector<64x256xf32> to vector<64x128xf32>
    %72 = arith.negf %71 : vector<64x128xf32>
    %73 = math.exp %72 : vector<64x128xf32>
    %cst_27 = arith.constant 1.000000e+00 : f32
    %74 = vector.broadcast %cst_27 : f32 to vector<64x128xf32>
    %75 = arith.addf %74, %73 : vector<64x128xf32>
    %76 = arith.divf %74, %75 : vector<64x128xf32>
    %77 = arith.mulf %1, %70 : vector<64x128xf32>
    %78 = arith.mulf %77, %76 : vector<64x128xf32>
    %79 = arith.addf %78, %49 : vector<64x128xf32>
    %cst_28 = arith.constant dense<0.000000e+00> : vector<64x256xf32>
    %80 = tpu.matmul %62, %64, %cst_28 {dimension_numbers = #tpu.dot_dimension_numbers<[1], [0], [0], [1], [0, 0, 1, 1], [], []>} : vector<64x128xf32>, vector<128x256xf32>, vector<64x256xf32> -> vector<64x256xf32>
    %81 = vector.extract_strided_slice %80 {offsets = [0, 0], sizes = [64, 128], strides = [1, 1]} : vector<64x256xf32> to vector<64x128xf32>
    %82 = vector.broadcast %66 : vector<1x128xf32> to vector<64x128xf32>
    %83 = arith.addf %81, %82 : vector<64x128xf32>
    %84 = vector.extract_strided_slice %80 {offsets = [0, 128], sizes = [64, 128], strides = [1, 1]} : vector<64x256xf32> to vector<64x128xf32>
    %85 = arith.negf %84 : vector<64x128xf32>
    %86 = math.exp %85 : vector<64x128xf32>
    %cst_29 = arith.constant 1.000000e+00 : f32
    %87 = vector.broadcast %cst_29 : f32 to vector<64x128xf32>
    %88 = arith.addf %87, %86 : vector<64x128xf32>
    %89 = arith.divf %87, %88 : vector<64x128xf32>
    %90 = arith.mulf %2, %83 : vector<64x128xf32>
    %91 = arith.mulf %90, %89 : vector<64x128xf32>
    %92 = arith.addf %91, %62 : vector<64x128xf32>
    %c0_30 = arith.constant 0 : index
    %c0_31 = arith.constant 0 : index
    %93 = vector.load %arg4[%c0_30, %c0_31] : memref<1x128xf32, #tpu.memory_space<vmem>>, vector<1x128xf32>
    %94 = vector.broadcast %93 : vector<1x128xf32> to vector<64x128xf32>
    %95 = arith.mulf %79, %94 : vector<64x128xf32>
    %cst_32 = arith.constant dense<0.000000e+00> : vector<64xf32>
    %96 = vector.multi_reduction <add>, %95, %cst_32 [1] : vector<64x128xf32> to vector<64xf32>
    %97 = vector.shape_cast %96 : vector<64xf32> to vector<1x64xf32>
    %98 = vector.broadcast %93 : vector<1x128xf32> to vector<64x128xf32>
    %99 = arith.mulf %92, %98 : vector<64x128xf32>
    %cst_33 = arith.constant dense<0.000000e+00> : vector<64xf32>
    %100 = vector.multi_reduction <add>, %99, %cst_33 [1] : vector<64x128xf32> to vector<64xf32>
    %101 = vector.shape_cast %100 : vector<64xf32> to vector<1x64xf32>
    %102 = tpu.concatenate %97, %101 in 1 : vector<1x64xf32>, vector<1x64xf32> -> vector<1x128xf32>
    %103 = vector.broadcast %0 : f32 to vector<1x128xf32>
    %104 = arith.addf %102, %103 : vector<1x128xf32>
    %c0_34 = arith.constant 0 : index
    %c0_35 = arith.constant 0 : index
    %105 = vector.load %arg6[%c0_34, %c0_35] : memref<1x128xf32, #tpu.memory_space<vmem>>, vector<1x128xf32>
    tpu.vector_store %arg6[%c0_34, %c0_35], %104 {strides = array<i32>} : memref<1x128xf32, #tpu.memory_space<vmem>>, vector<1x128xf32>,
    return
  }
  func.func @transform_0(%arg0: i32) -> (i32, i32) {
    %c0_i32 = arith.constant 0 : i32
    %c0_i32_0 = arith.constant 0 : i32
    return %arg0, %c0_i32 : i32, i32
  }
  func.func @transform_1(%arg0: i32) -> (i32, i32, i32) {
    %c0_i32 = arith.constant 0 : i32
    %c0_i32_0 = arith.constant 0 : i32
    %c0_i32_1 = arith.constant 0 : i32
    %c0_i32_2 = arith.constant 0 : i32
    return %c0_i32, %c0_i32_0, %c0_i32_1 : i32, i32, i32
  }
  func.func @transform_2(%arg0: i32) -> (i32, i32, i32) {
    %c0_i32 = arith.constant 0 : i32
    %c0_i32_0 = arith.constant 0 : i32
    %c0_i32_1 = arith.constant 0 : i32
    %c0_i32_2 = arith.constant 0 : i32
    return %c0_i32, %c0_i32_0, %c0_i32_1 : i32, i32, i32
  }
  func.func @transform_3(%arg0: i32) -> (i32, i32) {
    %c0_i32 = arith.constant 0 : i32
    %c0_i32_0 = arith.constant 0 : i32
    %c0_i32_1 = arith.constant 0 : i32
    return %c0_i32, %c0_i32_0 : i32, i32
  }
  func.func @transform_4(%arg0: i32) -> i32 {
    %c0_i32 = arith.constant 0 : i32
    %c0_i32_0 = arith.constant 0 : i32
    return %c0_i32 : i32
  }
  func.func @transform_5(%arg0: i32) -> (i32, i32) {
    %c0_i32 = arith.constant 0 : i32
    %c0_i32_0 = arith.constant 0 : i32
    return %c0_i32, %arg0 : i32, i32
  }
}

module attributes {stable_mosaic.version = 11 : i64} {
  func.func @gdcn_kernel(%arg0: i32, %arg1: memref<128x128xf32, #tpu.memory_space<vmem>>, %arg2: memref<3x128x256xf32, #tpu.memory_space<vmem>>, %arg3: memref<3x1x128xf32, #tpu.memory_space<vmem>>, %arg4: memref<1x128xf32, #tpu.memory_space<vmem>>, %arg5: memref<1xf32, #tpu.memory_space<smem>>, %arg6: memref<1x128xf32, #tpu.memory_space<vmem>>) attributes {dimension_semantics = [#tpu.dimension_semantics<parallel>], iteration_bounds = array<i64: 1>, scalar_prefetch = 0 : i64, scratch_operands = 0 : i64, tpu.core_type = #tpu.core_type<tc>, window_params = [{transform_indices = @transform_0, window_bounds = array<i64: 128, 128>}, {pipeline_mode = #tpu.pipeline_mode<synchronous>, transform_indices = @transform_1, window_bounds = array<i64: 3, 128, 256>}, {pipeline_mode = #tpu.pipeline_mode<synchronous>, transform_indices = @transform_2, window_bounds = array<i64: 3, 1, 128>}, {pipeline_mode = #tpu.pipeline_mode<synchronous>, transform_indices = @transform_3, window_bounds = array<i64: 1, 128>}, {transform_indices = @transform_4, window_bounds = array<i64: 1>}, {transform_indices = @transform_5, window_bounds = array<i64: 1, 128>}]} {
    %c0 = arith.constant 0 : index
    %0 = memref.load %arg5[%c0] : memref<1xf32, #tpu.memory_space<smem>>
    %c0_0 = arith.constant 0 : index
    %c0_1 = arith.constant 0 : index
    %1 = vector.load %arg1[%c0_0, %c0_1] : memref<128x128xf32, #tpu.memory_space<vmem>>, vector<64x128xf32>
    %c64 = arith.constant 64 : index
    %c0_2 = arith.constant 0 : index
    %2 = vector.load %arg1[%c64, %c0_2] : memref<128x128xf32, #tpu.memory_space<vmem>>, vector<64x128xf32>
    %c0_3 = arith.constant 0 : index
    %c0_4 = arith.constant 0 : index
    %c0_5 = arith.constant 0 : index
    %3 = vector.load %arg2[%c0_3, %c0_4, %c0_5] : memref<3x128x256xf32, #tpu.memory_space<vmem>>, vector<1x128x256xf32>
    %4 = vector.shape_cast %3 : vector<1x128x256xf32> to vector<128x256xf32>
    %c0_6 = arith.constant 0 : index
    %c0_7 = arith.constant 0 : index
    %c0_8 = arith.constant 0 : index
    %5 = vector.load %arg3[%c0_6, %c0_7, %c0_8] : memref<3x1x128xf32, #tpu.memory_space<vmem>>, vector<1x1x128xf32>
    %6 = vector.shape_cast %5 : vector<1x1x128xf32> to vector<1x128xf32>
    %cst = arith.constant dense<0.000000e+00> : vector<64x256xf32>
    %7 = tpu.matmul %1, %4, %cst {dimension_numbers = #tpu.dot_dimension_numbers<[1], [0], [0], [1], [0, 0, 1, 1], [], []>} : vector<64x128xf32>, vector<128x256xf32>, vector<64x256xf32> -> vector<64x256xf32>
    %8 = vector.extract_strided_slice %7 {offsets = [0, 0], sizes = [64, 128], strides = [1, 1]} : vector<64x256xf32> to vector<64x128xf32>
    %9 = vector.broadcast %6 : vector<1x128xf32> to vector<64x128xf32>
    %10 = arith.addf %8, %9 : vector<64x128xf32>
    %11 = vector.extract_strided_slice %7 {offsets = [0, 128], sizes = [64, 128], strides = [1, 1]} : vector<64x256xf32> to vector<64x128xf32>
    %12 = arith.negf %11 : vector<64x128xf32>
    %13 = math.exp %12 : vector<64x128xf32>
    %cst_9 = arith.constant 1.000000e+00 : f32
    %14 = vector.broadcast %cst_9 : f32 to vector<64x128xf32>
    %15 = arith.addf %14, %13 : vector<64x128xf32>
    %16 = arith.divf %14, %15 : vector<64x128xf32>
    %17 = arith.mulf %1, %10 : vector<64x128xf32>
    %18 = arith.mulf %17, %16 : vector<64x128xf32>
    %19 = arith.addf %18, %1 : vector<64x128xf32>
    %cst_10 = arith.constant dense<0.000000e+00> : vector<64x256xf32>
    %20 = tpu.matmul %2, %4, %cst_10 {dimension_numbers = #tpu.dot_dimension_numbers<[1], [0], [0], [1], [0, 0, 1, 1], [], []>} : vector<64x128xf32>, vector<128x256xf32>, vector<64x256xf32> -> vector<64x256xf32>
    %21 = vector.extract_strided_slice %20 {offsets = [0, 0], sizes = [64, 128], strides = [1, 1]} : vector<64x256xf32> to vector<64x128xf32>
    %22 = vector.broadcast %6 : vector<1x128xf32> to vector<64x128xf32>
    %23 = arith.addf %21, %22 : vector<64x128xf32>
    %24 = vector.extract_strided_slice %20 {offsets = [0, 128], sizes = [64, 128], strides = [1, 1]} : vector<64x256xf32> to vector<64x128xf32>
    %25 = arith.negf %24 : vector<64x128xf32>
    %26 = math.exp %25 : vector<64x128xf32>
    %cst_11 = arith.constant 1.000000e+00 : f32
    %27 = vector.broadcast %cst_11 : f32 to vector<64x128xf32>
    %28 = arith.addf %27, %26 : vector<64x128xf32>
    %29 = arith.divf %27, %28 : vector<64x128xf32>
    %30 = arith.mulf %2, %23 : vector<64x128xf32>
    %31 = arith.mulf %30, %29 : vector<64x128xf32>
    %32 = arith.addf %31, %2 : vector<64x128xf32>
    %c1 = arith.constant 1 : index
    %c0_12 = arith.constant 0 : index
    %c0_13 = arith.constant 0 : index
    %33 = vector.load %arg2[%c1, %c0_12, %c0_13] : memref<3x128x256xf32, #tpu.memory_space<vmem>>, vector<1x128x256xf32>
    %34 = vector.shape_cast %33 : vector<1x128x256xf32> to vector<128x256xf32>
    %c1_14 = arith.constant 1 : index
    %c0_15 = arith.constant 0 : index
    %c0_16 = arith.constant 0 : index
    %35 = vector.load %arg3[%c1_14, %c0_15, %c0_16] : memref<3x1x128xf32, #tpu.memory_space<vmem>>, vector<1x1x128xf32>
    %36 = vector.shape_cast %35 : vector<1x1x128xf32> to vector<1x128xf32>
    %cst_17 = arith.constant dense<0.000000e+00> : vector<64x256xf32>
    %37 = tpu.matmul %19, %34, %cst_17 {dimension_numbers = #tpu.dot_dimension_numbers<[1], [0], [0], [1], [0, 0, 1, 1], [], []>} : vector<64x128xf32>, vector<128x256xf32>, vector<64x256xf32> -> vector<64x256xf32>
    %38 = vector.extract_strided_slice %37 {offsets = [0, 0], sizes = [64, 128], strides = [1, 1]} : vector<64x256xf32> to vector<64x128xf32>
    %39 = vector.broadcast %36 : vector<1x128xf32> to vector<64x128xf32>
    %40 = arith.addf %38, %39 : vector<64x128xf32>
    %41 = vector.extract_strided_slice %37 {offsets = [0, 128], sizes = [64, 128], strides = [1, 1]} : vector<64x256xf32> to vector<64x128xf32>
    %42 = arith.negf %41 : vector<64x128xf32>
    %43 = math.exp %42 : vector<64x128xf32>
    %cst_18 = arith.constant 1.000000e+00 : f32
    %44 = vector.broadcast %cst_18 : f32 to vector<64x128xf32>
    %45 = arith.addf %44, %43 : vector<64x128xf32>
    %46 = arith.divf %44, %45 : vector<64x128xf32>
    %47 = arith.mulf %1, %40 : vector<64x128xf32>
    %48 = arith.mulf %47, %46 : vector<64x128xf32>
    %49 = arith.addf %48, %19 : vector<64x128xf32>
    %cst_19 = arith.constant dense<0.000000e+00> : vector<64x256xf32>
    %50 = tpu.matmul %32, %34, %cst_19 {dimension_numbers = #tpu.dot_dimension_numbers<[1], [0], [0], [1], [0, 0, 1, 1], [], []>} : vector<64x128xf32>, vector<128x256xf32>, vector<64x256xf32> -> vector<64x256xf32>
    %51 = vector.extract_strided_slice %50 {offsets = [0, 0], sizes = [64, 128], strides = [1, 1]} : vector<64x256xf32> to vector<64x128xf32>
    %52 = vector.broadcast %36 : vector<1x128xf32> to vector<64x128xf32>
    %53 = arith.addf %51, %52 : vector<64x128xf32>
    %54 = vector.extract_strided_slice %50 {offsets = [0, 128], sizes = [64, 128], strides = [1, 1]} : vector<64x256xf32> to vector<64x128xf32>
    %55 = arith.negf %54 : vector<64x128xf32>
    %56 = math.exp %55 : vector<64x128xf32>
    %cst_20 = arith.constant 1.000000e+00 : f32
    %57 = vector.broadcast %cst_20 : f32 to vector<64x128xf32>
    %58 = arith.addf %57, %56 : vector<64x128xf32>
    %59 = arith.divf %57, %58 : vector<64x128xf32>
    %60 = arith.mulf %2, %53 : vector<64x128xf32>
    %61 = arith.mulf %60, %59 : vector<64x128xf32>
    %62 = arith.addf %61, %32 : vector<64x128xf32>
    %c2 = arith.constant 2 : index
    %c0_21 = arith.constant 0 : index
    %c0_22 = arith.constant 0 : index
    %63 = vector.load %arg2[%c2, %c0_21, %c0_22] : memref<3x128x256xf32, #tpu.memory_space<vmem>>, vector<1x128x256xf32>
    %64 = vector.shape_cast %63 : vector<1x128x256xf32> to vector<128x256xf32>
    %c2_23 = arith.constant 2 : index
    %c0_24 = arith.constant 0 : index
    %c0_25 = arith.constant 0 : index
    %65 = vector.load %arg3[%c2_23, %c0_24, %c0_25] : memref<3x1x128xf32, #tpu.memory_space<vmem>>, vector<1x1x128xf32>
    %66 = vector.shape_cast %65 : vector<1x1x128xf32> to vector<1x128xf32>
    %cst_26 = arith.constant dense<0.000000e+00> : vector<64x256xf32>
    %67 = tpu.matmul %49, %64, %cst_26 {dimension_numbers = #tpu.dot_dimension_numbers<[1], [0], [0], [1], [0, 0, 1, 1], [], []>} : vector<64x128xf32>, vector<128x256xf32>, vector<64x256xf32> -> vector<64x256xf32>
    %68 = vector.extract_strided_slice %67 {offsets = [0, 0], sizes = [64, 128], strides = [1, 1]} : vector<64x256xf32> to vector<64x128xf32>
    %69 = vector.broadcast %66 : vector<1x128xf32> to vector<64x128xf32>
    %70 = arith.addf %68, %69 : vector<64x128xf32>
    %71 = vector.extract_strided_slice %67 {offsets = [0, 128], sizes = [64, 128], strides = [1, 1]} : vector<64x256xf32> to vector<64x128xf32>
    %72 = arith.negf %71 : vector<64x128xf32>
    %73 = math.exp %72 : vector<64x128xf32>
    %cst_27 = arith.constant 1.000000e+00 : f32
    %74 = vector.broadcast %cst_27 : f32 to vector<64x128xf32>
    %75 = arith.addf %74, %73 : vector<64x128xf32>
    %76 = arith.divf %74, %75 : vector<64x128xf32>
    %77 = arith.mulf %1, %70 : vector<64x128xf32>
    %78 = arith.mulf %77, %76 : vector<64x128xf32>
    %79 = arith.addf %78, %49 : vector<64x128xf32>
    %cst_28 = arith.constant dense<0.000000e+00> : vector<64x256xf32>
    %80 = tpu.matmul %62, %64, %cst_28 {dimension_numbers = #tpu.dot_dimension_numbers<[1], [0], [0], [1], [0, 0, 1, 1], [], []>} : vector<64x128xf32>, vector<128x256xf32>, vector<64x256xf32> -> vector<64x256xf32>
    %81 = vector.extract_strided_slice %80 {offsets = [0, 0], sizes = [64, 128], strides = [1, 1]} : vector<64x256xf32> to vector<64x128xf32>
    %82 = vector.broadcast %66 : vector<1x128xf32> to vector<64x128xf32>
    %83 = arith.addf %81, %82 : vector<64x128xf32>
    %84 = vector.extract_strided_slice %80 {offsets = [0, 128], sizes = [64, 128], strides = [1, 1]} : vector<64x256xf32> to vector<64x128xf32>
    %85 = arith.negf %84 : vector<64x128xf32>
    %86 = math.exp %85 : vector<64x128xf32>
    %cst_29 = arith.constant 1.000000e+00 : f32
    %87 = vector.broadcast %cst_29 : f32 to vector<64x128xf32>
    %88 = arith.addf %87, %86 : vector<64x128xf32>
    %89 = arith.divf %87, %88 : vector<64x128xf32>
    %90 = arith.mulf %2, %83 : vector<64x128xf32>
    %91 = arith.mulf %90, %89 : vector<64x128xf32>
    %92 = arith.addf %91, %62 : vector<64x128xf32>
    %c0_30 = arith.constant 0 : index
    %c0_31 = arith.constant 0 : index
    %93 = vector.load %arg4[%c0_30, %c0_31] : memref<1x128xf32, #tpu.memory_space<vmem>>, vector<1x128xf32>
    %94 = vector.broadcast %93 : vector<1x128xf32> to vector<64x128xf32>
    %95 = arith.mulf %79, %94 : vector<64x128xf32>
    %cst_32 = arith.constant dense<0.000000e+00> : vector<64xf32>
    %96 = vector.multi_reduction <add>, %95, %cst_32 [1] : vector<64x128xf32> to vector<64xf32>
    %97 = vector.shape_cast %96 : vector<64xf32> to vector<1x64xf32>
    %98 = vector.broadcast %93 : vector<1x128xf32> to vector<64x128xf32>
    %99 = arith.mulf %92, %98 : vector<64x128xf32>
    %cst_33 = arith.constant dense<0.000000e+00> : vector<64xf32>
    %100 = vector.multi_reduction <add>, %99, %cst_33 [1] : vector<64x128xf32> to vector<64xf32>
    %101 = vector.shape_cast %100 : vector<64xf32> to vector<1x64xf32>
    %102 = tpu.concatenate %97, %101 in 1 : vector<1x64xf32>, vector<1x64xf32> -> vector<1x128xf32>
    %103 = vector.broadcast %0 : f32 to vector<1x128xf32>
    %104 = arith.addf %102, %103 : vector<1x128xf32>
    %c0_34 = arith.constant 0 : index
    %c0_35 = arith.constant 0 : index
    %105 = vector.load %arg6[%c0_34, %c0_35] : memref<1x128xf32, #tpu.memory_space<vmem>>, vector<1x128xf32>
    tpu.vector_store %arg6[%c0_34, %c0_35], %104 {strides = array<i32>} : memref<1x128xf32, #tpu.memory_space<vmem>>, vector<1x128xf32>,
    return
  }
  func.func @transform_0(%arg0: i32) -> (i32, i32) {
    %c0_i32 = arith.constant 0 : i32
    %c0_i32_0 = arith.constant 0 : i32
    return %arg0, %c0_i32 : i32, i32
  }
  func.func @transform_1(%arg0: i32) -> (i32, i32, i32) {
    %c0_i32 = arith.constant 0 : i32
    %c0_i32_0 = arith.constant 0 : i32
    %c0_i32_1 = arith.constant 0 : i32
    %c0_i32_2 = arith.constant 0 : i32
    return %c0_i32, %c0_i32_0, %c0_i32_1 : i32, i32, i32
  }
  func.func @transform_2(%arg0: i32) -> (i32, i32, i32) {
    %c0_i32 = arith.constant 0 : i32
    %c0_i32_0 = arith.constant 0 : i32
    %c0_i32_1 = arith.constant 0 : i32
    %c0_i32_2 = arith.constant 0 : i32
    return %c0_i32, %c0_i32_0, %c0_i32_1 : i32, i32, i32
  }
  func.func @transform_3(%arg0: i32) -> (i32, i32) {
    %c0_i32 = arith.constant 0 : i32
    %c0_i32_0 = arith.constant 0 : i32
    %c0_i32_1 = arith.constant 0 : i32
    return %c0_i32, %c0_i32_0 : i32, i32
  }
  func.func @transform_4(%arg0: i32) -> i32 {
    %c0_i32 = arith.constant 0 : i32
    %c0_i32_0 = arith.constant 0 : i32
    return %c0_i32 : i32
  }
  func.func @transform_5(%arg0: i32) -> (i32, i32) {
    %c0_i32 = arith.constant 0 : i32
    %c0_i32_0 = arith.constant 0 : i32
    return %c0_i32, %arg0 : i32, i32
  }
}

</mosaic_0001>

<bundles_post_ra>
// kernel: _gdcn_pallas_impl.1
= control target key start
LH: loop header
LB: loop body
LE: loop exit
PB: predicated region body
PF: predicated region fallthrough
CT: control target
= control target key end

     0   :  { %v2027_v3 = vmov 0.0   ;;  %vm1454_vm0 = vcmask 654912   ;;  %vm1391_vm1 = vcmask 130112   ;;  %vm1461_vm2 = vcmask 720512   ;;  %s2995_s1 = inlined_call_operand.vmem [shape: f32[3,128,256], index: 1, kind: input, shape index: {}]   ;;  %s2996_s0 = inlined_call_operand.vmem [shape: f32[128,128], index: 0, kind: input, shape index: {}]   ;;  %s2997_s2 = inlined_call_operand.vmem [shape: f32[3,1,128], index: 2, kind: input, shape index: {}]   ;;  %s2998_s3 = inlined_call_operand.vmem [shape: f32[1,128], index: 3, kind: input, shape index: {}]   ;;  %s2999_s4 = inlined_call_operand.<no memory space> [shape: f32[1], index: 4, kind: input, shape index: {}]   ;;  %s3000_s5 = inlined_call_operand.vmem [shape: f32[1,128], index: 5, kind: output, shape index: {}]  }
   0x1   :  { %v39_v0 = vld [vmem:[%s2995_s1 + $0x8] sm:$0xff]  ;;  %v41_v1 = vld [vmem:[%s2995_s1 + $0x18] sm:$0xff]  ;;  %v38_v2 = vld [vmem:[%s2995_s1] sm:$0xff]  ;;  %135 = vmatprep.mubr.f32.mxu0 %v2027_v3  ;;  %334 = vmatprep.mubr.f32.mxu1 %v2027_v3  ;;  %vm1398_vm3 = vcmask 195712   ;;  %vm1468_vm4 = vcmask 786112   ;;  %vm1405_vm5 = vcmask 261312  }
   0x2   :  { %v1626_v4 = vpack.c.bf16 %v41_v1, %v39_v0  ;;  %v40_v5 = vld [vmem:[%s2995_s1 + $0x10] sm:$0xff]  ;;  %v43_v6 = vld [vmem:[%s2995_s1 + $0x28] sm:$0xff]  ;;  %v45_v7 = vld [vmem:[%s2995_s1 + $0x38] sm:$0xff]  ;;  %vm1475_vm6 = vcmask 851712   ;;  %vm1412_vm7 = vcmask 326912   ;;  %vm1482_vm8 = vcmask 917312  }
   0x3   :  { %v1628_v8 = vpack.c.bf16 %v40_v5, %v38_v2  ;;  %v1630_v9 = vpack.c.bf16 %v45_v7, %v43_v6  ;;  %v42_v10 = vld [vmem:[%s2995_s1 + $0x20] sm:$0xff]  ;;  %v44_v11 = vld [vmem:[%s2995_s1 + $0x30] sm:$0xff]  ;;  %v47_v12 = vld [vmem:[%s2995_s1 + $0x48] sm:$0xff]  ;;  %vm1419_vm9 = vcmask 392512   ;;  %vm1489_vm10 = vcmask 982912  }
   0x4   :  { %1627 = vmatprep.subr.bf16.mxu0 %v1626_v4  ;;  %1659 = vmatprep.subr.bf16.mxu1 %v1626_v4  ;;  %v49_v13 = vld [vmem:[%s2995_s1 + $0x58] sm:$0xff]  ;;  %v1632_v14 = vpack.c.bf16 %v44_v11, %v42_v10  ;;  %v46_v16 = vld [vmem:[%s2995_s1 + $0x40] sm:$0xff]  ;;  %v48_v17 = vld [vmem:[%s2995_s1 + $0x50] sm:$0xff]  ;;  %vm1426_vm11 = vcmask 458112   ;;  %vm1496_vm12 = vcmask 1048512   ;;  %vm1433_vm13 = vcmask 523712  }
   0x5   :  { %1629 = vmatpush1.bf16.msra.mxu0 %v1628_v8  ;;  %1661 = vmatpush1.bf16.msra.mxu1 %v1628_v8  ;;  %v1634_v15 = vpack.c.bf16 %v49_v13, %v47_v12  ;;  %v51_v18 = vld [vmem:[%s2995_s1 + $0x68] sm:$0xff]  ;;  %v53_v19 = vld [vmem:[%s2995_s1 + $0x78] sm:$0xff]  ;;  %v1636_v20 = vpack.c.bf16 %v48_v17, %v46_v16  ;;  %v50_v22 = vld [vmem:[%s2995_s1 + $0x60] sm:$0xff]  ;;  %vm1499_vm14 = vcmask 523264  }
   0x6   :  { %1631 = vmatprep.subr.bf16.mxu0 %v1630_v9  ;;  %1663 = vmatprep.subr.bf16.mxu1 %v1630_v9  ;;  %v1638_v21 = vpack.c.bf16 %v53_v19, %v51_v18  ;;  %v52_v23 = vld [vmem:[%s2995_s1 + $0x70] sm:$0xff]  ;;  %v55_v24 = vld [vmem:[%s2995_s1 + $0x88] sm:$0xff]  ;;  %v57_v25 = vld [vmem:[%s2995_s1 + $0x98] sm:$0xff] }
   0x7   :  { %v1640_v26 = vpack.c.bf16 %v52_v23, %v50_v22  ;;  %v1642_v27 = vpack.c.bf16 %v57_v25, %v55_v24  ;;  %v54_v28 = vld [vmem:[%s2995_s1 + $0x80] sm:$0xff]  ;;  %v56_v29 = vld [vmem:[%s2995_s1 + $0x90] sm:$0xff]  ;;  %v59_v30 = vld [vmem:[%s2995_s1 + $0xa8] sm:$0xff] }
   0x8   :  { %v61_v31 = vld [vmem:[%s2995_s1 + $0xb8] sm:$0xff]  ;;  %v1644_v32 = vpack.c.bf16 %v56_v29, %v54_v28  ;;  %v58_v34 = vld [vmem:[%s2995_s1 + $0xa0] sm:$0xff]  ;;  %v60_v35 = vld [vmem:[%s2995_s1 + $0xb0] sm:$0xff] }
   0x9   :  { %1633 = vmatpush1.bf16.msra.mxu0 %v1632_v14  ;;  %1665 = vmatpush1.bf16.msra.mxu1 %v1632_v14  ;;  %v1646_v33 = vpack.c.bf16 %v61_v31, %v59_v30  ;;  %v63_v36 = vld [vmem:[%s2995_s1 + $0xc8] sm:$0xff]  ;;  %v65_v37 = vld [vmem:[%s2995_s1 + $0xd8] sm:$0xff]  ;;  %v1648_v38 = vpack.c.bf16 %v60_v35, %v58_v34  ;;  %v62_v40 = vld [vmem:[%s2995_s1 + $0xc0] sm:$0xff] }
   0xa   :  { %1635 = vmatprep.subr.bf16.mxu0 %v1634_v15  ;;  %1667 = vmatprep.subr.bf16.mxu1 %v1634_v15  ;;  %v1650_v39 = vpack.c.bf16 %v65_v37, %v63_v36  ;;  %v64_v41 = vld [vmem:[%s2995_s1 + $0xd0] sm:$0xff]  ;;  %v67_v42 = vld [vmem:[%s2995_s1 + $0xe8] sm:$0xff]  ;;  %v69_v43 = vld [vmem:[%s2995_s1 + $0xf8] sm:$0xff] }
   0xb   :  { %v1652_v44 = vpack.c.bf16 %v64_v41, %v62_v40  ;;  %v1654_v45 = vpack.c.bf16 %v69_v43, %v67_v42  ;;  %v66_v46 = vld [vmem:[%s2995_s1 + $0xe0] sm:$0xff]  ;;  %v68_v47 = vld [vmem:[%s2995_s1 + $0xf0] sm:$0xff]  ;;  %v1526_v48 = vld [vmem:[%s2995_s1 + $0x108] sm:$0xff] }
   0xc   :  { %v1528_v49 = vld [vmem:[%s2995_s1 + $0x118] sm:$0xff]  ;;  %v1656_v50 = vpack.c.bf16 %v68_v47, %v66_v46  ;;  %v2165_v52 = vld [vmem:[%s2996_s0] sm:$0xff]  ;;  %v2179_v54 = vld [vmem:[%s2996_s0 + $0x8] sm:$0xff] }
   0xd   :  { %1637 = vmatpush1.bf16.msra.mxu0 %v1636_v20  ;;  %1669 = vmatpush1.bf16.msra.mxu1 %v1636_v20  ;;  %v1690_v51 = vpack.c.bf16 %v1528_v49, %v1526_v48  ;;  %v2170_v53 = vld [vmem:[%s2996_s0 + $0x40] sm:$0xff]  ;;  %v2184_v55 = vld [vmem:[%s2996_s0 + $0x48] sm:$0xff]  ;;  %v2193_v56 = vld [vmem:[%s2996_s0 + $0x10] sm:$0xff] }
   0xe   :  { %1639 = vmatprep.subr.bf16.mxu0 %v1638_v21  ;;  %1671 = vmatprep.subr.bf16.mxu1 %v1638_v21  ;;  %v2198_v57 = vld [vmem:[%s2996_s0 + $0x50] sm:$0xff]  ;;  %v2207_v58 = vld [vmem:[%s2996_s0 + $0x18] sm:$0xff]  ;;  %v2221_v60 = vld [vmem:[%s2996_s0 + $0x20] sm:$0xff] }
   0xf   :  { %v2212_v59 = vld [vmem:[%s2996_s0 + $0x58] sm:$0xff]  ;;  %v2226_v61 = vld [vmem:[%s2996_s0 + $0x60] sm:$0xff]  ;;  %v2235_v62 = vld [vmem:[%s2996_s0 + $0x28] sm:$0xff] }
  0x10   :  { %v2240_v63 = vld [vmem:[%s2996_s0 + $0x68] sm:$0xff]  ;;  %v2249_v0 = vld [vmem:[%s2996_s0 + $0x30] sm:$0xff]  ;;  %v2263_v2 = vld [vmem:[%s2996_s0 + $0x38] sm:$0xff] }
  0x11   :  { %1641 = vmatpush1.bf16.msra.mxu0 %v1640_v26  ;;  %1673 = vmatpush1.bf16.msra.mxu1 %v1640_v26  ;;  %v2254_v1 = vld [vmem:[%s2996_s0 + $0x70] sm:$0xff]  ;;  %v2268_v4 = vld [vmem:[%s2996_s0 + $0x78] sm:$0xff]  ;;  %v1525_v5 = vld [vmem:[%s2995_s1 + $0x100] sm:$0xff] }
  0x12   :  { %1643 = vmatprep.subr.bf16.mxu0 %v1642_v27  ;;  %1675 = vmatprep.subr.bf16.mxu1 %v1642_v27  ;;  %v1527_v6 = vld [vmem:[%s2995_s1 + $0x110] sm:$0xff]  ;;  %v1530_v8 = vld [vmem:[%s2995_s1 + $0x128] sm:$0xff]  ;;  %v1532_v9 = vld [vmem:[%s2995_s1 + $0x138] sm:$0xff] }
  0x13   :  { %v1692_v7 = vpack.c.bf16 %v1527_v6, %v1525_v5  ;;  %v1694_v10 = vpack.c.bf16 %v1532_v9, %v1530_v8  ;;  %v1529_v11 = vld [vmem:[%s2995_s1 + $0x120] sm:$0xff]  ;;  %v1531_v12 = vld [vmem:[%s2995_s1 + $0x130] sm:$0xff]  ;;  %v1534_v14 = vld [vmem:[%s2995_s1 + $0x148] sm:$0xff] }
  0x14   :  { %v1696_v13 = vpack.c.bf16 %v1531_v12, %v1529_v11  ;;  %v1536_v15 = vld [vmem:[%s2995_s1 + $0x158] sm:$0xff]  ;;  %v1533_v17 = vld [vmem:[%s2995_s1 + $0x140] sm:$0xff]  ;;  %v1535_v18 = vld [vmem:[%s2995_s1 + $0x150] sm:$0xff] }
  0x15   :  { %1645 = vmatpush1.bf16.msra.mxu0 %v1644_v32  ;;  %1677 = vmatpush1.bf16.msra.mxu1 %v1644_v32  ;;  %v1698_v16 = vpack.c.bf16 %v1536_v15, %v1534_v14  ;;  %v1700_v19 = vpack.c.bf16 %v1535_v18, %v1533_v17  ;;  %v1538_v20 = vld [vmem:[%s2995_s1 + $0x168] sm:$0xff]  ;;  %v1540_v21 = vld [vmem:[%s2995_s1 + $0x178] sm:$0xff]  ;;  %v1537_v23 = vld [vmem:[%s2995_s1 + $0x160] sm:$0xff] }
  0x16   :  { %1647 = vmatprep.subr.bf16.mxu0 %v1646_v33  ;;  %1679 = vmatprep.subr.bf16.mxu1 %v1646_v33  ;;  %v1702_v22 = vpack.c.bf16 %v1540_v21, %v1538_v20  ;;  %v1539_v24 = vld [vmem:[%s2995_s1 + $0x170] sm:$0xff]  ;;  %v1542_v26 = vld [vmem:[%s2995_s1 + $0x188] sm:$0xff]  ;;  %v1544_v27 = vld [vmem:[%s2995_s1 + $0x198] sm:$0xff] }
  0x17   :  { %v1704_v25 = vpack.c.bf16 %v1539_v24, %v1537_v23  ;;  %v1706_v28 = vpack.c.bf16 %v1544_v27, %v1542_v26  ;;  %v1541_v29 = vld [vmem:[%s2995_s1 + $0x180] sm:$0xff]  ;;  %v1543_v30 = vld [vmem:[%s2995_s1 + $0x190] sm:$0xff]  ;;  %v1546_v32 = vld [vmem:[%s2995_s1 + $0x1a8] sm:$0xff] }
  0x18   :  { %v1708_v31 = vpack.c.bf16 %v1543_v30, %v1541_v29  ;;  %v1548_v33 = vld [vmem:[%s2995_s1 + $0x1b8] sm:$0xff]  ;;  %v1545_v35 = vld [vmem:[%s2995_s1 + $0x1a0] sm:$0xff]  ;;  %v1547_v36 = vld [vmem:[%s2995_s1 + $0x1b0] sm:$0xff] }
  0x19   :  { %1649 = vmatpush1.bf16.msra.mxu0 %v1648_v38  ;;  %1681 = vmatpush1.bf16.msra.mxu1 %v1648_v38  ;;  %v1710_v34 = vpack.c.bf16 %v1548_v33, %v1546_v32  ;;  %v1712_v37 = vpack.c.bf16 %v1547_v36, %v1545_v35  ;;  %v1550_v38 = vld [vmem:[%s2995_s1 + $0x1c8] sm:$0xff]  ;;  %v1549_v41 = vld [vmem:[%s2995_s1 + $0x1c0] sm:$0xff]  ;;  %v1551_v42 = vld [vmem:[%s2995_s1 + $0x1d0] sm:$0xff] }
  0x1a   :  { %1651 = vmatprep.subr.bf16.mxu0 %v1650_v39  ;;  %1683 = vmatprep.subr.bf16.mxu1 %v1650_v39  ;;  %v1552_v39 = vld [vmem:[%s2995_s1 + $0x1d8] sm:$0xff]  ;;  %v1716_v43 = vpack.c.bf16 %v1551_v42, %v1549_v41  ;;  %v1553_v47 = vld [vmem:[%s2995_s1 + $0x1e0] sm:$0xff]  ;;  %v1555_v48 = vld [vmem:[%s2995_s1 + $0x1f0] sm:$0xff] }
  0x1b   :  { %v1714_v40 = vpack.c.bf16 %v1552_v39, %v1550_v38  ;;  %v1720_v49 = vpack.c.bf16 %v1555_v48, %v1553_v47  ;;  %v2389_v39 = vld [vmem:[%s2997_s2] ss:$0 sm:$0xff] }
  0x1d   :  { %1653 = vmatpush1.bf16.msra.mxu0 %v1652_v44  ;;  %1685 = vmatpush1.bf16.msra.mxu1 %v1652_v44  ;;  %v1554_v44 = vld [vmem:[%s2995_s1 + $0x1e8] sm:$0xff] }
  0x1e   :  { %1655 = vmatprep.subr.bf16.mxu0 %v1654_v45  ;;  %1687 = vmatprep.subr.bf16.mxu1 %v1654_v45  ;;  %v1556_v45 = vld [vmem:[%s2995_s1 + $0x1f8] sm:$0xff] }
  0x1f   :  { %v1718_v46 = vpack.c.bf16 %v1556_v45, %v1554_v44 }
  0x21   :  { %1657 = vmatpush1.bf16.msra.mxu0 %v1656_v50  ;;  %1689 = vmatpush1.bf16.msra.mxu1 %v1656_v50  ;;  %v1576_v50 = vld [vmem:[%s2995_s1 + $0x208] sm:$0xff] }
  0x22   :  { %1691 = vmatprep.subr.bf16.mxu0 %v1690_v51  ;;  %1723 = vmatprep.subr.bf16.mxu1 %v1690_v51  ;;  %v1578_v51 = vld [vmem:[%s2995_s1 + $0x218] sm:$0xff] }
  0x23   :  { %v1754_v5 = vpack.c.bf16 %v1578_v51, %v1576_v50 }
  0x24   :  { %136 = vmatmul.mubr.f32.vlgmr.msra.gmra.mrb[0].mxu0 %v2165_v52  ;;  %335 = vmatmul.mubr.f32.vlgmr.msra.gmra.mrb[0].mxu1 %v2170_v53 }
  0x25   :  { %141 = vmatprep.mubr.f32.mxu0 %v2027_v3  ;;  %340 = vmatprep.mubr.f32.mxu1 %v2027_v3 }
  0x26   :  { %1693 = vmatpush1.bf16.msra.mxu0 %v1692_v7  ;;  %1725 = vmatpush1.bf16.msra.mxu1 %v1692_v7 }
  0x27   :  { %1695 = vmatprep.subr.bf16.mxu0 %v1694_v10  ;;  %1727 = vmatprep.subr.bf16.mxu1 %v1694_v10 }
  0x28   :  { %142 = vmatmul.mubr.f32.gmra.mrb[2].mxu0 %v2179_v54  ;;  %341 = vmatmul.mubr.f32.gmra.mrb[2].mxu1 %v2184_v55 }
  0x29   :  { %147 = vmatprep.mubr.f32.mxu0 %v2027_v3  ;;  %346 = vmatprep.mubr.f32.mxu1 %v2027_v3 }
  0x2a   :  { %1697 = vmatpush1.bf16.msra.mxu0 %v1696_v13  ;;  %1729 = vmatpush1.bf16.msra.mxu1 %v1696_v13 }
  0x2b   :  { %1699 = vmatprep.subr.bf16.mxu0 %v1698_v16  ;;  %1731 = vmatprep.subr.bf16.mxu1 %v1698_v16 }
  0x2c   :  { %148 = vmatmul.mubr.f32.gmra.mrb[4].mxu0 %v2193_v56  ;;  %347 = vmatmul.mubr.f32.gmra.mrb[4].mxu1 %v2198_v57 }
  0x2d   :  { %153 = vmatprep.mubr.f32.mxu0 %v2027_v3  ;;  %352 = vmatprep.mubr.f32.mxu1 %v2027_v3 }
  0x2e   :  { %1701 = vmatpush1.bf16.msra.mxu0 %v1700_v19  ;;  %1733 = vmatpush1.bf16.msra.mxu1 %v1700_v19 }
  0x2f   :  { %1703 = vmatprep.subr.bf16.mxu0 %v1702_v22  ;;  %1735 = vmatprep.subr.bf16.mxu1 %v1702_v22 }
  0x30   :  { %154 = vmatmul.mubr.f32.gmra.mrb[6].mxu0 %v2207_v58  ;;  %353 = vmatmul.mubr.f32.gmra.mrb[6].mxu1 %v2212_v59 }
  0x31   :  { %159 = vmatprep.mubr.f32.mxu0 %v2027_v3  ;;  %358 = vmatprep.mubr.f32.mxu1 %v2027_v3 }
  0x32   :  { %1705 = vmatpush1.bf16.msra.mxu0 %v1704_v25  ;;  %1737 = vmatpush1.bf16.msra.mxu1 %v1704_v25 }
  0x33   :  { %1707 = vmatprep.subr.bf16.mxu0 %v1706_v28  ;;  %1739 = vmatprep.subr.bf16.mxu1 %v1706_v28 }
  0x34   :  { %160 = vmatmul.mubr.f32.gmra.mrb[8].mxu0 %v2221_v60  ;;  %359 = vmatmul.mubr.f32.gmra.mrb[8].mxu1 %v2226_v61 }
  0x35   :  { %165 = vmatprep.mubr.f32.mxu0 %v2027_v3  ;;  %364 = vmatprep.mubr.f32.mxu1 %v2027_v3 }
  0x36   :  { %1709 = vmatpush1.bf16.msra.mxu0 %v1708_v31  ;;  %1741 = vmatpush1.bf16.msra.mxu1 %v1708_v31 }
  0x37   :  { %1711 = vmatprep.subr.bf16.mxu0 %v1710_v34  ;;  %1743 = vmatprep.subr.bf16.mxu1 %v1710_v34 }
  0x38   :  { %166 = vmatmul.mubr.f32.gmra.mrb[10].mxu0 %v2235_v62  ;;  %365 = vmatmul.mubr.f32.gmra.mrb[10].mxu1 %v2240_v63 }
  0x39   :  { %171 = vmatprep.mubr.f32.mxu0 %v2027_v3  ;;  %370 = vmatprep.mubr.f32.mxu1 %v2027_v3 }
  0x3a   :  { %1713 = vmatpush1.bf16.msra.mxu0 %v1712_v37  ;;  %1745 = vmatpush1.bf16.msra.mxu1 %v1712_v37 }
  0x3b   :  { %1715 = vmatprep.subr.bf16.mxu0 %v1714_v40  ;;  %1747 = vmatprep.subr.bf16.mxu1 %v1714_v40 }
  0x3c   :  { %172 = vmatmul.mubr.f32.gmra.mrb[12].mxu0 %v2249_v0  ;;  %371 = vmatmul.mubr.f32.gmra.mrb[12].mxu1 %v2254_v1 }
  0x3d   :  { %177 = vmatprep.mubr.f32.mxu0 %v2027_v3  ;;  %376 = vmatprep.mubr.f32.mxu1 %v2027_v3 }
  0x3e   :  { %1717 = vmatpush1.bf16.msra.mxu0 %v1716_v43  ;;  %1749 = vmatpush1.bf16.msra.mxu1 %v1716_v43 }
  0x3f   :  { %1719 = vmatprep.subr.bf16.mxu0 %v1718_v46  ;;  %1751 = vmatprep.subr.bf16.mxu1 %v1718_v46 }
  0x40   :  { %178 = vmatmul.mubr.f32.gmra.mrb[14].mxu0 %v2263_v2  ;;  %377 = vmatmul.mubr.f32.gmra.mrb[14].mxu1 %v2268_v4 }
  0x41   :  { %562 = vmatprep.mubr.f32.mxu0 %v2027_v3  ;;  %761 = vmatprep.mubr.f32.mxu1 %v2027_v3 }
  0x42   :  { %1721 = vmatpush1.bf16.msra.mxu0 %v1720_v49  ;;  %1753 = vmatpush1.bf16.msra.mxu1 %v1720_v49 }
  0x43   :  { %1755 = vmatprep.subr.bf16.mxu0 %v1754_v5  ;;  %1787 = vmatprep.subr.bf16.mxu1 %v1754_v5 }
  0xf7   :  { %v137_v6 = vpop.f32.mrb[0].mxu0  ;;  %v336_v7 = vpop.f32.mrb[0].mxu1 }
  0xf8   :  { %v139_v8 = vpop.f32.mrb[1].mxu0  ;;  %v338_v9 = vpop.f32.mrb[1].mxu1  ;;  %v190_v47 = vadd.f32 %v2389_v39, %v137_v6 }
  0xf9   :  { %v1509_v10 = vmul.f32 -1.442695, %v139_v8  ;;  %v1517_v11 = vmul.f32 -1.442695, %v338_v9  ;;  %v383_v8 = vadd.f32 %v2389_v39, %v336_v7 }
  0xfa   :  { %v246_v6 = vmul.f32 %v190_v47, %v2165_v52 }
  0xfb   :  { %1819 = vpow2.f32 %v1509_v10  ;;  %v2370_v12 = vpop.f32.mrb[2].mxu0  ;;  %v2372_v13 = vpop.f32.mrb[2].mxu1 }
  0xfc   :  { %1821 = vpow2.f32 %v1517_v11  ;;  %v145_v14 = vpop.f32.mrb[3].mxu0  ;;  %v344_v15 = vpop.f32.mrb[3].mxu1  ;;  %v384_v7 = vadd.f32 %v2389_v39, %v2372_v13 }
  0xfd   :  { %v1510_v16 = vmul.f32 -1.442695, %v145_v14  ;;  %v1518_v17 = vmul.f32 -1.442695, %v344_v15 }
  0xff   :  { %1823 = vpow2.f32 %v1510_v16  ;;  %v2374_v18 = vpop.f32.mrb[4].mxu0  ;;  %v2376_v19 = vpop.f32.mrb[4].mxu1  ;;  %v191_v16 = vadd.f32 %v2389_v39, %v2370_v12 }
 0x100   :  { %1825 = vpow2.f32 %v1518_v17  ;;  %v151_v20 = vpop.f32.mrb[5].mxu0  ;;  %v350_v21 = vpop.f32.mrb[5].mxu1  ;;  %v192_v13 = vadd.f32 %v2389_v39, %v2374_v18  ;;  %v385_v47 = vadd.f32 %v2389_v39, %v2376_v19 }
 0x101   :  { %v1511_v22 = vmul.f32 -1.442695, %v151_v20  ;;  %v1519_v23 = vmul.f32 -1.442695, %v350_v21 }
 0x103   :  { %1827 = vpow2.f32 %v1511_v22  ;;  %v2378_v24 = vpop.f32.mrb[6].mxu0  ;;  %v2380_v25 = vpop.f32.mrb[6].mxu1 }
 0x104   :  { %1829 = vpow2.f32 %v1519_v23  ;;  %v157_v26 = vpop.f32.mrb[7].mxu0  ;;  %v356_v27 = vpop.f32.mrb[7].mxu1  ;;  %v193_v19 = vadd.f32 %v2389_v39, %v2378_v24 }
 0x105   :  { %v1820_v28 = vpop.eup %1819  ;;  %v1512_v29 = vmul.f32 -1.442695, %v157_v26  ;;  %v1520_v32 = vmul.f32 -1.442695, %v356_v27  ;;  %v439_v27 = vmul.f32 %v383_v8, %v2170_v53 }
 0x106   :  { %v1822_v30 = vpop.eup %1821  ;;  %v222_v31 = vadd.f32 1.0, %v1820_v28 }
 0x107   :  { %v415_v33 = vadd.f32 1.0, %v1822_v30  ;;  %1831 = vpow2.f32 %v1512_v29  ;;  %v2382_v34 = vpop.f32.mrb[8].mxu0  ;;  %v2384_v35 = vpop.f32.mrb[8].mxu1 }
 0x108   :  { %1833 = vrcp.f32 %v222_v31  ;;  %v163_v36 = vpop.f32.mrb[9].mxu0  ;;  %v362_v37 = vpop.f32.mrb[9].mxu1 }
 0x109   :  { %v1824_v38 = vpop.eup %1823  ;;  %1835 = vrcp.f32 %v415_v33  ;;  %v1513_v40 = vmul.f32 -1.442695, %v163_v36  ;;  %v1521_v43 = vmul.f32 -1.442695, %v362_v37  ;;  %v247_v33 = vmul.f32 %v191_v16, %v2179_v54 }
 0x10a   :  { %v1826_v41 = vpop.eup %1825  ;;  %v223_v42 = vadd.f32 1.0, %v1824_v38  ;;  %1837 = vpow2.f32 %v1520_v32 }
 0x10b   :  { %v416_v44 = vadd.f32 1.0, %v1826_v41  ;;  %1839 = vpow2.f32 %v1513_v40  ;;  %v2391_v45 = vpop.f32.mrb[10].mxu0  ;;  %v2393_v46 = vpop.f32.mrb[10].mxu1  ;;  %v440_v41 = vmul.f32 %v384_v7, %v2184_v55 }
 0x10c   :  { %1841 = vrcp.f32 %v223_v42  ;;  %v169_v48 = vpop.f32.mrb[11].mxu0  ;;  %v368_v49 = vpop.f32.mrb[11].mxu1 }
 0x10d   :  { %v1828_v50 = vpop.eup %1827  ;;  %1843 = vrcp.f32 %v416_v44  ;;  %v1514_v51 = vmul.f32 -1.442695, %v169_v48  ;;  %v1522_v10 = vmul.f32 -1.442695, %v368_v49 }
 0x10e   :  { %v1830_v5 = vpop.eup %1829  ;;  %v224_v9 = vadd.f32 1.0, %v1828_v50  ;;  %1845 = vpow2.f32 %v1521_v43 }
 0x10f   :  { %v417_v11 = vadd.f32 1.0, %v1830_v5  ;;  %1847 = vpow2.f32 %v1514_v51  ;;  %v2397_v14 = vpop.f32.mrb[12].mxu0  ;;  %v2399_v15 = vpop.f32.mrb[12].mxu1 }
 0x110   :  { %1849 = vrcp.f32 %v224_v9  ;;  %v175_v17 = vpop.f32.mrb[13].mxu0  ;;  %v374_v20 = vpop.f32.mrb[13].mxu1  ;;  %v248_v9 = vmul.f32 %v192_v13, %v2193_v56 }
 0x111   :  { %v1832_v21 = vpop.eup %1831  ;;  %1851 = vrcp.f32 %v417_v11  ;;  %v1515_v22 = vmul.f32 -1.442695, %v175_v17  ;;  %v1523_v23 = vmul.f32 -1.442695, %v374_v20  ;;  %v441_v20 = vmul.f32 %v385_v47, %v2198_v57 }
 0x112   :  { %v1834_v26 = vpop.eup %1833  ;;  %v225_v28 = vadd.f32 1.0, %v1832_v21  ;;  %1853 = vpow2.f32 %v1522_v10 }
 0x113   :  { %v1836_v29 = vpop.eup %1835  ;;  %1855 = vpow2.f32 %v1515_v22  ;;  %v2407_v30 = vpop.f32.mrb[14].mxu0  ;;  %v254_v31 = vmul.f32 %v1834_v26, %v246_v6  ;;  %v386_v26 = vadd.f32 %v2389_v39, %v2380_v25 }
 0x114   :  { %v2409_v12 = vpop.f32.mrb[14].mxu1  ;;  %v1838_v32 = vpop.eup %1837  ;;  %1857 = vrcp.f32 %v225_v28  ;;  %v447_v38 = vmul.f32 %v1836_v29, %v439_v27  ;;  %v249_v29 = vmul.f32 %v193_v19, %v2207_v58 }
 0x115   :  { %v181_v36 = vpop.f32.mrb[15].mxu0  ;;  %v380_v37 = vpop.f32.mrb[15].mxu1  ;;  %v418_v42 = vadd.f32 1.0, %v1838_v32  ;;  %1859 = vpow2.f32 %v1523_v23  ;;  %v2418_v50 = vadd.f32 %v254_v31, %v2165_v52  ;;  %v194_v31 = vadd.f32 %v2389_v39, %v2382_v34 }
 0x116   :  { %v1840_v40 = vpop.eup %1839  ;;  %v1516_v43 = vmul.f32 -1.442695, %v181_v36  ;;  %v1524_v49 = vmul.f32 -1.442695, %v380_v37  ;;  %v2421_v51 = vadd.f32 %v447_v38, %v2170_v53  ;;  %v442_v34 = vmul.f32 %v386_v26, %v2212_v59 }
 0x117   :  { %v1842_v44 = vpop.eup %1841  ;;  %v226_v48 = vadd.f32 1.0, %v1840_v40  ;;  %1861 = vrcp.f32 %v418_v42  ;;  %563 = vmatmul.mubr.f32.vlgmr.msra.gmra.mrb[16].mxu0 %v2418_v50  ;;  %v387_v38 = vadd.f32 %v2389_v39, %v2384_v35  ;;  %v195_v42 = vadd.f32 %v2389_v39, %v2391_v45 }
 0x118   :  { %v1844_v18 = vpop.eup %1843  ;;  %v255_v5 = vmul.f32 %v1842_v44, %v247_v33  ;;  %762 = vmatmul.mubr.f32.vlgmr.msra.gmra.mrb[16].mxu1 %v2421_v51  ;;  %568 = vmatprep.mubr.f32.mxu0 %v2027_v3  ;;  %v388_v45 = vadd.f32 %v2389_v39, %v2393_v46 }
 0x119   :  { %v1846_v8 = vpop.eup %1845  ;;  %1863 = vrcp.f32 %v226_v48  ;;  %v448_v10 = vmul.f32 %v1844_v18, %v440_v41  ;;  %767 = vmatprep.mubr.f32.mxu1 %v2027_v3  ;;  %v250_v41 = vmul.f32 %v194_v31, %v2221_v60 }
 0x11a   :  { %v1848_v11 = vpop.eup %1847  ;;  %v419_v6 = vadd.f32 1.0, %v1846_v8  ;;  %1865 = vpow2.f32 %v1516_v43  ;;  %v2430_v16 = vadd.f32 %v255_v5, %v2179_v54  ;;  %v251_v8 = vmul.f32 %v195_v42, %v2235_v62  ;;  %v1586_v42 = vld [vmem:[%s2995_s1 + $0x258] sm:$0xff] }
 0x11b   :  { %v1850_v17 = vpop.eup %1849  ;;  %v227_v21 = vadd.f32 1.0, %v1848_v11  ;;  %1867 = vpow2.f32 %v1524_v49  ;;  %v2435_v7 = vadd.f32 %v448_v10, %v2184_v55  ;;  %v443_v49 = vmul.f32 %v387_v38, %v2226_v61  ;;  %v1579_v38 = vld [vmem:[%s2995_s1 + $0x220] sm:$0xff] }
 0x11c   :  { %v1852_v24 = vpop.eup %1851  ;;  %1869 = vrcp.f32 %v419_v6  ;;  %v256_v22 = vmul.f32 %v1850_v17, %v248_v9  ;;  %569 = vmatmul.mubr.f32.gmra.mrb[18].mxu0 %v2430_v16  ;;  %v196_v9 = vadd.f32 %v2389_v39, %v2397_v14  ;;  %v444_v14 = vmul.f32 %v388_v45, %v2240_v63 }
 0x11d   :  { %v1854_v23 = vpop.eup %1853  ;;  %1871 = vrcp.f32 %v227_v21  ;;  %v449_v27 = vmul.f32 %v1852_v24, %v441_v20  ;;  %768 = vmatmul.mubr.f32.gmra.mrb[18].mxu1 %v2435_v7  ;;  %574 = vmatprep.mubr.f32.mxu0 %v2027_v3 }
 0x11e   :  { %v1856_v28 = vpop.eup %1855  ;;  %v420_v32 = vadd.f32 1.0, %v1854_v23  ;;  %v2446_v55 = vadd.f32 %v256_v22, %v2193_v56  ;;  %773 = vmatprep.mubr.f32.mxu1 %v2027_v3  ;;  %v252_v20 = vmul.f32 %v196_v9, %v2249_v0  ;;  %v197_v23 = vadd.f32 %v2389_v39, %v2407_v30  ;;  %v1592_v9 = vld [vmem:[%s2995_s1 + $0x288] sm:$0xff] }
 0x11f   :  { %v1858_v33 = vpop.eup %1857  ;;  %v228_v25 = vadd.f32 1.0, %v1856_v28  ;;  %v2450_v13 = vadd.f32 %v449_v27, %v2198_v57  ;;  %v390_v27 = vadd.f32 %v2389_v39, %v2409_v12 }
 0x120   :  { %v1860_v36 = vpop.eup %1859  ;;  %1873 = vrcp.f32 %v420_v32  ;;  %v257_v37 = vmul.f32 %v1858_v33, %v249_v29  ;;  %575 = vmatmul.mubr.f32.gmra.mrb[20].mxu0 %v2446_v55  ;;  %v253_v30 = vmul.f32 %v197_v23, %v2263_v2  ;;  %v1600_v23 = vld [vmem:[%s2995_s1 + $0x2c8] sm:$0xff] }
 0x121   :  { %1875 = vrcp.f32 %v228_v25  ;;  %v421_v40 = vadd.f32 1.0, %v1860_v36  ;;  %v1862_v56 = vpop.eup %1861  ;;  %774 = vmatmul.mubr.f32.gmra.mrb[20].mxu1 %v2450_v13  ;;  %580 = vmatprep.mubr.f32.mxu0 %v2027_v3  ;;  %v446_v12 = vmul.f32 %v390_v27, %v2268_v4  ;;  %v1575_v25 = vld [vmem:[%s2995_s1 + $0x200] sm:$0xff] }
 0x122   :  { %v2462_v57 = vadd.f32 %v257_v37, %v2207_v58  ;;  %779 = vmatprep.mubr.f32.mxu1 %v2027_v3  ;;  %v450_v35 = vmul.f32 %v1862_v56, %v442_v34  ;;  %v1582_v37 = vld [vmem:[%s2995_s1 + $0x238] sm:$0xff]  ;;  %v1599_v27 = vld [vmem:[%s2995_s1 + $0x2c0] sm:$0xff] }
 0x123   :  { %v1864_v43 = vpop.eup %1863  ;;  %1877 = vrcp.f32 %v421_v40  ;;  %v1581_v40 = vld [vmem:[%s2995_s1 + $0x230] sm:$0xff] }
 0x124   :  { %v1866_v44 = vpop.eup %1865  ;;  %v258_v47 = vmul.f32 %v1864_v43, %v250_v41  ;;  %581 = vmatmul.mubr.f32.gmra.mrb[22].mxu0 %v2462_v57  ;;  %v2470_v5 = vadd.f32 %v450_v35, %v2212_v59  ;;  %v389_v59 = vadd.f32 %v2389_v39, %v2399_v15  ;;  %v1760_v56 = vpack.c.bf16 %v1581_v40, %v1579_v38  ;;  %v1584_v41 = vld [vmem:[%s2995_s1 + $0x248] sm:$0xff]  ;;  %v1583_v35 = vld [vmem:[%s2995_s1 + $0x240] sm:$0xff] }
 0x125   :  { %v1868_v48 = vpop.eup %1867  ;;  %v229_v18 = vadd.f32 1.0, %v1866_v44  ;;  %586 = vmatprep.mubr.f32.mxu0 %v2027_v3  ;;  %v1762_v43 = vpack.c.bf16 %v1586_v42, %v1584_v41  ;;  %v1585_v44 = vld [vmem:[%s2995_s1 + $0x250] sm:$0xff] }
 0x126   :  { %v1870_v58 = vpop.eup %1869  ;;  %v422_v10 = vadd.f32 1.0, %v1868_v48  ;;  %v2477_v11 = vadd.f32 %v258_v47, %v2221_v60  ;;  %780 = vmatmul.mubr.f32.gmra.mrb[22].mxu1 %v2470_v5  ;;  %v445_v22 = vmul.f32 %v389_v59, %v2254_v1  ;;  %v1764_v47 = vpack.c.bf16 %v1585_v44, %v1583_v35  ;;  %v1588_v48 = vld [vmem:[%s2995_s1 + $0x268] sm:$0xff]  ;;  %v1593_v59 = vld [vmem:[%s2995_s1 + $0x290] sm:$0xff] }
 0x127   :  { %v1872_v19 = vpop.eup %1871  ;;  %1879 = vrcp.f32 %v229_v18  ;;  %v451_v46 = vmul.f32 %v1870_v58, %v443_v49  ;;  %785 = vmatprep.mubr.f32.mxu1 %v2027_v3  ;;  %v1590_v49 = vld [vmem:[%s2995_s1 + $0x278] sm:$0xff]  ;;  %v1587_v18 = vld [vmem:[%s2995_s1 + $0x260] sm:$0xff]  ;;  %v1589_v58 = vld [vmem:[%s2995_s1 + $0x270] sm:$0xff] }
 0x128   :  { %1881 = vrcp.f32 %v422_v10  ;;  %v259_v6 = vmul.f32 %v1872_v19, %v251_v8  ;;  %587 = vmatmul.mubr.f32.gmra.mrb[24].mxu0 %v2477_v11  ;;  %v1766_v45 = vpack.c.bf16 %v1590_v49, %v1588_v48  ;;  %v1768_v8 = vpack.c.bf16 %v1589_v58, %v1587_v18  ;;  %v1594_v10 = vld [vmem:[%s2995_s1 + $0x298] sm:$0xff] }
 0x129   :  { %v2486_v17 = vadd.f32 %v451_v46, %v2226_v61  ;;  %592 = vmatprep.mubr.f32.mxu0 %v2027_v3  ;;  %v1770_v19 = vpack.c.bf16 %v1594_v10, %v1592_v9  ;;  %v1591_v46 = vld [vmem:[%s2995_s1 + $0x280] sm:$0xff] }
 0x12a   :  { %v1874_v60 = vpop.eup %1873  ;;  %v2491_v21 = vadd.f32 %v259_v6, %v2235_v62  ;;  %v1772_v6 = vpack.c.bf16 %v1593_v59, %v1591_v46 }
 0x12b   :  { %v1876_v15 = vpop.eup %1875  ;;  %786 = vmatmul.mubr.f32.gmra.mrb[24].mxu1 %v2486_v17  ;;  %v452_v24 = vmul.f32 %v1874_v60, %v444_v14  ;;  %v1596_v14 = vld [vmem:[%s2995_s1 + $0x2a8] sm:$0xff]  ;;  %v1598_v60 = vld [vmem:[%s2995_s1 + $0x2b8] sm:$0xff] }
 0x12c   :  { %791 = vmatprep.mubr.f32.mxu1 %v2027_v3  ;;  %v260_v61 = vmul.f32 %v1876_v15, %v252_v20  ;;  %593 = vmatmul.mubr.f32.gmra.mrb[26].mxu0 %v2491_v21  ;;  %v1774_v20 = vpack.c.bf16 %v1598_v60, %v1596_v14  ;;  %v1595_v15 = vld [vmem:[%s2995_s1 + $0x2a0] sm:$0xff] }
 0x12d   :  { %v1878_v26 = vpop.eup %1877  ;;  %v2502_v62 = vadd.f32 %v452_v24, %v2240_v63  ;;  %598 = vmatprep.mubr.f32.mxu0 %v2027_v3  ;;  %v1597_v24 = vld [vmem:[%s2995_s1 + $0x2b0] sm:$0xff] }
 0x12e   :  { %v2506_v28 = vadd.f32 %v260_v61, %v2249_v0  ;;  %v453_v29 = vmul.f32 %v1878_v26, %v445_v22  ;;  %v1776_v22 = vpack.c.bf16 %v1597_v24, %v1595_v15  ;;  %v1602_v61 = vld [vmem:[%s2995_s1 + $0x2d8] sm:$0xff] }
 0x12f   :  { %792 = vmatmul.mubr.f32.gmra.mrb[26].mxu1 %v2502_v62  ;;  %v1778_v26 = vpack.c.bf16 %v1602_v61, %v1600_v23 }
 0x130   :  { %797 = vmatprep.mubr.f32.mxu1 %v2027_v3  ;;  %v2512_v31 = vadd.f32 %v453_v29, %v2254_v1  ;;  %599 = vmatmul.mubr.f32.gmra.mrb[28].mxu0 %v2506_v28  ;;  %v1601_v29 = vld [vmem:[%s2995_s1 + $0x2d0] sm:$0xff] }
 0x131   :  { %v1880_v39 = vpop.eup %1879  ;;  %604 = vmatprep.mubr.f32.mxu0 %v2027_v3 }
 0x132   :  { %v1882_v63 = vpop.eup %1881  ;;  %v261_v0 = vmul.f32 %v1880_v39, %v253_v30  ;;  %v1780_v30 = vpack.c.bf16 %v1601_v29, %v1599_v27  ;;  %v1604_v39 = vld [vmem:[%s2995_s1 + $0x2e8] sm:$0xff] }
 0x133   :  { %798 = vmatmul.mubr.f32.gmra.mrb[28].mxu1 %v2512_v31  ;;  %v454_v32 = vmul.f32 %v1882_v63, %v446_v12  ;;  %v1606_v12 = vld [vmem:[%s2995_s1 + $0x2f8] sm:$0xff] }
 0x134   :  { %803 = vmatprep.mubr.f32.mxu1 %v2027_v3  ;;  %v2520_v33 = vadd.f32 %v261_v0, %v2263_v2  ;;  %v1577_v2 = vld [vmem:[%s2995_s1 + $0x210] sm:$0xff]  ;;  %v1782_v63 = vpack.c.bf16 %v1606_v12, %v1604_v39  ;;  %v1603_v0 = vld [vmem:[%s2995_s1 + $0x2e0] sm:$0xff] }
 0x135   :  { %v2523_v1 = vadd.f32 %v454_v32, %v2268_v4  ;;  %v1756_v36 = vpack.c.bf16 %v1577_v2, %v1575_v25  ;;  %v1580_v4 = vld [vmem:[%s2995_s1 + $0x228] sm:$0xff]  ;;  %v1605_v32 = vld [vmem:[%s2995_s1 + $0x2f0] sm:$0xff] }
 0x136   :  { %605 = vmatmul.mubr.f32.gmra.mrb[30].mxu0 %v2520_v33  ;;  %v1758_v34 = vpack.c.bf16 %v1582_v37, %v1580_v4  ;;  %v1784_v25 = vpack.c.bf16 %v1605_v32, %v1603_v0 }
 0x137   :  { %804 = vmatmul.mubr.f32.gmra.mrb[30].mxu1 %v2523_v1  ;;  %989 = vmatprep.mubr.f32.mxu0 %v2027_v3 }
 0x138   :  { %1188 = vmatprep.mubr.f32.mxu1 %v2027_v3  ;;  %1757 = vmatpush1.bf16.msra.mxu0 %v1756_v36 }
 0x139   :  { %1789 = vmatpush1.bf16.msra.mxu1 %v1756_v36  ;;  %1759 = vmatprep.subr.bf16.mxu0 %v1758_v34 }
 0x13a   :  { %1791 = vmatprep.subr.bf16.mxu1 %v1758_v34 }
 0x13c   :  { %1761 = vmatpush1.bf16.msra.mxu0 %v1760_v56 }
 0x13d   :  { %1793 = vmatpush1.bf16.msra.mxu1 %v1760_v56  ;;  %1763 = vmatprep.subr.bf16.mxu0 %v1762_v43 }
 0x13e   :  { %1795 = vmatprep.subr.bf16.mxu1 %v1762_v43 }
 0x140   :  { %1765 = vmatpush1.bf16.msra.mxu0 %v1764_v47 }
 0x141   :  { %1797 = vmatpush1.bf16.msra.mxu1 %v1764_v47  ;;  %1767 = vmatprep.subr.bf16.mxu0 %v1766_v45 }
 0x142   :  { %1799 = vmatprep.subr.bf16.mxu1 %v1766_v45 }
 0x144   :  { %1769 = vmatpush1.bf16.msra.mxu0 %v1768_v8 }
 0x145   :  { %1801 = vmatpush1.bf16.msra.mxu1 %v1768_v8  ;;  %1771 = vmatprep.subr.bf16.mxu0 %v1770_v19 }
 0x146   :  { %1803 = vmatprep.subr.bf16.mxu1 %v1770_v19 }
 0x148   :  { %1773 = vmatpush1.bf16.msra.mxu0 %v1772_v6 }
 0x149   :  { %1805 = vmatpush1.bf16.msra.mxu1 %v1772_v6  ;;  %1775 = vmatprep.subr.bf16.mxu0 %v1774_v20 }
 0x14a   :  { %1807 = vmatprep.subr.bf16.mxu1 %v1774_v20 }
 0x14c   :  { %1777 = vmatpush1.bf16.msra.mxu0 %v1776_v22 }
 0x14d   :  { %1809 = vmatpush1.bf16.msra.mxu1 %v1776_v22  ;;  %1779 = vmatprep.subr.bf16.mxu0 %v1778_v26 }
 0x14e   :  { %1811 = vmatprep.subr.bf16.mxu1 %v1778_v26  ;;  %v2636_v26 = vld [vmem:[%s2997_s2 + $0x1] ss:$0 sm:$0xff] }
 0x150   :  { %1781 = vmatpush1.bf16.msra.mxu0 %v1780_v30 }
 0x151   :  { %1813 = vmatpush1.bf16.msra.mxu1 %v1780_v30  ;;  %1783 = vmatprep.subr.bf16.mxu0 %v1782_v63 }
 0x152   :  { %1815 = vmatprep.subr.bf16.mxu1 %v1782_v63 }
 0x154   :  { %1785 = vmatpush1.bf16.msra.mxu0 %v1784_v25 }
 0x155   :  { %1817 = vmatpush1.bf16.msra.mxu1 %v1784_v25 }
 0x1ea   :  { %v564_v2 = vpop.f32.mrb[16].mxu0 }
 0x1eb   :  { %v763_v36 = vpop.f32.mrb[16].mxu1  ;;  %v566_v4 = vpop.f32.mrb[17].mxu0  ;;  %v617_v32 = vadd.f32 %v2636_v26, %v564_v2 }
 0x1ec   :  { %v1559_v37 = vmul.f32 -1.442695, %v566_v4  ;;  %v765_v34 = vpop.f32.mrb[17].mxu1 }
 0x1ed   :  { %v1567_v38 = vmul.f32 -1.442695, %v765_v34  ;;  %v810_v34 = vadd.f32 %v2636_v26, %v763_v36 }
 0x1ee   :  { %1883 = vpow2.f32 %v1559_v37 }
 0x1ef   :  { %v570_v40 = vpop.f32.mrb[18].mxu0  ;;  %1885 = vpow2.f32 %v1567_v38 }
 0x1f0   :  { %v2619_v56 = vpop.f32.mrb[18].mxu1  ;;  %v572_v41 = vpop.f32.mrb[19].mxu0 }
 0x1f1   :  { %v1560_v42 = vmul.f32 -1.442695, %v572_v41  ;;  %v771_v43 = vpop.f32.mrb[19].mxu1 }
 0x1f2   :  { %v1568_v35 = vmul.f32 -1.442695, %v771_v43 }
 0x1f3   :  { %1887 = vpow2.f32 %v1560_v42  ;;  %v2621_v44 = vpop.f32.mrb[20].mxu0 }
 0x1f4   :  { %1889 = vpow2.f32 %v1568_v35  ;;  %v2623_v47 = vpop.f32.mrb[20].mxu1  ;;  %v578_v48 = vpop.f32.mrb[21].mxu0 }
 0x1f5   :  { %v1561_v49 = vmul.f32 -1.442695, %v578_v48  ;;  %v777_v45 = vpop.f32.mrb[21].mxu1  ;;  %v618_v48 = vadd.f32 %v2636_v26, %v570_v40 }
 0x1f6   :  { %v1569_v18 = vmul.f32 -1.442695, %v777_v45  ;;  %v673_v45 = vmul.f32 %v617_v32, %v2165_v52 }
 0x1f7   :  { %1891 = vpow2.f32 %v1561_v49  ;;  %v2625_v58 = vpop.f32.mrb[22].mxu0  ;;  %v674_v52 = vmul.f32 %v618_v48, %v2179_v54 }
 0x1f8   :  { %1893 = vpow2.f32 %v1569_v18  ;;  %v584_v8 = vpop.f32.mrb[23].mxu0  ;;  %v1884_v9 = vpop.eup %1883  ;;  %v811_v18 = vadd.f32 %v2636_v26, %v2619_v56  ;;  %v619_v56 = vadd.f32 %v2636_v26, %v2621_v44 }
 0x1f9   :  { %v2627_v10 = vpop.f32.mrb[22].mxu1  ;;  %v1562_v19 = vmul.f32 -1.442695, %v584_v8  ;;  %v1886_v46 = vpop.eup %1885  ;;  %v649_v59 = vadd.f32 1.0, %v1884_v9 }
 0x1fa   :  { %v783_v6 = vpop.f32.mrb[23].mxu1  ;;  %v842_v14 = vadd.f32 1.0, %v1886_v46 }
 0x1fb   :  { %1895 = vpow2.f32 %v1562_v19  ;;  %v1570_v60 = vmul.f32 -1.442695, %v783_v6  ;;  %v2629_v20 = vpop.f32.mrb[24].mxu0  ;;  %v866_v19 = vmul.f32 %v810_v34, %v2170_v53  ;;  %v2661_v53 = vld [vmem:[%s2996_s0 + $0x48] sm:$0xff] }
 0x1fc   :  { %1897 = vrcp.f32 %v649_v59  ;;  %v590_v15 = vpop.f32.mrb[25].mxu0 }
 0x1fd   :  { %v1888_v24 = vpop.eup %1887  ;;  %1899 = vrcp.f32 %v842_v14  ;;  %v1563_v23 = vmul.f32 -1.442695, %v590_v15 }
 0x1fe   :  { %v2631_v22 = vpop.f32.mrb[24].mxu1  ;;  %v1890_v61 = vpop.eup %1889  ;;  %v650_v27 = vadd.f32 1.0, %v1888_v24  ;;  %1901 = vpow2.f32 %v1570_v60 }
 0x1ff   :  { %v789_v29 = vpop.f32.mrb[25].mxu1  ;;  %v843_v30 = vadd.f32 1.0, %v1890_v61  ;;  %1903 = vpow2.f32 %v1563_v23  ;;  %v2638_v12 = vpop.f32.mrb[26].mxu0  ;;  %v867_v61 = vmul.f32 %v2661_v53, %v811_v18 }
 0x200   :  { %v1571_v39 = vmul.f32 -1.442695, %v789_v29  ;;  %1905 = vrcp.f32 %v650_v27  ;;  %v596_v63 = vpop.f32.mrb[27].mxu0 }
 0x201   :  { %v1892_v0 = vpop.eup %1891  ;;  %1907 = vrcp.f32 %v843_v30  ;;  %v1564_v4 = vmul.f32 -1.442695, %v596_v63 }
 0x202   :  { %v2641_v25 = vpop.f32.mrb[26].mxu1  ;;  %v1894_v37 = vpop.eup %1893  ;;  %v651_v38 = vadd.f32 1.0, %v1892_v0  ;;  %1909 = vpow2.f32 %v1571_v39  ;;  %v812_v39 = vadd.f32 %v2636_v26, %v2623_v47 }
 0x203   :  { %v795_v41 = vpop.f32.mrb[27].mxu1  ;;  %v844_v42 = vadd.f32 1.0, %v1894_v37  ;;  %1911 = vpow2.f32 %v1564_v4  ;;  %v2644_v35 = vpop.f32.mrb[28].mxu0 }
 0x204   :  { %v1572_v43 = vmul.f32 -1.442695, %v795_v41  ;;  %1913 = vrcp.f32 %v651_v38  ;;  %v602_v49 = vpop.f32.mrb[29].mxu0 }
 0x205   :  { %v1896_v2 = vpop.eup %1895  ;;  %1915 = vrcp.f32 %v844_v42  ;;  %v1565_v8 = vmul.f32 -1.442695, %v602_v49 }
 0x206   :  { %v2650_v36 = vpop.f32.mrb[28].mxu1  ;;  %v1898_v9 = vpop.eup %1897  ;;  %v652_v46 = vadd.f32 1.0, %v1896_v2  ;;  %1917 = vpow2.f32 %v1572_v43  ;;  %v620_v43 = vadd.f32 %v2636_v26, %v2625_v58 }
 0x207   :  { %v801_v59 = vpop.f32.mrb[29].mxu1  ;;  %v1900_v6 = vpop.eup %1899  ;;  %1919 = vpow2.f32 %v1565_v8  ;;  %v681_v14 = vmul.f32 %v1898_v9, %v673_v45  ;;  %v2692_v45 = vld [vmem:[%s2996_s0 + $0x50] sm:$0xff] }
 0x208   :  { %v1573_v40 = vmul.f32 -1.442695, %v801_v59  ;;  %v1902_v60 = vpop.eup %1901  ;;  %1921 = vrcp.f32 %v652_v46  ;;  %v874_v24 = vmul.f32 %v1900_v6, %v866_v19  ;;  %v868_v18 = vmul.f32 %v2692_v45, %v812_v39 }
 0x209   :  { %v2656_v15 = vpop.f32.mrb[30].mxu0  ;;  %v1904_v23 = vpop.eup %1903  ;;  %v845_v27 = vadd.f32 1.0, %v1902_v60  ;;  %v2667_v30 = vadd.f32 %v681_v14, %v2418_v50  ;;  %v2678_v50 = vld [vmem:[%s2996_s0 + $0x10] sm:$0xff]  ;;  %v813_v46 = vadd.f32 %v2636_v26, %v2627_v10  ;;  %v621_v14 = vadd.f32 %v2636_v26, %v2629_v20  ;;  %v2722_v20 = vld [vmem:[%s2996_s0 + $0x58] sm:$0xff] }
 0x20a   :  { %1923 = vpow2.f32 %v1573_v40  ;;  %v2664_v29 = vpop.f32.mrb[30].mxu1  ;;  %v608_v54 = vpop.f32.mrb[31].mxu0  ;;  %v653_v63 = vadd.f32 1.0, %v1904_v23  ;;  %v2672_v4 = vadd.f32 %v874_v24, %v2421_v51  ;;  %v675_v47 = vmul.f32 %v2678_v50, %v619_v56 }
 0x20b   :  { %v1906_v44 = vpop.eup %1905  ;;  %v1566_v0 = vmul.f32 -1.442695, %v608_v54  ;;  %v807_v32 = vpop.f32.mrb[31].mxu1  ;;  %1925 = vrcp.f32 %v845_v27  ;;  %990 = vmatmul.mubr.f32.vlgmr.msra.gmra.mrb[32].mxu0 %v2667_v30  ;;  %v869_v27 = vmul.f32 %v2722_v20, %v813_v46 }
 0x20c   :  { %v1908_v37 = vpop.eup %1907  ;;  %v1574_v34 = vmul.f32 -1.442695, %v807_v32  ;;  %v682_v38 = vmul.f32 %v1906_v44, %v674_v52  ;;  %1927 = vrcp.f32 %v653_v63  ;;  %1189 = vmatmul.mubr.f32.vlgmr.msra.gmra.mrb[32].mxu1 %v2672_v4  ;;  %995 = vmatprep.mubr.f32.mxu0 %v2027_v3  ;;  %v2732_v44 = vld [vmem:[%s2996_s0 + $0x20] sm:$0xff]  ;;  %v622_v63 = vadd.f32 %v2636_v26, %v2638_v12 }
 0x20d   :  { %v1910_v41 = vpop.eup %1909  ;;  %v875_v51 = vmul.f32 %v1908_v37, %v867_v61  ;;  %1929 = vpow2.f32 %v1566_v0  ;;  %1194 = vmatprep.mubr.f32.mxu1 %v2027_v3  ;;  %v677_v39 = vmul.f32 %v2732_v44, %v621_v14 }
 0x20e   :  { %v1912_v42 = vpop.eup %1911  ;;  %v846_v48 = vadd.f32 1.0, %v1910_v41  ;;  %v2687_v49 = vadd.f32 %v682_v38, %v2430_v16  ;;  %1931 = vpow2.f32 %v1574_v34  ;;  %v2745_v41 = vld [vmem:[%s2996_s0 + $0x60] sm:$0xff] }
 0x20f   :  { %v1914_v2 = vpop.eup %1913  ;;  %v654_v8 = vadd.f32 1.0, %v1912_v42  ;;  %v2696_v9 = vadd.f32 %v875_v51, %v2435_v7  ;;  %v2706_v7 = vld [vmem:[%s2996_s0 + $0x18] sm:$0xff] }
 0x210   :  { %v1916_v58 = vpop.eup %1915  ;;  %1933 = vrcp.f32 %v846_v48  ;;  %996 = vmatmul.mubr.f32.gmra.mrb[34].mxu0 %v2687_v49  ;;  %v683_v19 = vmul.f32 %v1914_v2, %v675_v47  ;;  %v676_v40 = vmul.f32 %v2706_v7, %v620_v43  ;;  %v815_v47 = vadd.f32 %v2636_v26, %v2641_v25  ;;  %v2757_v43 = vld [vmem:[%s2996_s0 + $0x28] sm:$0xff] }
 0x211   :  { %v1918_v16 = vpop.eup %1917  ;;  %1935 = vrcp.f32 %v654_v8  ;;  %1195 = vmatmul.mubr.f32.gmra.mrb[34].mxu1 %v2696_v9  ;;  %1001 = vmatprep.mubr.f32.mxu0 %v2027_v3  ;;  %v876_v59 = vmul.f32 %v1916_v58, %v868_v18  ;;  %v678_v48 = vmul.f32 %v2757_v43, %v622_v63  ;;  %v623_v2 = vadd.f32 %v2636_v26, %v2644_v35  ;;  %v2773_v35 = vld [vmem:[%s2996_s0 + $0x68] sm:$0xff] }
 0x212   :  { %v1920_v6 = vpop.eup %1919  ;;  %v847_v60 = vadd.f32 1.0, %v1918_v16  ;;  %1200 = vmatprep.mubr.f32.mxu1 %v2027_v3  ;;  %v2713_v10 = vadd.f32 %v683_v19, %v2446_v55  ;;  %v814_v55 = vadd.f32 %v2636_v26, %v2631_v22  ;;  %v816_v58 = vadd.f32 %v2636_v26, %v2650_v36  ;;  %v2783_v36 = vld [vmem:[%s2996_s0 + $0x30] sm:$0xff] }
 0x213   :  { %v1922_v52 = vpop.eup %1921  ;;  %v655_v56 = vadd.f32 1.0, %v1920_v6  ;;  %v2716_v24 = vadd.f32 %v876_v59, %v2450_v13  ;;  %v679_v59 = vmul.f32 %v2783_v36, %v623_v2 }
 0x214   :  { %v1924_v23 = vpop.eup %1923  ;;  %1937 = vrcp.f32 %v847_v60  ;;  %1002 = vmatmul.mubr.f32.gmra.mrb[36].mxu0 %v2713_v10  ;;  %v684_v61 = vmul.f32 %v1922_v52, %v676_v40  ;;  %v870_v12 = vmul.f32 %v2745_v41, %v814_v55  ;;  %v624_v52 = vadd.f32 %v2636_v26, %v2656_v15  ;;  %v2813_v15 = vld [vmem:[%s2996_s0 + $0x38] sm:$0xff] }
 0x215   :  { %1939 = vrcp.f32 %v655_v56  ;;  %v848_v54 = vadd.f32 1.0, %v1924_v23  ;;  %1201 = vmatmul.mubr.f32.gmra.mrb[36].mxu1 %v2716_v24  ;;  %1007 = vmatprep.mubr.f32.mxu0 %v2027_v3  ;;  %v1926_v13 = vpop.eup %1925  ;;  %v817_v23 = vadd.f32 %v2636_v26, %v2664_v29 }
 0x216   :  { %1206 = vmatprep.mubr.f32.mxu1 %v2027_v3  ;;  %v2739_v22 = vadd.f32 %v684_v61, %v2462_v57  ;;  %v1928_v0 = vpop.eup %1927  ;;  %v877_v32 = vmul.f32 %v1926_v13, %v869_v27 }
 0x217   :  { %1941 = vrcp.f32 %v848_v54  ;;  %v1930_v37 = vpop.eup %1929  ;;  %v685_v34 = vmul.f32 %v1928_v0, %v677_v39  ;;  %v680_v54 = vmul.f32 %v2813_v15, %v624_v52 }
 0x218   :  { %1008 = vmatmul.mubr.f32.gmra.mrb[38].mxu0 %v2739_v22  ;;  %v1932_v38 = vpop.eup %1931  ;;  %v656_v57 = vadd.f32 1.0, %v1930_v37  ;;  %v2751_v51 = vadd.f32 %v877_v32, %v2470_v5 }
 0x219   :  { %1013 = vmatprep.mubr.f32.mxu0 %v2027_v3  ;;  %v849_v18 = vadd.f32 1.0, %v1932_v38  ;;  %v2763_v25 = vadd.f32 %v685_v34, %v2477_v11  ;;  %v871_v11 = vmul.f32 %v2773_v35, %v815_v47 }
 0x21a   :  { %v1934_v42 = vpop.eup %1933  ;;  %1943 = vrcp.f32 %v656_v57  ;;  %1207 = vmatmul.mubr.f32.gmra.mrb[38].mxu1 %v2751_v51 }
 0x21b   :  { %v1936_v8 = vpop.eup %1935  ;;  %v878_v5 = vmul.f32 %v1934_v42, %v870_v12  ;;  %1945 = vrcp.f32 %v849_v18  ;;  %1212 = vmatprep.mubr.f32.mxu1 %v2027_v3 }
 0x21c   :  { %1014 = vmatmul.mubr.f32.gmra.mrb[40].mxu0 %v2763_v25  ;;  %v686_v19 = vmul.f32 %v1936_v8, %v678_v48 }
 0x21d   :  { %v2777_v16 = vadd.f32 %v878_v5, %v2486_v17  ;;  %1019 = vmatprep.mubr.f32.mxu0 %v2027_v3  ;;  %v2793_v17 = vld [vmem:[%s2996_s0 + $0x70] sm:$0xff] }
 0x21e   :  { %v1938_v46 = vpop.eup %1937  ;;  %v2787_v6 = vadd.f32 %v686_v19, %v2491_v21  ;;  %v872_v60 = vmul.f32 %v2793_v17, %v816_v58 }
 0x21f   :  { %v1940_v40 = vpop.eup %1939  ;;  %1213 = vmatmul.mubr.f32.gmra.mrb[40].mxu1 %v2777_v16  ;;  %v879_v14 = vmul.f32 %v1938_v46, %v871_v11 }
 0x220   :  { %1218 = vmatprep.mubr.f32.mxu1 %v2027_v3  ;;  %1020 = vmatmul.mubr.f32.gmra.mrb[42].mxu0 %v2787_v6  ;;  %v687_v21 = vmul.f32 %v1940_v40, %v679_v59 }
 0x221   :  { %v1942_v56 = vpop.eup %1941  ;;  %v2803_v61 = vadd.f32 %v879_v14, %v2502_v62  ;;  %1025 = vmatprep.mubr.f32.mxu0 %v2027_v3 }
 0x222   :  { %v2807_v27 = vadd.f32 %v687_v21, %v2506_v28  ;;  %v880_v55 = vmul.f32 %v1942_v56, %v872_v60  ;;  %v2824_v28 = vld [vmem:[%s2996_s0 + $0x78] sm:$0xff] }
 0x223   :  { %1219 = vmatmul.mubr.f32.gmra.mrb[42].mxu1 %v2803_v61  ;;  %v873_v29 = vmul.f32 %v2824_v28, %v817_v23 }
 0x224   :  { %1224 = vmatprep.mubr.f32.mxu1 %v2027_v3  ;;  %1026 = vmatmul.mubr.f32.gmra.mrb[44].mxu0 %v2807_v27  ;;  %v2819_v62 = vadd.f32 %v880_v55, %v2512_v31  ;;  %v1944_v26 = vpop.eup %1943 }
 0x225   :  { %1031 = vmatprep.mubr.f32.mxu0 %v2027_v3  ;;  %v1946_v13 = vpop.eup %1945  ;;  %v688_v39 = vmul.f32 %v1944_v26, %v680_v54 }
 0x226   :  { %v881_v63 = vmul.f32 %v1946_v13, %v873_v29 }
 0x227   :  { %1225 = vmatmul.mubr.f32.gmra.mrb[44].mxu1 %v2819_v62  ;;  %v2831_v31 = vadd.f32 %v688_v39, %v2520_v33  ;;  %v2855_v39 = vld [vmem:[%s2997_s2 + $0x2] ss:$0 sm:$0xff] }
 0x228   :  { %1230 = vmatprep.mubr.f32.mxu1 %v2027_v3  ;;  %v2834_v0 = vadd.f32 %v881_v63, %v2523_v1 }
 0x229   :  { %1032 = vmatmul.mubr.f32.gmra.mrb[46].mxu0 %v2831_v31 }
 0x22b   :  { %1231 = vmatmul.mubr.f32.gmra.mrb[46].mxu1 %v2834_v0 }
 0x2de   :  { %v991_v32 = vpop.f32.mrb[32].mxu0 }
 0x2df   :  { %v1190_v37 = vpop.f32.mrb[32].mxu1  ;;  %v993_v34 = vpop.f32.mrb[33].mxu0 }
 0x2e0   :  { %v1609_v38 = vmul.f32 -1.442695, %v993_v34  ;;  %v1192_v12 = vpop.f32.mrb[33].mxu1 }
 0x2e1   :  { %v1617_v47 = vmul.f32 -1.442695, %v1192_v12 }
 0x2e2   :  { %1947 = vpow2.f32 %v1609_v38 }
 0x2e3   :  { %v2838_v57 = vpop.f32.mrb[34].mxu0  ;;  %1949 = vpow2.f32 %v1617_v47 }
 0x2e4   :  { %v2840_v3 = vpop.f32.mrb[34].mxu1  ;;  %v999_v33 = vpop.f32.mrb[35].mxu0 }
 0x2e5   :  { %v1610_v42 = vmul.f32 -1.442695, %v999_v33  ;;  %v1198_v1 = vpop.f32.mrb[35].mxu1 }
 0x2e6   :  { %v1618_v48 = vmul.f32 -1.442695, %v1198_v1 }
 0x2e7   :  { %1951 = vpow2.f32 %v1610_v42  ;;  %v2842_v2 = vpop.f32.mrb[36].mxu0 }
 0x2e8   :  { %1953 = vpow2.f32 %v1618_v48  ;;  %v2844_v18 = vpop.f32.mrb[36].mxu1  ;;  %v1005_v8 = vpop.f32.mrb[37].mxu0  ;;  %v1044_v48 = vadd.f32 %v2855_v39, %v991_v32  ;;  %v2024_v32 = vld [vmem:[%s2996_s0] sm:$0xff] }
 0x2e9   :  { %v1611_v5 = vmul.f32 -1.442695, %v1005_v8  ;;  %v1204_v58 = vpop.f32.mrb[37].mxu1 }
 0x2ea   :  { %v1619_v19 = vmul.f32 -1.442695, %v1204_v58  ;;  %v1237_v58 = vadd.f32 %v2855_v39, %v1190_v37  ;;  %v1238_v37 = vadd.f32 %v2855_v39, %v2840_v3  ;;  %v1045_v3 = vadd.f32 %v2855_v39, %v2838_v57 }
 0x2eb   :  { %1955 = vpow2.f32 %v1611_v5  ;;  %v2846_v11 = vpop.f32.mrb[38].mxu0 }
 0x2ec   :  { %1957 = vpow2.f32 %v1619_v19  ;;  %v1011_v46 = vpop.f32.mrb[39].mxu0  ;;  %v1948_v59 = vpop.eup %1947 }
 0x2ed   :  { %v1612_v40 = vmul.f32 -1.442695, %v1011_v46  ;;  %v1950_v14 = vpop.eup %1949  ;;  %v1076_v60 = vadd.f32 1.0, %v1948_v59  ;;  %v2848_v52 = vpop.f32.mrb[38].mxu1 }
 0x2ee   :  { %v1269_v21 = vadd.f32 1.0, %v1950_v14  ;;  %v1210_v56 = vpop.f32.mrb[39].mxu1 }
 0x2ef   :  { %1959 = vpow2.f32 %v1612_v40  ;;  %v2850_v23 = vpop.f32.mrb[40].mxu0  ;;  %v1620_v55 = vmul.f32 -1.442695, %v1210_v56 }
 0x2f0   :  { %1961 = vrcp.f32 %v1076_v60  ;;  %v1017_v54 = vpop.f32.mrb[41].mxu0 }
 0x2f1   :  { %v1952_v26 = vpop.eup %1951  ;;  %1963 = vrcp.f32 %v1269_v21  ;;  %v1613_v29 = vmul.f32 -1.442695, %v1017_v54 }
 0x2f2   :  { %v1954_v13 = vpop.eup %1953  ;;  %v1077_v63 = vadd.f32 1.0, %v1952_v26  ;;  %1965 = vpow2.f32 %v1620_v55  ;;  %v2857_v34 = vpop.f32.mrb[40].mxu1  ;;  %v1100_v55 = vmul.f32 %v2024_v32, %v1044_v48 }
 0x2f3   :  { %v1270_v38 = vadd.f32 1.0, %v1954_v13  ;;  %1967 = vpow2.f32 %v1613_v29  ;;  %v1216_v12 = vpop.f32.mrb[41].mxu1  ;;  %v2859_v47 = vpop.f32.mrb[42].mxu0  ;;  %v2025_v29 = vld [vmem:[%s2996_s0 + $0x40] sm:$0xff] }
 0x2f4   :  { %1969 = vrcp.f32 %v1077_v63  ;;  %v1621_v33 = vmul.f32 -1.442695, %v1216_v12  ;;  %v1023_v42 = vpop.f32.mrb[43].mxu0  ;;  %v1293_v13 = vmul.f32 %v2025_v29, %v1237_v58 }
 0x2f5   :  { %v1956_v1 = vpop.eup %1955  ;;  %1971 = vrcp.f32 %v1270_v38  ;;  %v1614_v8 = vmul.f32 -1.442695, %v1023_v42 }
 0x2f6   :  { %v1958_v5 = vpop.eup %1957  ;;  %v1078_v19 = vadd.f32 1.0, %v1956_v1  ;;  %1973 = vpow2.f32 %v1621_v33  ;;  %v2863_v46 = vpop.f32.mrb[42].mxu1 }
 0x2f7   :  { %v1271_v59 = vadd.f32 1.0, %v1958_v5  ;;  %1975 = vpow2.f32 %v1614_v8  ;;  %v1222_v40 = vpop.f32.mrb[43].mxu1  ;;  %v2865_v14 = vpop.f32.mrb[44].mxu0  ;;  %v2882_v5 = vld [vmem:[%s2998_s3] ss:$0 sm:$0xff] }
 0x2f8   :  { %1977 = vrcp.f32 %v1078_v19  ;;  %v1622_v60 = vmul.f32 -1.442695, %v1222_v40  ;;  %v1029_v21 = vpop.f32.mrb[45].mxu0  ;;  %v1294_v19 = vmul.f32 %v2661_v53, %v1238_v37 }
 0x2f9   :  { %v1960_v56 = vpop.eup %1959  ;;  %1979 = vrcp.f32 %v1271_v59  ;;  %v1615_v54 = vmul.f32 -1.442695, %v1029_v21  ;;  %v1046_v59 = vadd.f32 %v2855_v39, %v2842_v2  ;;  %v1047_v2 = vadd.f32 %v2855_v39, %v2846_v11 }
 0x2fa   :  { %v1962_v26 = vpop.eup %1961  ;;  %v1079_v63 = vadd.f32 1.0, %v1960_v56  ;;  %1981 = vpow2.f32 %v1622_v60  ;;  %v2875_v38 = vpop.f32.mrb[44].mxu1  ;;  %v1239_v56 = vadd.f32 %v2855_v39, %v2844_v18  ;;  %v2026_v18 = vld [vmem:[%s2996_s0 + $0x8] sm:$0xff] }
 0x2fb   :  { %v1964_v12 = vpop.eup %1963  ;;  %1983 = vpow2.f32 %v1615_v54  ;;  %v1228_v33 = vpop.f32.mrb[45].mxu1  ;;  %v1108_v42 = vmul.f32 %v1962_v26, %v1100_v55 }
 0x2fc   :  { %v1966_v1 = vpop.eup %1965  ;;  %1985 = vrcp.f32 %v1079_v63  ;;  %v1623_v48 = vmul.f32 -1.442695, %v1228_v33  ;;  %v1301_v8 = vmul.f32 %v1964_v12, %v1293_v13  ;;  %v2887_v60 = vpop.f32.mrb[46].mxu0  ;;  %v1101_v63 = vmul.f32 %v2026_v18, %v1045_v3 }
 0x2fd   :  { %v1968_v58 = vpop.eup %1967  ;;  %v1272_v40 = vadd.f32 1.0, %v1966_v1  ;;  %v1116_v21 = vadd.f32 %v1108_v42, %v2667_v30  ;;  %v1035_v54 = vpop.f32.mrb[47].mxu0  ;;  %v1102_v42 = vmul.f32 %v2678_v50, %v1046_v59  ;;  %v1103_v3 = vmul.f32 %v2706_v7, %v1047_v2 }
 0x2fe   :  { %v1970_v57 = vpop.eup %1969  ;;  %v1080_v32 = vadd.f32 1.0, %v1968_v58  ;;  %1987 = vpow2.f32 %v1623_v48  ;;  %v2892_v55 = vpop.f32.mrb[46].mxu1  ;;  %v1309_v26 = vadd.f32 %v1301_v8, %v2672_v4  ;;  %v1616_v37 = vmul.f32 -1.442695, %v1035_v54 }
 0x2ff   :  { %v1972_v53 = vpop.eup %1971  ;;  %1989 = vrcp.f32 %v1272_v40  ;;  %v1234_v29 = vpop.f32.mrb[47].mxu1  ;;  %v1324_v30 = vmul.f32 %v2882_v5, %v1116_v21  ;;  %v1295_v8 = vmul.f32 %v2692_v45, %v1239_v56  ;;  %v1109_v40 = vmul.f32 %v1970_v57, %v1101_v63 }
 0x300   :  { %v1974_v13 = vpop.eup %1973  ;;  %1991 = vrcp.f32 %v1080_v32  ;;  %v1624_v12 = vmul.f32 -1.442695, %v1234_v29  ;;  %v1348_v33 = vmul.f32 %v2882_v5, %v1309_v26  ;;  %v1302_v11 = vmul.f32 %v1972_v53, %v1294_v19 }
 0x301   :  { %v1976_v4 = vpop.eup %1975  ;;  %v1273_v1 = vadd.f32 1.0, %v1974_v13  ;;  %1993 = vpow2.f32 %v1616_v37  ;;  %1332 = vadd.xlane.f32.xlu0 %v1324_v30  ;;  %v1240_v50 = vadd.f32 %v2855_v39, %v2848_v52  ;;  %v1117_v19 = vadd.f32 %v1109_v40, %v2687_v49 }
 0x302   :  { %v1978_v48 = vpop.eup %1977  ;;  %v1081_v58 = vadd.f32 1.0, %v1976_v4  ;;  %1995 = vpow2.f32 %v1624_v12  ;;  %1356 = vadd.xlane.f32.xlu1 %v1348_v33  ;;  %v1310_v32 = vadd.f32 %v1302_v11, %v2696_v9  ;;  %v1048_v56 = vadd.f32 %v2855_v39, %v2850_v23 }
 0x303   :  { %v1980_v21 = vpop.eup %1979  ;;  %1997 = vrcp.f32 %v1273_v1  ;;  %v1110_v54 = vmul.f32 %v1978_v48, %v1102_v42  ;;  %v1325_v37 = vmul.f32 %v2882_v5, %v1117_v19  ;;  %v1241_v52 = vadd.f32 %v2855_v39, %v2857_v34 }
 0x304   :  { %v1982_v26 = vpop.eup %1981  ;;  %1999 = vrcp.f32 %v1081_v58  ;;  %v1303_v59 = vmul.f32 %v1980_v21, %v1295_v8  ;;  %v1349_v53 = vmul.f32 %v2882_v5, %v1310_v32  ;;  %v1296_v23 = vmul.f32 %v2722_v20, %v1240_v50 }
 0x305   :  { %v1984_v45 = vpop.eup %1983  ;;  %v1274_v57 = vadd.f32 1.0, %v1982_v26  ;;  %v1118_v7 = vadd.f32 %v1110_v54, %v2713_v10  ;;  %1334 = vadd.xlane.f32.xlu0 %v1325_v37  ;;  %v1104_v63 = vmul.f32 %v2732_v44, %v1048_v56  ;;  %v1297_v20 = vmul.f32 %v2745_v41, %v1241_v52 }
 0x306   :  { %v1986_v2 = vpop.eup %1985  ;;  %v1082_v9 = vadd.f32 1.0, %v1984_v45  ;;  %v1311_v29 = vadd.f32 %v1303_v59, %v2716_v24  ;;  %1358 = vadd.xlane.f32.xlu1 %v1349_v53  ;;  %v1049_v24 = vadd.f32 %v2855_v39, %v2859_v47  ;;  %v1242_v48 = vadd.f32 %v2855_v39, %v2863_v46 }
 0x307   :  { %2001 = vrcp.f32 %v1274_v57  ;;  %v1111_v49 = vmul.f32 %v1986_v2, %v1103_v3  ;;  %v1326_v10 = vmul.f32 %v2882_v5, %v1118_v7  ;;  %v1050_v40 = vadd.f32 %v2855_v39, %v2865_v14 }
 0x308   :  { %v1988_v30 = vpop.eup %1987  ;;  %2003 = vrcp.f32 %v1082_v9  ;;  %v1350_v13 = vmul.f32 %v2882_v5, %v1311_v29  ;;  %v1243_v54 = vadd.f32 %v2855_v39, %v2875_v38  ;;  %v1298_v26 = vmul.f32 %v2773_v35, %v1242_v48 }
 0x309   :  { %v1990_v18 = vpop.eup %1989  ;;  %v1275_v12 = vadd.f32 1.0, %v1988_v30  ;;  %v1119_v34 = vadd.f32 %v1111_v49, %v2739_v22  ;;  %1336 = vadd.xlane.f32.xlu0 %v1326_v10  ;;  %v1105_v22 = vmul.f32 %v2757_v43, %v1049_v24  ;;  %v1051_v35 = vadd.f32 %v2855_v39, %v2887_v60 }
 0x30a   :  { %v1992_v33 = vpop.eup %1991  ;;  %v1304_v4 = vmul.f32 %v1990_v18, %v1296_v23  ;;  %1360 = vadd.xlane.f32.xlu1 %v1350_v13  ;;  %v1299_v38 = vmul.f32 %v2793_v17, %v1243_v54  ;;  %v1380_v13 = vlaneseq }
 0x30b   :  { %v1994_v42 = vpop.eup %1993  ;;  %2005 = vrcp.f32 %v1275_v12  ;;  %v1112_v1 = vmul.f32 %v1992_v33, %v1104_v63  ;;  %v1327_v47 = vmul.f32 %v2882_v5, %v1119_v34  ;;  %v1107_v17 = vmul.f32 %v2813_v15, %v1051_v35 }
 0x30c   :  { %v1996_v11 = vpop.eup %1995  ;;  %v1083_v8 = vadd.f32 1.0, %v1994_v42  ;;  %v1312_v44 = vadd.f32 %v1304_v4, %v2751_v51  ;;  %v1381_v63 = vand.u32 127, %v1380_v13  ;;  %v2960_v34 = vshrl.u32 %v1380_v13, 7 }
 0x30d   :  { %v1998_v58 = vpop.eup %1997  ;;  %v1276_v41 = vadd.f32 1.0, %v1996_v11  ;;  %v1120_v21 = vadd.f32 %v1112_v1, %v2763_v25  ;;  %1338 = vadd.xlane.f32.xlu0 %v1327_v47  ;;  %v1106_v25 = vmul.f32 %v2783_v36, %v1050_v40 }
 0x30e   :  { %v2000_v3 = vpop.eup %1999  ;;  %2007 = vrcp.f32 %v1083_v8  ;;  %v1351_v32 = vmul.f32 %v2882_v5, %v1312_v44  ;;  %v1305_v46 = vmul.f32 %v1998_v58, %v1297_v20  ;;  %v1449_v33 = vadd.s32 4294967224, %v1381_v63 }
 0x30f   :  { %2009 = vrcp.f32 %v1276_v41  ;;  %v1113_v51 = vmul.f32 %v2000_v3, %v1105_v22  ;;  %v1328_v14 = vmul.f32 %v2882_v5, %v1120_v21  ;;  %v1386_v4 = vadd.s32 4294967288, %v1381_v63 }
 0x310   :  { %1362 = vadd.xlane.f32.xlu1 %v1351_v32  ;;  %v1313_v43 = vadd.f32 %v1305_v46, %v2777_v16  ;;  %v1244_v16 = vadd.f32 %v2855_v39, %v2892_v55  ;;  %v1393_v42 = vadd.s32 4294967280, %v1381_v63  ;;  %v1384_v11 = vsub.s32 %v1381_v63, %v2960_v34 }
 0x311   :  { %v2002_v50 = vpop.eup %2001  ;;  %v1121_v19 = vadd.f32 %v1113_v51, %v2787_v6  ;;  %1340 = vadd.xlane.f32.xlu0 %v1328_v14  ;;  %v1463_v48 = vadd.s32 4294967208, %v1381_v63  ;;  %v1452_v8 = vsub.s32 %v1449_v33, %v2960_v34  ;;  %v1400_v44 = vadd.s32 4294967272, %v1381_v63 }
 0x312   :  { %v2004_v59 = vpop.eup %2003  ;;  %v1352_v45 = vmul.f32 %v2882_v5, %v1313_v43  ;;  %v1306_v56 = vmul.f32 %v2002_v50, %v1298_v26  ;;  %v1300_v60 = vmul.f32 %v2824_v28, %v1244_v16  ;;  %v1470_v47 = vadd.s32 4294967200, %v1381_v63 }
 0x313   :  { %v1114_v57 = vmul.f32 %v2004_v59, %v1106_v25  ;;  %v1329_v36 = vmul.f32 %v2882_v5, %v1121_v19  ;;  %v1389_v58 = vsub.s32 %v1386_v4, %v2960_v34  ;;  %v1407_v22 = vadd.s32 4294967264, %v1381_v63 }
 0x314   :  { %1364 = vadd.xlane.f32.xlu1 %v1352_v45  ;;  %v1314_v53 = vadd.f32 %v1306_v56, %v2803_v61  ;;  %v1477_v40 = vadd.s32 4294967192, %v1381_v63  ;;  %v1396_v21 = vsub.s32 %v1393_v42, %v2960_v34  ;;  %v1414_v46 = vadd.s32 4294967256, %v1381_v63 }
 0x315   :  { %v2006_v6 = vpop.eup %2005  ;;  %v1122_v7 = vadd.f32 %v1114_v57, %v2807_v27  ;;  %1342 = vadd.xlane.f32.xlu0 %v1329_v36  ;;  %v1466_v54 = vsub.s32 %v1463_v48, %v2960_v34  ;;  %v1484_v51 = vadd.s32 4294967184, %v1381_v63  ;;  %v1403_v26 = vsub.s32 %v1400_v44, %v2960_v34 }
 0x316   :  { %v1353_v2 = vmul.f32 %v2882_v5, %v1314_v53  ;;  %v1307_v9 = vmul.f32 %v2006_v6, %v1299_v38  ;;  %v1473_v43 = vsub.s32 %v1470_v47, %v2960_v34  ;;  %v1421_v14 = vadd.s32 4294967248, %v1381_v63 }
 0x317   :  { %v1330_v55 = vmul.f32 %v2882_v5, %v1122_v7  ;;  %v1410_v50 = vsub.s32 %v1407_v22, %v2960_v34  ;;  %v1480_v25 = vsub.s32 %v1477_v40, %v2960_v34  ;;  %v1417_v59 = vsub.s32 %v1414_v46, %v2960_v34 }
 0x318   :  { %v2008_v37 = vpop.eup %2007  ;;  %1366 = vadd.xlane.f32.xlu1 %v1353_v2  ;;  %v1315_v39 = vadd.f32 %v1307_v9, %v2819_v62  ;;  %v1491_v56 = vadd.s32 4294967176, %v1381_v63  ;;  %v1428_v38 = vadd.s32 4294967240, %v1381_v63  ;;  %v1487_v16 = vsub.s32 %v1484_v51, %v2960_v34 }
 0x319   :  { %v2010_v61 = vpop.eup %2009  ;;  %v1115_v29 = vmul.f32 %v2008_v37, %v1107_v17  ;;  %1344 = vadd.xlane.f32.xlu0 %v1330_v55  ;;  %v1424_v6 = vsub.s32 %v1421_v14, %v2960_v34 }
 0x31a   :  { %v1354_v52 = vmul.f32 %v2882_v5, %v1315_v39  ;;  %v1308_v49 = vmul.f32 %v2010_v61, %v1300_v60  ;;  %v1494_v61 = vsub.s32 %v1491_v56, %v2960_v34 }
 0x31b   :  { %v1123_v27 = vadd.f32 %v1115_v29, %v2831_v31  ;;  %v1444_v31 = vadd.s32 4294967232, %v1381_v63  ;;  %v1431_v29 = vsub.s32 %v1428_v38, %v2960_v34 }
 0x31c   :  { %1368 = vadd.xlane.f32.xlu1 %v1354_v52  ;;  %v1316_v15 = vadd.f32 %v1308_v49, %v2834_v0  ;;  %v1456_v0 = vadd.s32 4294967216, %v1381_v63 }
 0x31d   :  { %v1331_v30 = vmul.f32 %v2882_v5, %v1123_v27 }
 0x31e   :  { %v1355_v28 = vmul.f32 %v2882_v5, %v1316_v15  ;;  %v1447_v5 = vsub.s32 %v1444_v31, %v2960_v34  ;;  %v1459_v41 = vsub.s32 %v1456_v0, %v2960_v34 }
 0x31f   :  { %1346 = vadd.xlane.f32.xlu0 %v1331_v30 }
 0x320   :  { %1370 = vadd.xlane.f32.xlu1 %v1355_v28 }
 0x38e   :  { %v1333_v23 = vpop.xlane.xlu0 %1332 }
 0x38f   :  { %v1357_v62 = vpop.xlane.xlu1 %1356  ;;  %v1385_v2 = vrot.slane %v1333_v23, %v1384_v11 }
 0x390   :  { %v1448_v7 = vrot.slane %v1357_v62, %v1447_v5 }
 0x392   :  { %v1335_v18 = vpop.xlane.xlu0 %1334 }
 0x393   :  { %v1359_v10 = vpop.xlane.xlu1 %1358  ;;  %v1390_v57 = vrot.slane %v1335_v18, %v1389_v58 }
 0x394   :  { %v1453_v35 = vrot.slane %v1359_v10, %v1452_v8 }
 0x395   :  { %v1392_v49 = vsel %vm1391_vm1, %v1390_v57, %v1385_v2 }
 0x396   :  { %v1337_v12 = vpop.xlane.xlu0 %1336  ;;  %v1455_v52 = vsel %vm1454_vm0, %v1453_v35, %v1448_v7 }
 0x397   :  { %v1361_v24 = vpop.xlane.xlu1 %1360  ;;  %v1397_v36 = vrot.slane %v1337_v12, %v1396_v21 }
 0x398   :  { %v1460_v53 = vrot.slane %v1361_v24, %v1459_v41 }
 0x399   :  { %v1399_v28 = vsel %vm1398_vm3, %v1397_v36, %v1392_v49 }
 0x39a   :  { %v1339_v1 = vpop.xlane.xlu0 %1338  ;;  %v1462_v30 = vsel %vm1461_vm2, %v1460_v53, %v1455_v52 }
 0x39b   :  { %v1404_v17 = vrot.slane %v1339_v1, %v1403_v26 }
 0x39d   :  { %v1363_v20 = vpop.xlane.xlu1 %1362  ;;  %v1406_v10 = vsel %vm1405_vm5, %v1404_v17, %v1399_v28 }
 0x39e   :  { %v1341_v32 = vpop.xlane.xlu0 %1340  ;;  %v1467_v9 = vrot.slane %v1363_v20, %v1466_v54  ;;  %v1501_v20 = vstv %s2999_s4 }
 0x39f   :  { %v1411_v60 = vrot.slane %v1341_v32, %v1410_v50 }
 0x3a0   :  { %v1469_v13 = vsel %vm1468_vm4, %v1467_v9, %v1462_v30 }
 0x3a1   :  { %v1365_v3 = vpop.xlane.xlu1 %1364  ;;  %v1413_v63 = vsel %vm1412_vm7, %v1411_v60, %v1406_v10 }
 0x3a2   :  { %v1343_v45 = vpop.xlane.xlu0 %1342  ;;  %v1474_v37 = vrot.slane %v1365_v3, %v1473_v43 }
 0x3a3   :  { %v1418_v15 = vrot.slane %v1343_v45, %v1417_v59 }
 0x3a4   :  { %v1476_v18 = vsel %vm1475_vm6, %v1474_v37, %v1469_v13 }
 0x3a5   :  { %v1367_v19 = vpop.xlane.xlu1 %1366  ;;  %v1420_v31 = vsel %vm1419_vm9, %v1418_v15, %v1413_v63 }
 0x3a6   :  { %v1345_v55 = vpop.xlane.xlu0 %1344  ;;  %v1481_v27 = vrot.slane %v1367_v19, %v1480_v25 }
 0x3a7   :  { %v1425_v23 = vrot.slane %v1345_v55, %v1424_v6 }
 0x3a8   :  { %v1483_v34 = vsel %vm1482_vm8, %v1481_v27, %v1476_v18 }
 0x3a9   :  { %v1369_v39 = vpop.xlane.xlu1 %1368  ;;  %v1427_v42 = vsel %vm1426_vm11, %v1425_v23, %v1420_v31 }
 0x3aa   :  { %v1488_v62 = vrot.slane %v1369_v39, %v1487_v16 }
 0x3ac   :  { %v1347_v12 = vpop.xlane.xlu0 %1346  ;;  %v1490_v0 = vsel %vm1489_vm10, %v1488_v62, %v1483_v34 }
 0x3ad   :  { %v1371_v24 = vpop.xlane.xlu1 %1370  ;;  %v1432_v4 = vrot.slane %v1347_v12, %v1431_v29 }
 0x3ae   :  { %v1495_v33 = vrot.slane %v1371_v24, %v1494_v61 }
 0x3af   :  { %v1434_v5 = vsel %vm1433_vm13, %v1432_v4, %v1427_v42 }
 0x3b0   :  { %v1497_v1 = vsel %vm1496_vm12, %v1495_v33, %v1490_v0 }
 0x3b1   :  { %v1500_v11 = vsel %vm1499_vm14, %v1434_v5, %v1497_v1 }
 0x3b2   :  { %v1502_v48 = vadd.f32 %v1501_v20, %v1500_v11 }
 0x3b4   :  { %1503 = vst [vmem:[%s3000_s5] sm:$0x1] %v1502_v48 }

// kernel: _gdcn_pallas_impl.1
= control target key start
LH: loop header
LB: loop body
LE: loop exit
PB: predicated region body
PF: predicated region fallthrough
CT: control target
= control target key end

     0   :  { %v2027_v3 = vmov 0.0   ;;  %vm1454_vm0 = vcmask 654912   ;;  %vm1391_vm1 = vcmask 130112   ;;  %vm1461_vm2 = vcmask 720512   ;;  %s2995_s1 = inlined_call_operand.vmem [shape: f32[3,128,256], index: 1, kind: input, shape index: {}]   ;;  %s2996_s0 = inlined_call_operand.vmem [shape: f32[128,128], index: 0, kind: input, shape index: {}]   ;;  %s2997_s2 = inlined_call_operand.vmem [shape: f32[3,1,128], index: 2, kind: input, shape index: {}]   ;;  %s2998_s3 = inlined_call_operand.vmem [shape: f32[1,128], index: 3, kind: input, shape index: {}]   ;;  %s2999_s4 = inlined_call_operand.<no memory space> [shape: f32[1], index: 4, kind: input, shape index: {}]   ;;  %s3000_s5 = inlined_call_operand.vmem [shape: f32[1,128], index: 5, kind: output, shape index: {}]  }
   0x1   :  { %v39_v0 = vld [vmem:[%s2995_s1 + $0x8] sm:$0xff]  ;;  %v41_v1 = vld [vmem:[%s2995_s1 + $0x18] sm:$0xff]  ;;  %v38_v2 = vld [vmem:[%s2995_s1] sm:$0xff]  ;;  %135 = vmatprep.mubr.f32.mxu0 %v2027_v3  ;;  %334 = vmatprep.mubr.f32.mxu1 %v2027_v3  ;;  %vm1398_vm3 = vcmask 195712   ;;  %vm1468_vm4 = vcmask 786112   ;;  %vm1405_vm5 = vcmask 261312  }
   0x2   :  { %v1626_v4 = vpack.c.bf16 %v41_v1, %v39_v0  ;;  %v40_v5 = vld [vmem:[%s2995_s1 + $0x10] sm:$0xff]  ;;  %v43_v6 = vld [vmem:[%s2995_s1 + $0x28] sm:$0xff]  ;;  %v45_v7 = vld [vmem:[%s2995_s1 + $0x38] sm:$0xff]  ;;  %vm1475_vm6 = vcmask 851712   ;;  %vm1412_vm7 = vcmask 326912   ;;  %vm1482_vm8 = vcmask 917312  }
   0x3   :  { %v1628_v8 = vpack.c.bf16 %v40_v5, %v38_v2  ;;  %v1630_v9 = vpack.c.bf16 %v45_v7, %v43_v6  ;;  %v42_v10 = vld [vmem:[%s2995_s1 + $0x20] sm:$0xff]  ;;  %v44_v11 = vld [vmem:[%s2995_s1 + $0x30] sm:$0xff]  ;;  %v47_v12 = vld [vmem:[%s2995_s1 + $0x48] sm:$0xff]  ;;  %vm1419_vm9 = vcmask 392512   ;;  %vm1489_vm10 = vcmask 982912  }
   0x4   :  { %1627 = vmatprep.subr.bf16.mxu0 %v1626_v4  ;;  %1659 = vmatprep.subr.bf16.mxu1 %v1626_v4  ;;  %v49_v13 = vld [vmem:[%s2995_s1 + $0x58] sm:$0xff]  ;;  %v1632_v14 = vpack.c.bf16 %v44_v11, %v42_v10  ;;  %v46_v16 = vld [vmem:[%s2995_s1 + $0x40] sm:$0xff]  ;;  %v48_v17 = vld [vmem:[%s2995_s1 + $0x50] sm:$0xff]  ;;  %vm1426_vm11 = vcmask 458112   ;;  %vm1496_vm12 = vcmask 1048512   ;;  %vm1433_vm13 = vcmask 523712  }
   0x5   :  { %1629 = vmatpush1.bf16.msra.mxu0 %v1628_v8  ;;  %1661 = vmatpush1.bf16.msra.mxu1 %v1628_v8  ;;  %v1634_v15 = vpack.c.bf16 %v49_v13, %v47_v12  ;;  %v51_v18 = vld [vmem:[%s2995_s1 + $0x68] sm:$0xff]  ;;  %v53_v19 = vld [vmem:[%s2995_s1 + $0x78] sm:$0xff]  ;;  %v1636_v20 = vpack.c.bf16 %v48_v17, %v46_v16  ;;  %v50_v22 = vld [vmem:[%s2995_s1 + $0x60] sm:$0xff]  ;;  %vm1499_vm14 = vcmask 523264  }
   0x6   :  { %1631 = vmatprep.subr.bf16.mxu0 %v1630_v9  ;;  %1663 = vmatprep.subr.bf16.mxu1 %v1630_v9  ;;  %v1638_v21 = vpack.c.bf16 %v53_v19, %v51_v18  ;;  %v52_v23 = vld [vmem:[%s2995_s1 + $0x70] sm:$0xff]  ;;  %v55_v24 = vld [vmem:[%s2995_s1 + $0x88] sm:$0xff]  ;;  %v57_v25 = vld [vmem:[%s2995_s1 + $0x98] sm:$0xff] }
   0x7   :  { %v1640_v26 = vpack.c.bf16 %v52_v23, %v50_v22  ;;  %v1642_v27 = vpack.c.bf16 %v57_v25, %v55_v24  ;;  %v54_v28 = vld [vmem:[%s2995_s1 + $0x80] sm:$0xff]  ;;  %v56_v29 = vld [vmem:[%s2995_s1 + $0x90] sm:$0xff]  ;;  %v59_v30 = vld [vmem:[%s2995_s1 + $0xa8] sm:$0xff] }
   0x8   :  { %v61_v31 = vld [vmem:[%s2995_s1 + $0xb8] sm:$0xff]  ;;  %v1644_v32 = vpack.c.bf16 %v56_v29, %v54_v28  ;;  %v58_v34 = vld [vmem:[%s2995_s1 + $0xa0] sm:$0xff]  ;;  %v60_v35 = vld [vmem:[%s2995_s1 + $0xb0] sm:$0xff] }
   0x9   :  { %1633 = vmatpush1.bf16.msra.mxu0 %v1632_v14  ;;  %1665 = vmatpush1.bf16.msra.mxu1 %v1632_v14  ;;  %v1646_v33 = vpack.c.bf16 %v61_v31, %v59_v30  ;;  %v63_v36 = vld [vmem:[%s2995_s1 + $0xc8] sm:$0xff]  ;;  %v65_v37 = vld [vmem:[%s2995_s1 + $0xd8] sm:$0xff]  ;;  %v1648_v38 = vpack.c.bf16 %v60_v35, %v58_v34  ;;  %v62_v40 = vld [vmem:[%s2995_s1 + $0xc0] sm:$0xff] }
   0xa   :  { %1635 = vmatprep.subr.bf16.mxu0 %v1634_v15  ;;  %1667 = vmatprep.subr.bf16.mxu1 %v1634_v15  ;;  %v1650_v39 = vpack.c.bf16 %v65_v37, %v63_v36  ;;  %v64_v41 = vld [vmem:[%s2995_s1 + $0xd0] sm:$0xff]  ;;  %v67_v42 = vld [vmem:[%s2995_s1 + $0xe8] sm:$0xff]  ;;  %v69_v43 = vld [vmem:[%s2995_s1 + $0xf8] sm:$0xff] }
   0xb   :  { %v1652_v44 = vpack.c.bf16 %v64_v41, %v62_v40  ;;  %v1654_v45 = vpack.c.bf16 %v69_v43, %v67_v42  ;;  %v66_v46 = vld [vmem:[%s2995_s1 + $0xe0] sm:$0xff]  ;;  %v68_v47 = vld [vmem:[%s2995_s1 + $0xf0] sm:$0xff]  ;;  %v1526_v48 = vld [vmem:[%s2995_s1 + $0x108] sm:$0xff] }
   0xc   :  { %v1528_v49 = vld [vmem:[%s2995_s1 + $0x118] sm:$0xff]  ;;  %v1656_v50 = vpack.c.bf16 %v68_v47, %v66_v46  ;;  %v2165_v52 = vld [vmem:[%s2996_s0] sm:$0xff]  ;;  %v2179_v54 = vld [vmem:[%s2996_s0 + $0x8] sm:$0xff] }
   0xd   :  { %1637 = vmatpush1.bf16.msra.mxu0 %v1636_v20  ;;  %1669 = vmatpush1.bf16.msra.mxu1 %v1636_v20  ;;  %v1690_v51 = vpack.c.bf16 %v1528_v49, %v1526_v48  ;;  %v2170_v53 = vld [vmem:[%s2996_s0 + $0x40] sm:$0xff]  ;;  %v2184_v55 = vld [vmem:[%s2996_s0 + $0x48] sm:$0xff]  ;;  %v2193_v56 = vld [vmem:[%s2996_s0 + $0x10] sm:$0xff] }
   0xe   :  { %1639 = vmatprep.subr.bf16.mxu0 %v1638_v21  ;;  %1671 = vmatprep.subr.bf16.mxu1 %v1638_v21  ;;  %v2198_v57 = vld [vmem:[%s2996_s0 + $0x50] sm:$0xff]  ;;  %v2207_v58 = vld [vmem:[%s2996_s0 + $0x18] sm:$0xff]  ;;  %v2221_v60 = vld [vmem:[%s2996_s0 + $0x20] sm:$0xff] }
   0xf   :  { %v2212_v59 = vld [vmem:[%s2996_s0 + $0x58] sm:$0xff]  ;;  %v2226_v61 = vld [vmem:[%s2996_s0 + $0x60] sm:$0xff]  ;;  %v2235_v62 = vld [vmem:[%s2996_s0 + $0x28] sm:$0xff] }
  0x10   :  { %v2240_v63 = vld [vmem:[%s2996_s0 + $0x68] sm:$0xff]  ;;  %v2249_v0 = vld [vmem:[%s2996_s0 + $0x30] sm:$0xff]  ;;  %v2263_v2 = vld [vmem:[%s2996_s0 + $0x38] sm:$0xff] }
  0x11   :  { %1641 = vmatpush1.bf16.msra.mxu0 %v1640_v26  ;;  %1673 = vmatpush1.bf16.msra.mxu1 %v1640_v26  ;;  %v2254_v1 = vld [vmem:[%s2996_s0 + $0x70] sm:$0xff]  ;;  %v2268_v4 = vld [vmem:[%s2996_s0 + $0x78] sm:$0xff]  ;;  %v1525_v5 = vld [vmem:[%s2995_s1 + $0x100] sm:$0xff] }
  0x12   :  { %1643 = vmatprep.subr.bf16.mxu0 %v1642_v27  ;;  %1675 = vmatprep.subr.bf16.mxu1 %v1642_v27  ;;  %v1527_v6 = vld [vmem:[%s2995_s1 + $0x110] sm:$0xff]  ;;  %v1530_v8 = vld [vmem:[%s2995_s1 + $0x128] sm:$0xff]  ;;  %v1532_v9 = vld [vmem:[%s2995_s1 + $0x138] sm:$0xff] }
  0x13   :  { %v1692_v7 = vpack.c.bf16 %v1527_v6, %v1525_v5  ;;  %v1694_v10 = vpack.c.bf16 %v1532_v9, %v1530_v8  ;;  %v1529_v11 = vld [vmem:[%s2995_s1 + $0x120] sm:$0xff]  ;;  %v1531_v12 = vld [vmem:[%s2995_s1 + $0x130] sm:$0xff]  ;;  %v1534_v14 = vld [vmem:[%s2995_s1 + $0x148] sm:$0xff] }
  0x14   :  { %v1696_v13 = vpack.c.bf16 %v1531_v12, %v1529_v11  ;;  %v1536_v15 = vld [vmem:[%s2995_s1 + $0x158] sm:$0xff]  ;;  %v1533_v17 = vld [vmem:[%s2995_s1 + $0x140] sm:$0xff]  ;;  %v1535_v18 = vld [vmem:[%s2995_s1 + $0x150] sm:$0xff] }
  0x15   :  { %1645 = vmatpush1.bf16.msra.mxu0 %v1644_v32  ;;  %1677 = vmatpush1.bf16.msra.mxu1 %v1644_v32  ;;  %v1698_v16 = vpack.c.bf16 %v1536_v15, %v1534_v14  ;;  %v1700_v19 = vpack.c.bf16 %v1535_v18, %v1533_v17  ;;  %v1538_v20 = vld [vmem:[%s2995_s1 + $0x168] sm:$0xff]  ;;  %v1540_v21 = vld [vmem:[%s2995_s1 + $0x178] sm:$0xff]  ;;  %v1537_v23 = vld [vmem:[%s2995_s1 + $0x160] sm:$0xff] }
  0x16   :  { %1647 = vmatprep.subr.bf16.mxu0 %v1646_v33  ;;  %1679 = vmatprep.subr.bf16.mxu1 %v1646_v33  ;;  %v1702_v22 = vpack.c.bf16 %v1540_v21, %v1538_v20  ;;  %v1539_v24 = vld [vmem:[%s2995_s1 + $0x170] sm:$0xff]  ;;  %v1542_v26 = vld [vmem:[%s2995_s1 + $0x188] sm:$0xff]  ;;  %v1544_v27 = vld [vmem:[%s2995_s1 + $0x198] sm:$0xff] }
  0x17   :  { %v1704_v25 = vpack.c.bf16 %v1539_v24, %v1537_v23  ;;  %v1706_v28 = vpack.c.bf16 %v1544_v27, %v1542_v26  ;;  %v1541_v29 = vld [vmem:[%s2995_s1 + $0x180] sm:$0xff]  ;;  %v1543_v30 = vld [vmem:[%s2995_s1 + $0x190] sm:$0xff]  ;;  %v1546_v32 = vld [vmem:[%s2995_s1 + $0x1a8] sm:$0xff] }
  0x18   :  { %v1708_v31 = vpack.c.bf16 %v1543_v30, %v1541_v29  ;;  %v1548_v33 = vld [vmem:[%s2995_s1 + $0x1b8] sm:$0xff]  ;;  %v1545_v35 = vld [vmem:[%s2995_s1 + $0x1a0] sm:$0xff]  ;;  %v1547_v36 = vld [vmem:[%s2995_s1 + $0x1b0] sm:$0xff] }
  0x19   :  { %1649 = vmatpush1.bf16.msra.mxu0 %v1648_v38  ;;  %1681 = vmatpush1.bf16.msra.mxu1 %v1648_v38  ;;  %v1710_v34 = vpack.c.bf16 %v1548_v33, %v1546_v32  ;;  %v1712_v37 = vpack.c.bf16 %v1547_v36, %v1545_v35  ;;  %v1550_v38 = vld [vmem:[%s2995_s1 + $0x1c8] sm:$0xff]  ;;  %v1549_v41 = vld [vmem:[%s2995_s1 + $0x1c0] sm:$0xff]  ;;  %v1551_v42 = vld [vmem:[%s2995_s1 + $0x1d0] sm:$0xff] }
  0x1a   :  { %1651 = vmatprep.subr.bf16.mxu0 %v1650_v39  ;;  %1683 = vmatprep.subr.bf16.mxu1 %v1650_v39  ;;  %v1552_v39 = vld [vmem:[%s2995_s1 + $0x1d8] sm:$0xff]  ;;  %v1716_v43 = vpack.c.bf16 %v1551_v42, %v1549_v41  ;;  %v1553_v47 = vld [vmem:[%s2995_s1 + $0x1e0] sm:$0xff]  ;;  %v1555_v48 = vld [vmem:[%s2995_s1 + $0x1f0] sm:$0xff] }
  0x1b   :  { %v1714_v40 = vpack.c.bf16 %v1552_v39, %v1550_v38  ;;  %v1720_v49 = vpack.c.bf16 %v1555_v48, %v1553_v47  ;;  %v2389_v39 = vld [vmem:[%s2997_s2] ss:$0 sm:$0xff] }
  0x1d   :  { %1653 = vmatpush1.bf16.msra.mxu0 %v1652_v44  ;;  %1685 = vmatpush1.bf16.msra.mxu1 %v1652_v44  ;;  %v1554_v44 = vld [vmem:[%s2995_s1 + $0x1e8] sm:$0xff] }
  0x1e   :  { %1655 = vmatprep.subr.bf16.mxu0 %v1654_v45  ;;  %1687 = vmatprep.subr.bf16.mxu1 %v1654_v45  ;;  %v1556_v45 = vld [vmem:[%s2995_s1 + $0x1f8] sm:$0xff] }
  0x1f   :  { %v1718_v46 = vpack.c.bf16 %v1556_v45, %v1554_v44 }
  0x21   :  { %1657 = vmatpush1.bf16.msra.mxu0 %v1656_v50  ;;  %1689 = vmatpush1.bf16.msra.mxu1 %v1656_v50  ;;  %v1576_v50 = vld [vmem:[%s2995_s1 + $0x208] sm:$0xff] }
  0x22   :  { %1691 = vmatprep.subr.bf16.mxu0 %v1690_v51  ;;  %1723 = vmatprep.subr.bf16.mxu1 %v1690_v51  ;;  %v1578_v51 = vld [vmem:[%s2995_s1 + $0x218] sm:$0xff] }
  0x23   :  { %v1754_v5 = vpack.c.bf16 %v1578_v51, %v1576_v50 }
  0x24   :  { %136 = vmatmul.mubr.f32.vlgmr.msra.gmra.mrb[0].mxu0 %v2165_v52  ;;  %335 = vmatmul.mubr.f32.vlgmr.msra.gmra.mrb[0].mxu1 %v2170_v53 }
  0x25   :  { %141 = vmatprep.mubr.f32.mxu0 %v2027_v3  ;;  %340 = vmatprep.mubr.f32.mxu1 %v2027_v3 }
  0x26   :  { %1693 = vmatpush1.bf16.msra.mxu0 %v1692_v7  ;;  %1725 = vmatpush1.bf16.msra.mxu1 %v1692_v7 }
  0x27   :  { %1695 = vmatprep.subr.bf16.mxu0 %v1694_v10  ;;  %1727 = vmatprep.subr.bf16.mxu1 %v1694_v10 }
  0x28   :  { %142 = vmatmul.mubr.f32.gmra.mrb[2].mxu0 %v2179_v54  ;;  %341 = vmatmul.mubr.f32.gmra.mrb[2].mxu1 %v2184_v55 }
  0x29   :  { %147 = vmatprep.mubr.f32.mxu0 %v2027_v3  ;;  %346 = vmatprep.mubr.f32.mxu1 %v2027_v3 }
  0x2a   :  { %1697 = vmatpush1.bf16.msra.mxu0 %v1696_v13  ;;  %1729 = vmatpush1.bf16.msra.mxu1 %v1696_v13 }
  0x2b   :  { %1699 = vmatprep.subr.bf16.mxu0 %v1698_v16  ;;  %1731 = vmatprep.subr.bf16.mxu1 %v1698_v16 }
  0x2c   :  { %148 = vmatmul.mubr.f32.gmra.mrb[4].mxu0 %v2193_v56  ;;  %347 = vmatmul.mubr.f32.gmra.mrb[4].mxu1 %v2198_v57 }
  0x2d   :  { %153 = vmatprep.mubr.f32.mxu0 %v2027_v3  ;;  %352 = vmatprep.mubr.f32.mxu1 %v2027_v3 }
  0x2e   :  { %1701 = vmatpush1.bf16.msra.mxu0 %v1700_v19  ;;  %1733 = vmatpush1.bf16.msra.mxu1 %v1700_v19 }
  0x2f   :  { %1703 = vmatprep.subr.bf16.mxu0 %v1702_v22  ;;  %1735 = vmatprep.subr.bf16.mxu1 %v1702_v22 }
  0x30   :  { %154 = vmatmul.mubr.f32.gmra.mrb[6].mxu0 %v2207_v58  ;;  %353 = vmatmul.mubr.f32.gmra.mrb[6].mxu1 %v2212_v59 }
  0x31   :  { %159 = vmatprep.mubr.f32.mxu0 %v2027_v3  ;;  %358 = vmatprep.mubr.f32.mxu1 %v2027_v3 }
  0x32   :  { %1705 = vmatpush1.bf16.msra.mxu0 %v1704_v25  ;;  %1737 = vmatpush1.bf16.msra.mxu1 %v1704_v25 }
  0x33   :  { %1707 = vmatprep.subr.bf16.mxu0 %v1706_v28  ;;  %1739 = vmatprep.subr.bf16.mxu1 %v1706_v28 }
  0x34   :  { %160 = vmatmul.mubr.f32.gmra.mrb[8].mxu0 %v2221_v60  ;;  %359 = vmatmul.mubr.f32.gmra.mrb[8].mxu1 %v2226_v61 }
  0x35   :  { %165 = vmatprep.mubr.f32.mxu0 %v2027_v3  ;;  %364 = vmatprep.mubr.f32.mxu1 %v2027_v3 }
  0x36   :  { %1709 = vmatpush1.bf16.msra.mxu0 %v1708_v31  ;;  %1741 = vmatpush1.bf16.msra.mxu1 %v1708_v31 }
  0x37   :  { %1711 = vmatprep.subr.bf16.mxu0 %v1710_v34  ;;  %1743 = vmatprep.subr.bf16.mxu1 %v1710_v34 }
  0x38   :  { %166 = vmatmul.mubr.f32.gmra.mrb[10].mxu0 %v2235_v62  ;;  %365 = vmatmul.mubr.f32.gmra.mrb[10].mxu1 %v2240_v63 }
  0x39   :  { %171 = vmatprep.mubr.f32.mxu0 %v2027_v3  ;;  %370 = vmatprep.mubr.f32.mxu1 %v2027_v3 }
  0x3a   :  { %1713 = vmatpush1.bf16.msra.mxu0 %v1712_v37  ;;  %1745 = vmatpush1.bf16.msra.mxu1 %v1712_v37 }
  0x3b   :  { %1715 = vmatprep.subr.bf16.mxu0 %v1714_v40  ;;  %1747 = vmatprep.subr.bf16.mxu1 %v1714_v40 }
  0x3c   :  { %172 = vmatmul.mubr.f32.gmra.mrb[12].mxu0 %v2249_v0  ;;  %371 = vmatmul.mubr.f32.gmra.mrb[12].mxu1 %v2254_v1 }
  0x3d   :  { %177 = vmatprep.mubr.f32.mxu0 %v2027_v3  ;;  %376 = vmatprep.mubr.f32.mxu1 %v2027_v3 }
  0x3e   :  { %1717 = vmatpush1.bf16.msra.mxu0 %v1716_v43  ;;  %1749 = vmatpush1.bf16.msra.mxu1 %v1716_v43 }
  0x3f   :  { %1719 = vmatprep.subr.bf16.mxu0 %v1718_v46  ;;  %1751 = vmatprep.subr.bf16.mxu1 %v1718_v46 }
  0x40   :  { %178 = vmatmul.mubr.f32.gmra.mrb[14].mxu0 %v2263_v2  ;;  %377 = vmatmul.mubr.f32.gmra.mrb[14].mxu1 %v2268_v4 }
  0x41   :  { %562 = vmatprep.mubr.f32.mxu0 %v2027_v3  ;;  %761 = vmatprep.mubr.f32.mxu1 %v2027_v3 }
  0x42   :  { %1721 = vmatpush1.bf16.msra.mxu0 %v1720_v49  ;;  %1753 = vmatpush1.bf16.msra.mxu1 %v1720_v49 }
  0x43   :  { %1755 = vmatprep.subr.bf16.mxu0 %v1754_v5  ;;  %1787 = vmatprep.subr.bf16.mxu1 %v1754_v5 }
  0xf7   :  { %v137_v6 = vpop.f32.mrb[0].mxu0  ;;  %v336_v7 = vpop.f32.mrb[0].mxu1 }
  0xf8   :  { %v139_v8 = vpop.f32.mrb[1].mxu0  ;;  %v338_v9 = vpop.f32.mrb[1].mxu1  ;;  %v190_v47 = vadd.f32 %v2389_v39, %v137_v6 }
  0xf9   :  { %v1509_v10 = vmul.f32 -1.442695, %v139_v8  ;;  %v1517_v11 = vmul.f32 -1.442695, %v338_v9  ;;  %v383_v8 = vadd.f32 %v2389_v39, %v336_v7 }
  0xfa   :  { %v246_v6 = vmul.f32 %v190_v47, %v2165_v52 }
  0xfb   :  { %1819 = vpow2.f32 %v1509_v10  ;;  %v2370_v12 = vpop.f32.mrb[2].mxu0  ;;  %v2372_v13 = vpop.f32.mrb[2].mxu1 }
  0xfc   :  { %1821 = vpow2.f32 %v1517_v11  ;;  %v145_v14 = vpop.f32.mrb[3].mxu0  ;;  %v344_v15 = vpop.f32.mrb[3].mxu1  ;;  %v384_v7 = vadd.f32 %v2389_v39, %v2372_v13 }
  0xfd   :  { %v1510_v16 = vmul.f32 -1.442695, %v145_v14  ;;  %v1518_v17 = vmul.f32 -1.442695, %v344_v15 }
  0xff   :  { %1823 = vpow2.f32 %v1510_v16  ;;  %v2374_v18 = vpop.f32.mrb[4].mxu0  ;;  %v2376_v19 = vpop.f32.mrb[4].mxu1  ;;  %v191_v16 = vadd.f32 %v2389_v39, %v2370_v12 }
 0x100   :  { %1825 = vpow2.f32 %v1518_v17  ;;  %v151_v20 = vpop.f32.mrb[5].mxu0  ;;  %v350_v21 = vpop.f32.mrb[5].mxu1  ;;  %v192_v13 = vadd.f32 %v2389_v39, %v2374_v18  ;;  %v385_v47 = vadd.f32 %v2389_v39, %v2376_v19 }
 0x101   :  { %v1511_v22 = vmul.f32 -1.442695, %v151_v20  ;;  %v1519_v23 = vmul.f32 -1.442695, %v350_v21 }
 0x103   :  { %1827 = vpow2.f32 %v1511_v22  ;;  %v2378_v24 = vpop.f32.mrb[6].mxu0  ;;  %v2380_v25 = vpop.f32.mrb[6].mxu1 }
 0x104   :  { %1829 = vpow2.f32 %v1519_v23  ;;  %v157_v26 = vpop.f32.mrb[7].mxu0  ;;  %v356_v27 = vpop.f32.mrb[7].mxu1  ;;  %v193_v19 = vadd.f32 %v2389_v39, %v2378_v24 }
 0x105   :  { %v1820_v28 = vpop.eup %1819  ;;  %v1512_v29 = vmul.f32 -1.442695, %v157_v26  ;;  %v1520_v32 = vmul.f32 -1.442695, %v356_v27  ;;  %v439_v27 = vmul.f32 %v383_v8, %v2170_v53 }
 0x106   :  { %v1822_v30 = vpop.eup %1821  ;;  %v222_v31 = vadd.f32 1.0, %v1820_v28 }
 0x107   :  { %v415_v33 = vadd.f32 1.0, %v1822_v30  ;;  %1831 = vpow2.f32 %v1512_v29  ;;  %v2382_v34 = vpop.f32.mrb[8].mxu0  ;;  %v2384_v35 = vpop.f32.mrb[8].mxu1 }
 0x108   :  { %1833 = vrcp.f32 %v222_v31  ;;  %v163_v36 = vpop.f32.mrb[9].mxu0  ;;  %v362_v37 = vpop.f32.mrb[9].mxu1 }
 0x109   :  { %v1824_v38 = vpop.eup %1823  ;;  %1835 = vrcp.f32 %v415_v33  ;;  %v1513_v40 = vmul.f32 -1.442695, %v163_v36  ;;  %v1521_v43 = vmul.f32 -1.442695, %v362_v37  ;;  %v247_v33 = vmul.f32 %v191_v16, %v2179_v54 }
 0x10a   :  { %v1826_v41 = vpop.eup %1825  ;;  %v223_v42 = vadd.f32 1.0, %v1824_v38  ;;  %1837 = vpow2.f32 %v1520_v32 }
 0x10b   :  { %v416_v44 = vadd.f32 1.0, %v1826_v41  ;;  %1839 = vpow2.f32 %v1513_v40  ;;  %v2391_v45 = vpop.f32.mrb[10].mxu0  ;;  %v2393_v46 = vpop.f32.mrb[10].mxu1  ;;  %v440_v41 = vmul.f32 %v384_v7, %v2184_v55 }
 0x10c   :  { %1841 = vrcp.f32 %v223_v42  ;;  %v169_v48 = vpop.f32.mrb[11].mxu0  ;;  %v368_v49 = vpop.f32.mrb[11].mxu1 }
 0x10d   :  { %v1828_v50 = vpop.eup %1827  ;;  %1843 = vrcp.f32 %v416_v44  ;;  %v1514_v51 = vmul.f32 -1.442695, %v169_v48  ;;  %v1522_v10 = vmul.f32 -1.442695, %v368_v49 }
 0x10e   :  { %v1830_v5 = vpop.eup %1829  ;;  %v224_v9 = vadd.f32 1.0, %v1828_v50  ;;  %1845 = vpow2.f32 %v1521_v43 }
 0x10f   :  { %v417_v11 = vadd.f32 1.0, %v1830_v5  ;;  %1847 = vpow2.f32 %v1514_v51  ;;  %v2397_v14 = vpop.f32.mrb[12].mxu0  ;;  %v2399_v15 = vpop.f32.mrb[12].mxu1 }
 0x110   :  { %1849 = vrcp.f32 %v224_v9  ;;  %v175_v17 = vpop.f32.mrb[13].mxu0  ;;  %v374_v20 = vpop.f32.mrb[13].mxu1  ;;  %v248_v9 = vmul.f32 %v192_v13, %v2193_v56 }
 0x111   :  { %v1832_v21 = vpop.eup %1831  ;;  %1851 = vrcp.f32 %v417_v11  ;;  %v1515_v22 = vmul.f32 -1.442695, %v175_v17  ;;  %v1523_v23 = vmul.f32 -1.442695, %v374_v20  ;;  %v441_v20 = vmul.f32 %v385_v47, %v2198_v57 }
 0x112   :  { %v1834_v26 = vpop.eup %1833  ;;  %v225_v28 = vadd.f32 1.0, %v1832_v21  ;;  %1853 = vpow2.f32 %v1522_v10 }
 0x113   :  { %v1836_v29 = vpop.eup %1835  ;;  %1855 = vpow2.f32 %v1515_v22  ;;  %v2407_v30 = vpop.f32.mrb[14].mxu0  ;;  %v254_v31 = vmul.f32 %v1834_v26, %v246_v6  ;;  %v386_v26 = vadd.f32 %v2389_v39, %v2380_v25 }
 0x114   :  { %v2409_v12 = vpop.f32.mrb[14].mxu1  ;;  %v1838_v32 = vpop.eup %1837  ;;  %1857 = vrcp.f32 %v225_v28  ;;  %v447_v38 = vmul.f32 %v1836_v29, %v439_v27  ;;  %v249_v29 = vmul.f32 %v193_v19, %v2207_v58 }
 0x115   :  { %v181_v36 = vpop.f32.mrb[15].mxu0  ;;  %v380_v37 = vpop.f32.mrb[15].mxu1  ;;  %v418_v42 = vadd.f32 1.0, %v1838_v32  ;;  %1859 = vpow2.f32 %v1523_v23  ;;  %v2418_v50 = vadd.f32 %v254_v31, %v2165_v52  ;;  %v194_v31 = vadd.f32 %v2389_v39, %v2382_v34 }
 0x116   :  { %v1840_v40 = vpop.eup %1839  ;;  %v1516_v43 = vmul.f32 -1.442695, %v181_v36  ;;  %v1524_v49 = vmul.f32 -1.442695, %v380_v37  ;;  %v2421_v51 = vadd.f32 %v447_v38, %v2170_v53  ;;  %v442_v34 = vmul.f32 %v386_v26, %v2212_v59 }
 0x117   :  { %v1842_v44 = vpop.eup %1841  ;;  %v226_v48 = vadd.f32 1.0, %v1840_v40  ;;  %1861 = vrcp.f32 %v418_v42  ;;  %563 = vmatmul.mubr.f32.vlgmr.msra.gmra.mrb[16].mxu0 %v2418_v50  ;;  %v387_v38 = vadd.f32 %v2389_v39, %v2384_v35  ;;  %v195_v42 = vadd.f32 %v2389_v39, %v2391_v45 }
 0x118   :  { %v1844_v18 = vpop.eup %1843  ;;  %v255_v5 = vmul.f32 %v1842_v44, %v247_v33  ;;  %762 = vmatmul.mubr.f32.vlgmr.msra.gmra.mrb[16].mxu1 %v2421_v51  ;;  %568 = vmatprep.mubr.f32.mxu0 %v2027_v3  ;;  %v388_v45 = vadd.f32 %v2389_v39, %v2393_v46 }
 0x119   :  { %v1846_v8 = vpop.eup %1845  ;;  %1863 = vrcp.f32 %v226_v48  ;;  %v448_v10 = vmul.f32 %v1844_v18, %v440_v41  ;;  %767 = vmatprep.mubr.f32.mxu1 %v2027_v3  ;;  %v250_v41 = vmul.f32 %v194_v31, %v2221_v60 }
 0x11a   :  { %v1848_v11 = vpop.eup %1847  ;;  %v419_v6 = vadd.f32 1.0, %v1846_v8  ;;  %1865 = vpow2.f32 %v1516_v43  ;;  %v2430_v16 = vadd.f32 %v255_v5, %v2179_v54  ;;  %v251_v8 = vmul.f32 %v195_v42, %v2235_v62  ;;  %v1586_v42 = vld [vmem:[%s2995_s1 + $0x258] sm:$0xff] }
 0x11b   :  { %v1850_v17 = vpop.eup %1849  ;;  %v227_v21 = vadd.f32 1.0, %v1848_v11  ;;  %1867 = vpow2.f32 %v1524_v49  ;;  %v2435_v7 = vadd.f32 %v448_v10, %v2184_v55  ;;  %v443_v49 = vmul.f32 %v387_v38, %v2226_v61  ;;  %v1579_v38 = vld [vmem:[%s2995_s1 + $0x220] sm:$0xff] }
 0x11c   :  { %v1852_v24 = vpop.eup %1851  ;;  %1869 = vrcp.f32 %v419_v6  ;;  %v256_v22 = vmul.f32 %v1850_v17, %v248_v9  ;;  %569 = vmatmul.mubr.f32.gmra.mrb[18].mxu0 %v2430_v16  ;;  %v196_v9 = vadd.f32 %v2389_v39, %v2397_v14  ;;  %v444_v14 = vmul.f32 %v388_v45, %v2240_v63 }
 0x11d   :  { %v1854_v23 = vpop.eup %1853  ;;  %1871 = vrcp.f32 %v227_v21  ;;  %v449_v27 = vmul.f32 %v1852_v24, %v441_v20  ;;  %768 = vmatmul.mubr.f32.gmra.mrb[18].mxu1 %v2435_v7  ;;  %574 = vmatprep.mubr.f32.mxu0 %v2027_v3 }
 0x11e   :  { %v1856_v28 = vpop.eup %1855  ;;  %v420_v32 = vadd.f32 1.0, %v1854_v23  ;;  %v2446_v55 = vadd.f32 %v256_v22, %v2193_v56  ;;  %773 = vmatprep.mubr.f32.mxu1 %v2027_v3  ;;  %v252_v20 = vmul.f32 %v196_v9, %v2249_v0  ;;  %v197_v23 = vadd.f32 %v2389_v39, %v2407_v30  ;;  %v1592_v9 = vld [vmem:[%s2995_s1 + $0x288] sm:$0xff] }
 0x11f   :  { %v1858_v33 = vpop.eup %1857  ;;  %v228_v25 = vadd.f32 1.0, %v1856_v28  ;;  %v2450_v13 = vadd.f32 %v449_v27, %v2198_v57  ;;  %v390_v27 = vadd.f32 %v2389_v39, %v2409_v12 }
 0x120   :  { %v1860_v36 = vpop.eup %1859  ;;  %1873 = vrcp.f32 %v420_v32  ;;  %v257_v37 = vmul.f32 %v1858_v33, %v249_v29  ;;  %575 = vmatmul.mubr.f32.gmra.mrb[20].mxu0 %v2446_v55  ;;  %v253_v30 = vmul.f32 %v197_v23, %v2263_v2  ;;  %v1600_v23 = vld [vmem:[%s2995_s1 + $0x2c8] sm:$0xff] }
 0x121   :  { %1875 = vrcp.f32 %v228_v25  ;;  %v421_v40 = vadd.f32 1.0, %v1860_v36  ;;  %v1862_v56 = vpop.eup %1861  ;;  %774 = vmatmul.mubr.f32.gmra.mrb[20].mxu1 %v2450_v13  ;;  %580 = vmatprep.mubr.f32.mxu0 %v2027_v3  ;;  %v446_v12 = vmul.f32 %v390_v27, %v2268_v4  ;;  %v1575_v25 = vld [vmem:[%s2995_s1 + $0x200] sm:$0xff] }
 0x122   :  { %v2462_v57 = vadd.f32 %v257_v37, %v2207_v58  ;;  %779 = vmatprep.mubr.f32.mxu1 %v2027_v3  ;;  %v450_v35 = vmul.f32 %v1862_v56, %v442_v34  ;;  %v1582_v37 = vld [vmem:[%s2995_s1 + $0x238] sm:$0xff]  ;;  %v1599_v27 = vld [vmem:[%s2995_s1 + $0x2c0] sm:$0xff] }
 0x123   :  { %v1864_v43 = vpop.eup %1863  ;;  %1877 = vrcp.f32 %v421_v40  ;;  %v1581_v40 = vld [vmem:[%s2995_s1 + $0x230] sm:$0xff] }
 0x124   :  { %v1866_v44 = vpop.eup %1865  ;;  %v258_v47 = vmul.f32 %v1864_v43, %v250_v41  ;;  %581 = vmatmul.mubr.f32.gmra.mrb[22].mxu0 %v2462_v57  ;;  %v2470_v5 = vadd.f32 %v450_v35, %v2212_v59  ;;  %v389_v59 = vadd.f32 %v2389_v39, %v2399_v15  ;;  %v1760_v56 = vpack.c.bf16 %v1581_v40, %v1579_v38  ;;  %v1584_v41 = vld [vmem:[%s2995_s1 + $0x248] sm:$0xff]  ;;  %v1583_v35 = vld [vmem:[%s2995_s1 + $0x240] sm:$0xff] }
 0x125   :  { %v1868_v48 = vpop.eup %1867  ;;  %v229_v18 = vadd.f32 1.0, %v1866_v44  ;;  %586 = vmatprep.mubr.f32.mxu0 %v2027_v3  ;;  %v1762_v43 = vpack.c.bf16 %v1586_v42, %v1584_v41  ;;  %v1585_v44 = vld [vmem:[%s2995_s1 + $0x250] sm:$0xff] }
 0x126   :  { %v1870_v58 = vpop.eup %1869  ;;  %v422_v10 = vadd.f32 1.0, %v1868_v48  ;;  %v2477_v11 = vadd.f32 %v258_v47, %v2221_v60  ;;  %780 = vmatmul.mubr.f32.gmra.mrb[22].mxu1 %v2470_v5  ;;  %v445_v22 = vmul.f32 %v389_v59, %v2254_v1  ;;  %v1764_v47 = vpack.c.bf16 %v1585_v44, %v1583_v35  ;;  %v1588_v48 = vld [vmem:[%s2995_s1 + $0x268] sm:$0xff]  ;;  %v1593_v59 = vld [vmem:[%s2995_s1 + $0x290] sm:$0xff] }
 0x127   :  { %v1872_v19 = vpop.eup %1871  ;;  %1879 = vrcp.f32 %v229_v18  ;;  %v451_v46 = vmul.f32 %v1870_v58, %v443_v49  ;;  %785 = vmatprep.mubr.f32.mxu1 %v2027_v3  ;;  %v1590_v49 = vld [vmem:[%s2995_s1 + $0x278] sm:$0xff]  ;;  %v1587_v18 = vld [vmem:[%s2995_s1 + $0x260] sm:$0xff]  ;;  %v1589_v58 = vld [vmem:[%s2995_s1 + $0x270] sm:$0xff] }
 0x128   :  { %1881 = vrcp.f32 %v422_v10  ;;  %v259_v6 = vmul.f32 %v1872_v19, %v251_v8  ;;  %587 = vmatmul.mubr.f32.gmra.mrb[24].mxu0 %v2477_v11  ;;  %v1766_v45 = vpack.c.bf16 %v1590_v49, %v1588_v48  ;;  %v1768_v8 = vpack.c.bf16 %v1589_v58, %v1587_v18  ;;  %v1594_v10 = vld [vmem:[%s2995_s1 + $0x298] sm:$0xff] }
 0x129   :  { %v2486_v17 = vadd.f32 %v451_v46, %v2226_v61  ;;  %592 = vmatprep.mubr.f32.mxu0 %v2027_v3  ;;  %v1770_v19 = vpack.c.bf16 %v1594_v10, %v1592_v9  ;;  %v1591_v46 = vld [vmem:[%s2995_s1 + $0x280] sm:$0xff] }
 0x12a   :  { %v1874_v60 = vpop.eup %1873  ;;  %v2491_v21 = vadd.f32 %v259_v6, %v2235_v62  ;;  %v1772_v6 = vpack.c.bf16 %v1593_v59, %v1591_v46 }
 0x12b   :  { %v1876_v15 = vpop.eup %1875  ;;  %786 = vmatmul.mubr.f32.gmra.mrb[24].mxu1 %v2486_v17  ;;  %v452_v24 = vmul.f32 %v1874_v60, %v444_v14  ;;  %v1596_v14 = vld [vmem:[%s2995_s1 + $0x2a8] sm:$0xff]  ;;  %v1598_v60 = vld [vmem:[%s2995_s1 + $0x2b8] sm:$0xff] }
 0x12c   :  { %791 = vmatprep.mubr.f32.mxu1 %v2027_v3  ;;  %v260_v61 = vmul.f32 %v1876_v15, %v252_v20  ;;  %593 = vmatmul.mubr.f32.gmra.mrb[26].mxu0 %v2491_v21  ;;  %v1774_v20 = vpack.c.bf16 %v1598_v60, %v1596_v14  ;;  %v1595_v15 = vld [vmem:[%s2995_s1 + $0x2a0] sm:$0xff] }
 0x12d   :  { %v1878_v26 = vpop.eup %1877  ;;  %v2502_v62 = vadd.f32 %v452_v24, %v2240_v63  ;;  %598 = vmatprep.mubr.f32.mxu0 %v2027_v3  ;;  %v1597_v24 = vld [vmem:[%s2995_s1 + $0x2b0] sm:$0xff] }
 0x12e   :  { %v2506_v28 = vadd.f32 %v260_v61, %v2249_v0  ;;  %v453_v29 = vmul.f32 %v1878_v26, %v445_v22  ;;  %v1776_v22 = vpack.c.bf16 %v1597_v24, %v1595_v15  ;;  %v1602_v61 = vld [vmem:[%s2995_s1 + $0x2d8] sm:$0xff] }
 0x12f   :  { %792 = vmatmul.mubr.f32.gmra.mrb[26].mxu1 %v2502_v62  ;;  %v1778_v26 = vpack.c.bf16 %v1602_v61, %v1600_v23 }
 0x130   :  { %797 = vmatprep.mubr.f32.mxu1 %v2027_v3  ;;  %v2512_v31 = vadd.f32 %v453_v29, %v2254_v1  ;;  %599 = vmatmul.mubr.f32.gmra.mrb[28].mxu0 %v2506_v28  ;;  %v1601_v29 = vld [vmem:[%s2995_s1 + $0x2d0] sm:$0xff] }
 0x131   :  { %v1880_v39 = vpop.eup %1879  ;;  %604 = vmatprep.mubr.f32.mxu0 %v2027_v3 }
 0x132   :  { %v1882_v63 = vpop.eup %1881  ;;  %v261_v0 = vmul.f32 %v1880_v39, %v253_v30  ;;  %v1780_v30 = vpack.c.bf16 %v1601_v29, %v1599_v27  ;;  %v1604_v39 = vld [vmem:[%s2995_s1 + $0x2e8] sm:$0xff] }
 0x133   :  { %798 = vmatmul.mubr.f32.gmra.mrb[28].mxu1 %v2512_v31  ;;  %v454_v32 = vmul.f32 %v1882_v63, %v446_v12  ;;  %v1606_v12 = vld [vmem:[%s2995_s1 + $0x2f8] sm:$0xff] }
 0x134   :  { %803 = vmatprep.mubr.f32.mxu1 %v2027_v3  ;;  %v2520_v33 = vadd.f32 %v261_v0, %v2263_v2  ;;  %v1577_v2 = vld [vmem:[%s2995_s1 + $0x210] sm:$0xff]  ;;  %v1782_v63 = vpack.c.bf16 %v1606_v12, %v1604_v39  ;;  %v1603_v0 = vld [vmem:[%s2995_s1 + $0x2e0] sm:$0xff] }
 0x135   :  { %v2523_v1 = vadd.f32 %v454_v32, %v2268_v4  ;;  %v1756_v36 = vpack.c.bf16 %v1577_v2, %v1575_v25  ;;  %v1580_v4 = vld [vmem:[%s2995_s1 + $0x228] sm:$0xff]  ;;  %v1605_v32 = vld [vmem:[%s2995_s1 + $0x2f0] sm:$0xff] }
 0x136   :  { %605 = vmatmul.mubr.f32.gmra.mrb[30].mxu0 %v2520_v33  ;;  %v1758_v34 = vpack.c.bf16 %v1582_v37, %v1580_v4  ;;  %v1784_v25 = vpack.c.bf16 %v1605_v32, %v1603_v0 }
 0x137   :  { %804 = vmatmul.mubr.f32.gmra.mrb[30].mxu1 %v2523_v1  ;;  %989 = vmatprep.mubr.f32.mxu0 %v2027_v3 }
 0x138   :  { %1188 = vmatprep.mubr.f32.mxu1 %v2027_v3  ;;  %1757 = vmatpush1.bf16.msra.mxu0 %v1756_v36 }
 0x139   :  { %1789 = vmatpush1.bf16.msra.mxu1 %v1756_v36  ;;  %1759 = vmatprep.subr.bf16.mxu0 %v1758_v34 }
 0x13a   :  { %1791 = vmatprep.subr.bf16.mxu1 %v1758_v34 }
 0x13c   :  { %1761 = vmatpush1.bf16.msra.mxu0 %v1760_v56 }
 0x13d   :  { %1793 = vmatpush1.bf16.msra.mxu1 %v1760_v56  ;;  %1763 = vmatprep.subr.bf16.mxu0 %v1762_v43 }
 0x13e   :  { %1795 = vmatprep.subr.bf16.mxu1 %v1762_v43 }
 0x140   :  { %1765 = vmatpush1.bf16.msra.mxu0 %v1764_v47 }
 0x141   :  { %1797 = vmatpush1.bf16.msra.mxu1 %v1764_v47  ;;  %1767 = vmatprep.subr.bf16.mxu0 %v1766_v45 }
 0x142   :  { %1799 = vmatprep.subr.bf16.mxu1 %v1766_v45 }
 0x144   :  { %1769 = vmatpush1.bf16.msra.mxu0 %v1768_v8 }
 0x145   :  { %1801 = vmatpush1.bf16.msra.mxu1 %v1768_v8  ;;  %1771 = vmatprep.subr.bf16.mxu0 %v1770_v19 }
 0x146   :  { %1803 = vmatprep.subr.bf16.mxu1 %v1770_v19 }
 0x148   :  { %1773 = vmatpush1.bf16.msra.mxu0 %v1772_v6 }
 0x149   :  { %1805 = vmatpush1.bf16.msra.mxu1 %v1772_v6  ;;  %1775 = vmatprep.subr.bf16.mxu0 %v1774_v20 }
 0x14a   :  { %1807 = vmatprep.subr.bf16.mxu1 %v1774_v20 }
 0x14c   :  { %1777 = vmatpush1.bf16.msra.mxu0 %v1776_v22 }
 0x14d   :  { %1809 = vmatpush1.bf16.msra.mxu1 %v1776_v22  ;;  %1779 = vmatprep.subr.bf16.mxu0 %v1778_v26 }
 0x14e   :  { %1811 = vmatprep.subr.bf16.mxu1 %v1778_v26  ;;  %v2636_v26 = vld [vmem:[%s2997_s2 + $0x1] ss:$0 sm:$0xff] }
 0x150   :  { %1781 = vmatpush1.bf16.msra.mxu0 %v1780_v30 }
 0x151   :  { %1813 = vmatpush1.bf16.msra.mxu1 %v1780_v30  ;;  %1783 = vmatprep.subr.bf16.mxu0 %v1782_v63 }
 0x152   :  { %1815 = vmatprep.subr.bf16.mxu1 %v1782_v63 }
 0x154   :  { %1785 = vmatpush1.bf16.msra.mxu0 %v1784_v25 }
 0x155   :  { %1817 = vmatpush1.bf16.msra.mxu1 %v1784_v25 }
 0x1ea   :  { %v564_v2 = vpop.f32.mrb[16].mxu0 }
 0x1eb   :  { %v763_v36 = vpop.f32.mrb[16].mxu1  ;;  %v566_v4 = vpop.f32.mrb[17].mxu0  ;;  %v617_v32 = vadd.f32 %v2636_v26, %v564_v2 }
 0x1ec   :  { %v1559_v37 = vmul.f32 -1.442695, %v566_v4  ;;  %v765_v34 = vpop.f32.mrb[17].mxu1 }
 0x1ed   :  { %v1567_v38 = vmul.f32 -1.442695, %v765_v34  ;;  %v810_v34 = vadd.f32 %v2636_v26, %v763_v36 }
 0x1ee   :  { %1883 = vpow2.f32 %v1559_v37 }
 0x1ef   :  { %v570_v40 = vpop.f32.mrb[18].mxu0  ;;  %1885 = vpow2.f32 %v1567_v38 }
 0x1f0   :  { %v2619_v56 = vpop.f32.mrb[18].mxu1  ;;  %v572_v41 = vpop.f32.mrb[19].mxu0 }
 0x1f1   :  { %v1560_v42 = vmul.f32 -1.442695, %v572_v41  ;;  %v771_v43 = vpop.f32.mrb[19].mxu1 }
 0x1f2   :  { %v1568_v35 = vmul.f32 -1.442695, %v771_v43 }
 0x1f3   :  { %1887 = vpow2.f32 %v1560_v42  ;;  %v2621_v44 = vpop.f32.mrb[20].mxu0 }
 0x1f4   :  { %1889 = vpow2.f32 %v1568_v35  ;;  %v2623_v47 = vpop.f32.mrb[20].mxu1  ;;  %v578_v48 = vpop.f32.mrb[21].mxu0 }
 0x1f5   :  { %v1561_v49 = vmul.f32 -1.442695, %v578_v48  ;;  %v777_v45 = vpop.f32.mrb[21].mxu1  ;;  %v618_v48 = vadd.f32 %v2636_v26, %v570_v40 }
 0x1f6   :  { %v1569_v18 = vmul.f32 -1.442695, %v777_v45  ;;  %v673_v45 = vmul.f32 %v617_v32, %v2165_v52 }
 0x1f7   :  { %1891 = vpow2.f32 %v1561_v49  ;;  %v2625_v58 = vpop.f32.mrb[22].mxu0  ;;  %v674_v52 = vmul.f32 %v618_v48, %v2179_v54 }
 0x1f8   :  { %1893 = vpow2.f32 %v1569_v18  ;;  %v584_v8 = vpop.f32.mrb[23].mxu0  ;;  %v1884_v9 = vpop.eup %1883  ;;  %v811_v18 = vadd.f32 %v2636_v26, %v2619_v56  ;;  %v619_v56 = vadd.f32 %v2636_v26, %v2621_v44 }
 0x1f9   :  { %v2627_v10 = vpop.f32.mrb[22].mxu1  ;;  %v1562_v19 = vmul.f32 -1.442695, %v584_v8  ;;  %v1886_v46 = vpop.eup %1885  ;;  %v649_v59 = vadd.f32 1.0, %v1884_v9 }
 0x1fa   :  { %v783_v6 = vpop.f32.mrb[23].mxu1  ;;  %v842_v14 = vadd.f32 1.0, %v1886_v46 }
 0x1fb   :  { %1895 = vpow2.f32 %v1562_v19  ;;  %v1570_v60 = vmul.f32 -1.442695, %v783_v6  ;;  %v2629_v20 = vpop.f32.mrb[24].mxu0  ;;  %v866_v19 = vmul.f32 %v810_v34, %v2170_v53  ;;  %v2661_v53 = vld [vmem:[%s2996_s0 + $0x48] sm:$0xff] }
 0x1fc   :  { %1897 = vrcp.f32 %v649_v59  ;;  %v590_v15 = vpop.f32.mrb[25].mxu0 }
 0x1fd   :  { %v1888_v24 = vpop.eup %1887  ;;  %1899 = vrcp.f32 %v842_v14  ;;  %v1563_v23 = vmul.f32 -1.442695, %v590_v15 }
 0x1fe   :  { %v2631_v22 = vpop.f32.mrb[24].mxu1  ;;  %v1890_v61 = vpop.eup %1889  ;;  %v650_v27 = vadd.f32 1.0, %v1888_v24  ;;  %1901 = vpow2.f32 %v1570_v60 }
 0x1ff   :  { %v789_v29 = vpop.f32.mrb[25].mxu1  ;;  %v843_v30 = vadd.f32 1.0, %v1890_v61  ;;  %1903 = vpow2.f32 %v1563_v23  ;;  %v2638_v12 = vpop.f32.mrb[26].mxu0  ;;  %v867_v61 = vmul.f32 %v2661_v53, %v811_v18 }
 0x200   :  { %v1571_v39 = vmul.f32 -1.442695, %v789_v29  ;;  %1905 = vrcp.f32 %v650_v27  ;;  %v596_v63 = vpop.f32.mrb[27].mxu0 }
 0x201   :  { %v1892_v0 = vpop.eup %1891  ;;  %1907 = vrcp.f32 %v843_v30  ;;  %v1564_v4 = vmul.f32 -1.442695, %v596_v63 }
 0x202   :  { %v2641_v25 = vpop.f32.mrb[26].mxu1  ;;  %v1894_v37 = vpop.eup %1893  ;;  %v651_v38 = vadd.f32 1.0, %v1892_v0  ;;  %1909 = vpow2.f32 %v1571_v39  ;;  %v812_v39 = vadd.f32 %v2636_v26, %v2623_v47 }
 0x203   :  { %v795_v41 = vpop.f32.mrb[27].mxu1  ;;  %v844_v42 = vadd.f32 1.0, %v1894_v37  ;;  %1911 = vpow2.f32 %v1564_v4  ;;  %v2644_v35 = vpop.f32.mrb[28].mxu0 }
 0x204   :  { %v1572_v43 = vmul.f32 -1.442695, %v795_v41  ;;  %1913 = vrcp.f32 %v651_v38  ;;  %v602_v49 = vpop.f32.mrb[29].mxu0 }
 0x205   :  { %v1896_v2 = vpop.eup %1895  ;;  %1915 = vrcp.f32 %v844_v42  ;;  %v1565_v8 = vmul.f32 -1.442695, %v602_v49 }
 0x206   :  { %v2650_v36 = vpop.f32.mrb[28].mxu1  ;;  %v1898_v9 = vpop.eup %1897  ;;  %v652_v46 = vadd.f32 1.0, %v1896_v2  ;;  %1917 = vpow2.f32 %v1572_v43  ;;  %v620_v43 = vadd.f32 %v2636_v26, %v2625_v58 }
 0x207   :  { %v801_v59 = vpop.f32.mrb[29].mxu1  ;;  %v1900_v6 = vpop.eup %1899  ;;  %1919 = vpow2.f32 %v1565_v8  ;;  %v681_v14 = vmul.f32 %v1898_v9, %v673_v45  ;;  %v2692_v45 = vld [vmem:[%s2996_s0 + $0x50] sm:$0xff] }
 0x208   :  { %v1573_v40 = vmul.f32 -1.442695, %v801_v59  ;;  %v1902_v60 = vpop.eup %1901  ;;  %1921 = vrcp.f32 %v652_v46  ;;  %v874_v24 = vmul.f32 %v1900_v6, %v866_v19  ;;  %v868_v18 = vmul.f32 %v2692_v45, %v812_v39 }
 0x209   :  { %v2656_v15 = vpop.f32.mrb[30].mxu0  ;;  %v1904_v23 = vpop.eup %1903  ;;  %v845_v27 = vadd.f32 1.0, %v1902_v60  ;;  %v2667_v30 = vadd.f32 %v681_v14, %v2418_v50  ;;  %v2678_v50 = vld [vmem:[%s2996_s0 + $0x10] sm:$0xff]  ;;  %v813_v46 = vadd.f32 %v2636_v26, %v2627_v10  ;;  %v621_v14 = vadd.f32 %v2636_v26, %v2629_v20  ;;  %v2722_v20 = vld [vmem:[%s2996_s0 + $0x58] sm:$0xff] }
 0x20a   :  { %1923 = vpow2.f32 %v1573_v40  ;;  %v2664_v29 = vpop.f32.mrb[30].mxu1  ;;  %v608_v54 = vpop.f32.mrb[31].mxu0  ;;  %v653_v63 = vadd.f32 1.0, %v1904_v23  ;;  %v2672_v4 = vadd.f32 %v874_v24, %v2421_v51  ;;  %v675_v47 = vmul.f32 %v2678_v50, %v619_v56 }
 0x20b   :  { %v1906_v44 = vpop.eup %1905  ;;  %v1566_v0 = vmul.f32 -1.442695, %v608_v54  ;;  %v807_v32 = vpop.f32.mrb[31].mxu1  ;;  %1925 = vrcp.f32 %v845_v27  ;;  %990 = vmatmul.mubr.f32.vlgmr.msra.gmra.mrb[32].mxu0 %v2667_v30  ;;  %v869_v27 = vmul.f32 %v2722_v20, %v813_v46 }
 0x20c   :  { %v1908_v37 = vpop.eup %1907  ;;  %v1574_v34 = vmul.f32 -1.442695, %v807_v32  ;;  %v682_v38 = vmul.f32 %v1906_v44, %v674_v52  ;;  %1927 = vrcp.f32 %v653_v63  ;;  %1189 = vmatmul.mubr.f32.vlgmr.msra.gmra.mrb[32].mxu1 %v2672_v4  ;;  %995 = vmatprep.mubr.f32.mxu0 %v2027_v3  ;;  %v2732_v44 = vld [vmem:[%s2996_s0 + $0x20] sm:$0xff]  ;;  %v622_v63 = vadd.f32 %v2636_v26, %v2638_v12 }
 0x20d   :  { %v1910_v41 = vpop.eup %1909  ;;  %v875_v51 = vmul.f32 %v1908_v37, %v867_v61  ;;  %1929 = vpow2.f32 %v1566_v0  ;;  %1194 = vmatprep.mubr.f32.mxu1 %v2027_v3  ;;  %v677_v39 = vmul.f32 %v2732_v44, %v621_v14 }
 0x20e   :  { %v1912_v42 = vpop.eup %1911  ;;  %v846_v48 = vadd.f32 1.0, %v1910_v41  ;;  %v2687_v49 = vadd.f32 %v682_v38, %v2430_v16  ;;  %1931 = vpow2.f32 %v1574_v34  ;;  %v2745_v41 = vld [vmem:[%s2996_s0 + $0x60] sm:$0xff] }
 0x20f   :  { %v1914_v2 = vpop.eup %1913  ;;  %v654_v8 = vadd.f32 1.0, %v1912_v42  ;;  %v2696_v9 = vadd.f32 %v875_v51, %v2435_v7  ;;  %v2706_v7 = vld [vmem:[%s2996_s0 + $0x18] sm:$0xff] }
 0x210   :  { %v1916_v58 = vpop.eup %1915  ;;  %1933 = vrcp.f32 %v846_v48  ;;  %996 = vmatmul.mubr.f32.gmra.mrb[34].mxu0 %v2687_v49  ;;  %v683_v19 = vmul.f32 %v1914_v2, %v675_v47  ;;  %v676_v40 = vmul.f32 %v2706_v7, %v620_v43  ;;  %v815_v47 = vadd.f32 %v2636_v26, %v2641_v25  ;;  %v2757_v43 = vld [vmem:[%s2996_s0 + $0x28] sm:$0xff] }
 0x211   :  { %v1918_v16 = vpop.eup %1917  ;;  %1935 = vrcp.f32 %v654_v8  ;;  %1195 = vmatmul.mubr.f32.gmra.mrb[34].mxu1 %v2696_v9  ;;  %1001 = vmatprep.mubr.f32.mxu0 %v2027_v3  ;;  %v876_v59 = vmul.f32 %v1916_v58, %v868_v18  ;;  %v678_v48 = vmul.f32 %v2757_v43, %v622_v63  ;;  %v623_v2 = vadd.f32 %v2636_v26, %v2644_v35  ;;  %v2773_v35 = vld [vmem:[%s2996_s0 + $0x68] sm:$0xff] }
 0x212   :  { %v1920_v6 = vpop.eup %1919  ;;  %v847_v60 = vadd.f32 1.0, %v1918_v16  ;;  %1200 = vmatprep.mubr.f32.mxu1 %v2027_v3  ;;  %v2713_v10 = vadd.f32 %v683_v19, %v2446_v55  ;;  %v814_v55 = vadd.f32 %v2636_v26, %v2631_v22  ;;  %v816_v58 = vadd.f32 %v2636_v26, %v2650_v36  ;;  %v2783_v36 = vld [vmem:[%s2996_s0 + $0x30] sm:$0xff] }
 0x213   :  { %v1922_v52 = vpop.eup %1921  ;;  %v655_v56 = vadd.f32 1.0, %v1920_v6  ;;  %v2716_v24 = vadd.f32 %v876_v59, %v2450_v13  ;;  %v679_v59 = vmul.f32 %v2783_v36, %v623_v2 }
 0x214   :  { %v1924_v23 = vpop.eup %1923  ;;  %1937 = vrcp.f32 %v847_v60  ;;  %1002 = vmatmul.mubr.f32.gmra.mrb[36].mxu0 %v2713_v10  ;;  %v684_v61 = vmul.f32 %v1922_v52, %v676_v40  ;;  %v870_v12 = vmul.f32 %v2745_v41, %v814_v55  ;;  %v624_v52 = vadd.f32 %v2636_v26, %v2656_v15  ;;  %v2813_v15 = vld [vmem:[%s2996_s0 + $0x38] sm:$0xff] }
 0x215   :  { %1939 = vrcp.f32 %v655_v56  ;;  %v848_v54 = vadd.f32 1.0, %v1924_v23  ;;  %1201 = vmatmul.mubr.f32.gmra.mrb[36].mxu1 %v2716_v24  ;;  %1007 = vmatprep.mubr.f32.mxu0 %v2027_v3  ;;  %v1926_v13 = vpop.eup %1925  ;;  %v817_v23 = vadd.f32 %v2636_v26, %v2664_v29 }
 0x216   :  { %1206 = vmatprep.mubr.f32.mxu1 %v2027_v3  ;;  %v2739_v22 = vadd.f32 %v684_v61, %v2462_v57  ;;  %v1928_v0 = vpop.eup %1927  ;;  %v877_v32 = vmul.f32 %v1926_v13, %v869_v27 }
 0x217   :  { %1941 = vrcp.f32 %v848_v54  ;;  %v1930_v37 = vpop.eup %1929  ;;  %v685_v34 = vmul.f32 %v1928_v0, %v677_v39  ;;  %v680_v54 = vmul.f32 %v2813_v15, %v624_v52 }
 0x218   :  { %1008 = vmatmul.mubr.f32.gmra.mrb[38].mxu0 %v2739_v22  ;;  %v1932_v38 = vpop.eup %1931  ;;  %v656_v57 = vadd.f32 1.0, %v1930_v37  ;;  %v2751_v51 = vadd.f32 %v877_v32, %v2470_v5 }
 0x219   :  { %1013 = vmatprep.mubr.f32.mxu0 %v2027_v3  ;;  %v849_v18 = vadd.f32 1.0, %v1932_v38  ;;  %v2763_v25 = vadd.f32 %v685_v34, %v2477_v11  ;;  %v871_v11 = vmul.f32 %v2773_v35, %v815_v47 }
 0x21a   :  { %v1934_v42 = vpop.eup %1933  ;;  %1943 = vrcp.f32 %v656_v57  ;;  %1207 = vmatmul.mubr.f32.gmra.mrb[38].mxu1 %v2751_v51 }
 0x21b   :  { %v1936_v8 = vpop.eup %1935  ;;  %v878_v5 = vmul.f32 %v1934_v42, %v870_v12  ;;  %1945 = vrcp.f32 %v849_v18  ;;  %1212 = vmatprep.mubr.f32.mxu1 %v2027_v3 }
 0x21c   :  { %1014 = vmatmul.mubr.f32.gmra.mrb[40].mxu0 %v2763_v25  ;;  %v686_v19 = vmul.f32 %v1936_v8, %v678_v48 }
 0x21d   :  { %v2777_v16 = vadd.f32 %v878_v5, %v2486_v17  ;;  %1019 = vmatprep.mubr.f32.mxu0 %v2027_v3  ;;  %v2793_v17 = vld [vmem:[%s2996_s0 + $0x70] sm:$0xff] }
 0x21e   :  { %v1938_v46 = vpop.eup %1937  ;;  %v2787_v6 = vadd.f32 %v686_v19, %v2491_v21  ;;  %v872_v60 = vmul.f32 %v2793_v17, %v816_v58 }
 0x21f   :  { %v1940_v40 = vpop.eup %1939  ;;  %1213 = vmatmul.mubr.f32.gmra.mrb[40].mxu1 %v2777_v16  ;;  %v879_v14 = vmul.f32 %v1938_v46, %v871_v11 }
 0x220   :  { %1218 = vmatprep.mubr.f32.mxu1 %v2027_v3  ;;  %1020 = vmatmul.mubr.f32.gmra.mrb[42].mxu0 %v2787_v6  ;;  %v687_v21 = vmul.f32 %v1940_v40, %v679_v59 }
 0x221   :  { %v1942_v56 = vpop.eup %1941  ;;  %v2803_v61 = vadd.f32 %v879_v14, %v2502_v62  ;;  %1025 = vmatprep.mubr.f32.mxu0 %v2027_v3 }
 0x222   :  { %v2807_v27 = vadd.f32 %v687_v21, %v2506_v28  ;;  %v880_v55 = vmul.f32 %v1942_v56, %v872_v60  ;;  %v2824_v28 = vld [vmem:[%s2996_s0 + $0x78] sm:$0xff] }
 0x223   :  { %1219 = vmatmul.mubr.f32.gmra.mrb[42].mxu1 %v2803_v61  ;;  %v873_v29 = vmul.f32 %v2824_v28, %v817_v23 }
 0x224   :  { %1224 = vmatprep.mubr.f32.mxu1 %v2027_v3  ;;  %1026 = vmatmul.mubr.f32.gmra.mrb[44].mxu0 %v2807_v27  ;;  %v2819_v62 = vadd.f32 %v880_v55, %v2512_v31  ;;  %v1944_v26 = vpop.eup %1943 }
 0x225   :  { %1031 = vmatprep.mubr.f32.mxu0 %v2027_v3  ;;  %v1946_v13 = vpop.eup %1945  ;;  %v688_v39 = vmul.f32 %v1944_v26, %v680_v54 }
 0x226   :  { %v881_v63 = vmul.f32 %v1946_v13, %v873_v29 }
 0x227   :  { %1225 = vmatmul.mubr.f32.gmra.mrb[44].mxu1 %v2819_v62  ;;  %v2831_v31 = vadd.f32 %v688_v39, %v2520_v33  ;;  %v2855_v39 = vld [vmem:[%s2997_s2 + $0x2] ss:$0 sm:$0xff] }
 0x228   :  { %1230 = vmatprep.mubr.f32.mxu1 %v2027_v3  ;;  %v2834_v0 = vadd.f32 %v881_v63, %v2523_v1 }
 0x229   :  { %1032 = vmatmul.mubr.f32.gmra.mrb[46].mxu0 %v2831_v31 }
 0x22b   :  { %1231 = vmatmul.mubr.f32.gmra.mrb[46].mxu1 %v2834_v0 }
 0x2de   :  { %v991_v32 = vpop.f32.mrb[32].mxu0 }
 0x2df   :  { %v1190_v37 = vpop.f32.mrb[32].mxu1  ;;  %v993_v34 = vpop.f32.mrb[33].mxu0 }
 0x2e0   :  { %v1609_v38 = vmul.f32 -1.442695, %v993_v34  ;;  %v1192_v12 = vpop.f32.mrb[33].mxu1 }
 0x2e1   :  { %v1617_v47 = vmul.f32 -1.442695, %v1192_v12 }
 0x2e2   :  { %1947 = vpow2.f32 %v1609_v38 }
 0x2e3   :  { %v2838_v57 = vpop.f32.mrb[34].mxu0  ;;  %1949 = vpow2.f32 %v1617_v47 }
 0x2e4   :  { %v2840_v3 = vpop.f32.mrb[34].mxu1  ;;  %v999_v33 = vpop.f32.mrb[35].mxu0 }
 0x2e5   :  { %v1610_v42 = vmul.f32 -1.442695, %v999_v33  ;;  %v1198_v1 = vpop.f32.mrb[35].mxu1 }
 0x2e6   :  { %v1618_v48 = vmul.f32 -1.442695, %v1198_v1 }
 0x2e7   :  { %1951 = vpow2.f32 %v1610_v42  ;;  %v2842_v2 = vpop.f32.mrb[36].mxu0 }
 0x2e8   :  { %1953 = vpow2.f32 %v1618_v48  ;;  %v2844_v18 = vpop.f32.mrb[36].mxu1  ;;  %v1005_v8 = vpop.f32.mrb[37].mxu0  ;;  %v1044_v48 = vadd.f32 %v2855_v39, %v991_v32  ;;  %v2024_v32 = vld [vmem:[%s2996_s0] sm:$0xff] }
 0x2e9   :  { %v1611_v5 = vmul.f32 -1.442695, %v1005_v8  ;;  %v1204_v58 = vpop.f32.mrb[37].mxu1 }
 0x2ea   :  { %v1619_v19 = vmul.f32 -1.442695, %v1204_v58  ;;  %v1237_v58 = vadd.f32 %v2855_v39, %v1190_v37  ;;  %v1238_v37 = vadd.f32 %v2855_v39, %v2840_v3  ;;  %v1045_v3 = vadd.f32 %v2855_v39, %v2838_v57 }
 0x2eb   :  { %1955 = vpow2.f32 %v1611_v5  ;;  %v2846_v11 = vpop.f32.mrb[38].mxu0 }
 0x2ec   :  { %1957 = vpow2.f32 %v1619_v19  ;;  %v1011_v46 = vpop.f32.mrb[39].mxu0  ;;  %v1948_v59 = vpop.eup %1947 }
 0x2ed   :  { %v1612_v40 = vmul.f32 -1.442695, %v1011_v46  ;;  %v1950_v14 = vpop.eup %1949  ;;  %v1076_v60 = vadd.f32 1.0, %v1948_v59  ;;  %v2848_v52 = vpop.f32.mrb[38].mxu1 }
 0x2ee   :  { %v1269_v21 = vadd.f32 1.0, %v1950_v14  ;;  %v1210_v56 = vpop.f32.mrb[39].mxu1 }
 0x2ef   :  { %1959 = vpow2.f32 %v1612_v40  ;;  %v2850_v23 = vpop.f32.mrb[40].mxu0  ;;  %v1620_v55 = vmul.f32 -1.442695, %v1210_v56 }
 0x2f0   :  { %1961 = vrcp.f32 %v1076_v60  ;;  %v1017_v54 = vpop.f32.mrb[41].mxu0 }
 0x2f1   :  { %v1952_v26 = vpop.eup %1951  ;;  %1963 = vrcp.f32 %v1269_v21  ;;  %v1613_v29 = vmul.f32 -1.442695, %v1017_v54 }
 0x2f2   :  { %v1954_v13 = vpop.eup %1953  ;;  %v1077_v63 = vadd.f32 1.0, %v1952_v26  ;;  %1965 = vpow2.f32 %v1620_v55  ;;  %v2857_v34 = vpop.f32.mrb[40].mxu1  ;;  %v1100_v55 = vmul.f32 %v2024_v32, %v1044_v48 }
 0x2f3   :  { %v1270_v38 = vadd.f32 1.0, %v1954_v13  ;;  %1967 = vpow2.f32 %v1613_v29  ;;  %v1216_v12 = vpop.f32.mrb[41].mxu1  ;;  %v2859_v47 = vpop.f32.mrb[42].mxu0  ;;  %v2025_v29 = vld [vmem:[%s2996_s0 + $0x40] sm:$0xff] }
 0x2f4   :  { %1969 = vrcp.f32 %v1077_v63  ;;  %v1621_v33 = vmul.f32 -1.442695, %v1216_v12  ;;  %v1023_v42 = vpop.f32.mrb[43].mxu0  ;;  %v1293_v13 = vmul.f32 %v2025_v29, %v1237_v58 }
 0x2f5   :  { %v1956_v1 = vpop.eup %1955  ;;  %1971 = vrcp.f32 %v1270_v38  ;;  %v1614_v8 = vmul.f32 -1.442695, %v1023_v42 }
 0x2f6   :  { %v1958_v5 = vpop.eup %1957  ;;  %v1078_v19 = vadd.f32 1.0, %v1956_v1  ;;  %1973 = vpow2.f32 %v1621_v33  ;;  %v2863_v46 = vpop.f32.mrb[42].mxu1 }
 0x2f7   :  { %v1271_v59 = vadd.f32 1.0, %v1958_v5  ;;  %1975 = vpow2.f32 %v1614_v8  ;;  %v1222_v40 = vpop.f32.mrb[43].mxu1  ;;  %v2865_v14 = vpop.f32.mrb[44].mxu0  ;;  %v2882_v5 = vld [vmem:[%s2998_s3] ss:$0 sm:$0xff] }
 0x2f8   :  { %1977 = vrcp.f32 %v1078_v19  ;;  %v1622_v60 = vmul.f32 -1.442695, %v1222_v40  ;;  %v1029_v21 = vpop.f32.mrb[45].mxu0  ;;  %v1294_v19 = vmul.f32 %v2661_v53, %v1238_v37 }
 0x2f9   :  { %v1960_v56 = vpop.eup %1959  ;;  %1979 = vrcp.f32 %v1271_v59  ;;  %v1615_v54 = vmul.f32 -1.442695, %v1029_v21  ;;  %v1046_v59 = vadd.f32 %v2855_v39, %v2842_v2  ;;  %v1047_v2 = vadd.f32 %v2855_v39, %v2846_v11 }
 0x2fa   :  { %v1962_v26 = vpop.eup %1961  ;;  %v1079_v63 = vadd.f32 1.0, %v1960_v56  ;;  %1981 = vpow2.f32 %v1622_v60  ;;  %v2875_v38 = vpop.f32.mrb[44].mxu1  ;;  %v1239_v56 = vadd.f32 %v2855_v39, %v2844_v18  ;;  %v2026_v18 = vld [vmem:[%s2996_s0 + $0x8] sm:$0xff] }
 0x2fb   :  { %v1964_v12 = vpop.eup %1963  ;;  %1983 = vpow2.f32 %v1615_v54  ;;  %v1228_v33 = vpop.f32.mrb[45].mxu1  ;;  %v1108_v42 = vmul.f32 %v1962_v26, %v1100_v55 }
 0x2fc   :  { %v1966_v1 = vpop.eup %1965  ;;  %1985 = vrcp.f32 %v1079_v63  ;;  %v1623_v48 = vmul.f32 -1.442695, %v1228_v33  ;;  %v1301_v8 = vmul.f32 %v1964_v12, %v1293_v13  ;;  %v2887_v60 = vpop.f32.mrb[46].mxu0  ;;  %v1101_v63 = vmul.f32 %v2026_v18, %v1045_v3 }
 0x2fd   :  { %v1968_v58 = vpop.eup %1967  ;;  %v1272_v40 = vadd.f32 1.0, %v1966_v1  ;;  %v1116_v21 = vadd.f32 %v1108_v42, %v2667_v30  ;;  %v1035_v54 = vpop.f32.mrb[47].mxu0  ;;  %v1102_v42 = vmul.f32 %v2678_v50, %v1046_v59  ;;  %v1103_v3 = vmul.f32 %v2706_v7, %v1047_v2 }
 0x2fe   :  { %v1970_v57 = vpop.eup %1969  ;;  %v1080_v32 = vadd.f32 1.0, %v1968_v58  ;;  %1987 = vpow2.f32 %v1623_v48  ;;  %v2892_v55 = vpop.f32.mrb[46].mxu1  ;;  %v1309_v26 = vadd.f32 %v1301_v8, %v2672_v4  ;;  %v1616_v37 = vmul.f32 -1.442695, %v1035_v54 }
 0x2ff   :  { %v1972_v53 = vpop.eup %1971  ;;  %1989 = vrcp.f32 %v1272_v40  ;;  %v1234_v29 = vpop.f32.mrb[47].mxu1  ;;  %v1324_v30 = vmul.f32 %v2882_v5, %v1116_v21  ;;  %v1295_v8 = vmul.f32 %v2692_v45, %v1239_v56  ;;  %v1109_v40 = vmul.f32 %v1970_v57, %v1101_v63 }
 0x300   :  { %v1974_v13 = vpop.eup %1973  ;;  %1991 = vrcp.f32 %v1080_v32  ;;  %v1624_v12 = vmul.f32 -1.442695, %v1234_v29  ;;  %v1348_v33 = vmul.f32 %v2882_v5, %v1309_v26  ;;  %v1302_v11 = vmul.f32 %v1972_v53, %v1294_v19 }
 0x301   :  { %v1976_v4 = vpop.eup %1975  ;;  %v1273_v1 = vadd.f32 1.0, %v1974_v13  ;;  %1993 = vpow2.f32 %v1616_v37  ;;  %1332 = vadd.xlane.f32.xlu0 %v1324_v30  ;;  %v1240_v50 = vadd.f32 %v2855_v39, %v2848_v52  ;;  %v1117_v19 = vadd.f32 %v1109_v40, %v2687_v49 }
 0x302   :  { %v1978_v48 = vpop.eup %1977  ;;  %v1081_v58 = vadd.f32 1.0, %v1976_v4  ;;  %1995 = vpow2.f32 %v1624_v12  ;;  %1356 = vadd.xlane.f32.xlu1 %v1348_v33  ;;  %v1310_v32 = vadd.f32 %v1302_v11, %v2696_v9  ;;  %v1048_v56 = vadd.f32 %v2855_v39, %v2850_v23 }
 0x303   :  { %v1980_v21 = vpop.eup %1979  ;;  %1997 = vrcp.f32 %v1273_v1  ;;  %v1110_v54 = vmul.f32 %v1978_v48, %v1102_v42  ;;  %v1325_v37 = vmul.f32 %v2882_v5, %v1117_v19  ;;  %v1241_v52 = vadd.f32 %v2855_v39, %v2857_v34 }
 0x304   :  { %v1982_v26 = vpop.eup %1981  ;;  %1999 = vrcp.f32 %v1081_v58  ;;  %v1303_v59 = vmul.f32 %v1980_v21, %v1295_v8  ;;  %v1349_v53 = vmul.f32 %v2882_v5, %v1310_v32  ;;  %v1296_v23 = vmul.f32 %v2722_v20, %v1240_v50 }
 0x305   :  { %v1984_v45 = vpop.eup %1983  ;;  %v1274_v57 = vadd.f32 1.0, %v1982_v26  ;;  %v1118_v7 = vadd.f32 %v1110_v54, %v2713_v10  ;;  %1334 = vadd.xlane.f32.xlu0 %v1325_v37  ;;  %v1104_v63 = vmul.f32 %v2732_v44, %v1048_v56  ;;  %v1297_v20 = vmul.f32 %v2745_v41, %v1241_v52 }
 0x306   :  { %v1986_v2 = vpop.eup %1985  ;;  %v1082_v9 = vadd.f32 1.0, %v1984_v45  ;;  %v1311_v29 = vadd.f32 %v1303_v59, %v2716_v24  ;;  %1358 = vadd.xlane.f32.xlu1 %v1349_v53  ;;  %v1049_v24 = vadd.f32 %v2855_v39, %v2859_v47  ;;  %v1242_v48 = vadd.f32 %v2855_v39, %v2863_v46 }
 0x307   :  { %2001 = vrcp.f32 %v1274_v57  ;;  %v1111_v49 = vmul.f32 %v1986_v2, %v1103_v3  ;;  %v1326_v10 = vmul.f32 %v2882_v5, %v1118_v7  ;;  %v1050_v40 = vadd.f32 %v2855_v39, %v2865_v14 }
 0x308   :  { %v1988_v30 = vpop.eup %1987  ;;  %2003 = vrcp.f32 %v1082_v9  ;;  %v1350_v13 = vmul.f32 %v2882_v5, %v1311_v29  ;;  %v1243_v54 = vadd.f32 %v2855_v39, %v2875_v38  ;;  %v1298_v26 = vmul.f32 %v2773_v35, %v1242_v48 }
 0x309   :  { %v1990_v18 = vpop.eup %1989  ;;  %v1275_v12 = vadd.f32 1.0, %v1988_v30  ;;  %v1119_v34 = vadd.f32 %v1111_v49, %v2739_v22  ;;  %1336 = vadd.xlane.f32.xlu0 %v1326_v10  ;;  %v1105_v22 = vmul.f32 %v2757_v43, %v1049_v24  ;;  %v1051_v35 = vadd.f32 %v2855_v39, %v2887_v60 }
 0x30a   :  { %v1992_v33 = vpop.eup %1991  ;;  %v1304_v4 = vmul.f32 %v1990_v18, %v1296_v23  ;;  %1360 = vadd.xlane.f32.xlu1 %v1350_v13  ;;  %v1299_v38 = vmul.f32 %v2793_v17, %v1243_v54  ;;  %v1380_v13 = vlaneseq }
 0x30b   :  { %v1994_v42 = vpop.eup %1993  ;;  %2005 = vrcp.f32 %v1275_v12  ;;  %v1112_v1 = vmul.f32 %v1992_v33, %v1104_v63  ;;  %v1327_v47 = vmul.f32 %v2882_v5, %v1119_v34  ;;  %v1107_v17 = vmul.f32 %v2813_v15, %v1051_v35 }
 0x30c   :  { %v1996_v11 = vpop.eup %1995  ;;  %v1083_v8 = vadd.f32 1.0, %v1994_v42  ;;  %v1312_v44 = vadd.f32 %v1304_v4, %v2751_v51  ;;  %v1381_v63 = vand.u32 127, %v1380_v13  ;;  %v2960_v34 = vshrl.u32 %v1380_v13, 7 }
 0x30d   :  { %v1998_v58 = vpop.eup %1997  ;;  %v1276_v41 = vadd.f32 1.0, %v1996_v11  ;;  %v1120_v21 = vadd.f32 %v1112_v1, %v2763_v25  ;;  %1338 = vadd.xlane.f32.xlu0 %v1327_v47  ;;  %v1106_v25 = vmul.f32 %v2783_v36, %v1050_v40 }
 0x30e   :  { %v2000_v3 = vpop.eup %1999  ;;  %2007 = vrcp.f32 %v1083_v8  ;;  %v1351_v32 = vmul.f32 %v2882_v5, %v1312_v44  ;;  %v1305_v46 = vmul.f32 %v1998_v58, %v1297_v20  ;;  %v1449_v33 = vadd.s32 4294967224, %v1381_v63 }
 0x30f   :  { %2009 = vrcp.f32 %v1276_v41  ;;  %v1113_v51 = vmul.f32 %v2000_v3, %v1105_v22  ;;  %v1328_v14 = vmul.f32 %v2882_v5, %v1120_v21  ;;  %v1386_v4 = vadd.s32 4294967288, %v1381_v63 }
 0x310   :  { %1362 = vadd.xlane.f32.xlu1 %v1351_v32  ;;  %v1313_v43 = vadd.f32 %v1305_v46, %v2777_v16  ;;  %v1244_v16 = vadd.f32 %v2855_v39, %v2892_v55  ;;  %v1393_v42 = vadd.s32 4294967280, %v1381_v63  ;;  %v1384_v11 = vsub.s32 %v1381_v63, %v2960_v34 }
 0x311   :  { %v2002_v50 = vpop.eup %2001  ;;  %v1121_v19 = vadd.f32 %v1113_v51, %v2787_v6  ;;  %1340 = vadd.xlane.f32.xlu0 %v1328_v14  ;;  %v1463_v48 = vadd.s32 4294967208, %v1381_v63  ;;  %v1452_v8 = vsub.s32 %v1449_v33, %v2960_v34  ;;  %v1400_v44 = vadd.s32 4294967272, %v1381_v63 }
 0x312   :  { %v2004_v59 = vpop.eup %2003  ;;  %v1352_v45 = vmul.f32 %v2882_v5, %v1313_v43  ;;  %v1306_v56 = vmul.f32 %v2002_v50, %v1298_v26  ;;  %v1300_v60 = vmul.f32 %v2824_v28, %v1244_v16  ;;  %v1470_v47 = vadd.s32 4294967200, %v1381_v63 }
 0x313   :  { %v1114_v57 = vmul.f32 %v2004_v59, %v1106_v25  ;;  %v1329_v36 = vmul.f32 %v2882_v5, %v1121_v19  ;;  %v1389_v58 = vsub.s32 %v1386_v4, %v2960_v34  ;;  %v1407_v22 = vadd.s32 4294967264, %v1381_v63 }
 0x314   :  { %1364 = vadd.xlane.f32.xlu1 %v1352_v45  ;;  %v1314_v53 = vadd.f32 %v1306_v56, %v2803_v61  ;;  %v1477_v40 = vadd.s32 4294967192, %v1381_v63  ;;  %v1396_v21 = vsub.s32 %v1393_v42, %v2960_v34  ;;  %v1414_v46 = vadd.s32 4294967256, %v1381_v63 }
 0x315   :  { %v2006_v6 = vpop.eup %2005  ;;  %v1122_v7 = vadd.f32 %v1114_v57, %v2807_v27  ;;  %1342 = vadd.xlane.f32.xlu0 %v1329_v36  ;;  %v1466_v54 = vsub.s32 %v1463_v48, %v2960_v34  ;;  %v1484_v51 = vadd.s32 4294967184, %v1381_v63  ;;  %v1403_v26 = vsub.s32 %v1400_v44, %v2960_v34 }
 0x316   :  { %v1353_v2 = vmul.f32 %v2882_v5, %v1314_v53  ;;  %v1307_v9 = vmul.f32 %v2006_v6, %v1299_v38  ;;  %v1473_v43 = vsub.s32 %v1470_v47, %v2960_v34  ;;  %v1421_v14 = vadd.s32 4294967248, %v1381_v63 }
 0x317   :  { %v1330_v55 = vmul.f32 %v2882_v5, %v1122_v7  ;;  %v1410_v50 = vsub.s32 %v1407_v22, %v2960_v34  ;;  %v1480_v25 = vsub.s32 %v1477_v40, %v2960_v34  ;;  %v1417_v59 = vsub.s32 %v1414_v46, %v2960_v34 }
 0x318   :  { %v2008_v37 = vpop.eup %2007  ;;  %1366 = vadd.xlane.f32.xlu1 %v1353_v2  ;;  %v1315_v39 = vadd.f32 %v1307_v9, %v2819_v62  ;;  %v1491_v56 = vadd.s32 4294967176, %v1381_v63  ;;  %v1428_v38 = vadd.s32 4294967240, %v1381_v63  ;;  %v1487_v16 = vsub.s32 %v1484_v51, %v2960_v34 }
 0x319   :  { %v2010_v61 = vpop.eup %2009  ;;  %v1115_v29 = vmul.f32 %v2008_v37, %v1107_v17  ;;  %1344 = vadd.xlane.f32.xlu0 %v1330_v55  ;;  %v1424_v6 = vsub.s32 %v1421_v14, %v2960_v34 }
 0x31a   :  { %v1354_v52 = vmul.f32 %v2882_v5, %v1315_v39  ;;  %v1308_v49 = vmul.f32 %v2010_v61, %v1300_v60  ;;  %v1494_v61 = vsub.s32 %v1491_v56, %v2960_v34 }
 0x31b   :  { %v1123_v27 = vadd.f32 %v1115_v29, %v2831_v31  ;;  %v1444_v31 = vadd.s32 4294967232, %v1381_v63  ;;  %v1431_v29 = vsub.s32 %v1428_v38, %v2960_v34 }
 0x31c   :  { %1368 = vadd.xlane.f32.xlu1 %v1354_v52  ;;  %v1316_v15 = vadd.f32 %v1308_v49, %v2834_v0  ;;  %v1456_v0 = vadd.s32 4294967216, %v1381_v63 }
 0x31d   :  { %v1331_v30 = vmul.f32 %v2882_v5, %v1123_v27 }
 0x31e   :  { %v1355_v28 = vmul.f32 %v2882_v5, %v1316_v15  ;;  %v1447_v5 = vsub.s32 %v1444_v31, %v2960_v34  ;;  %v1459_v41 = vsub.s32 %v1456_v0, %v2960_v34 }
 0x31f   :  { %1346 = vadd.xlane.f32.xlu0 %v1331_v30 }
 0x320   :  { %1370 = vadd.xlane.f32.xlu1 %v1355_v28 }
 0x38e   :  { %v1333_v23 = vpop.xlane.xlu0 %1332 }
 0x38f   :  { %v1357_v62 = vpop.xlane.xlu1 %1356  ;;  %v1385_v2 = vrot.slane %v1333_v23, %v1384_v11 }
 0x390   :  { %v1448_v7 = vrot.slane %v1357_v62, %v1447_v5 }
 0x392   :  { %v1335_v18 = vpop.xlane.xlu0 %1334 }
 0x393   :  { %v1359_v10 = vpop.xlane.xlu1 %1358  ;;  %v1390_v57 = vrot.slane %v1335_v18, %v1389_v58 }
 0x394   :  { %v1453_v35 = vrot.slane %v1359_v10, %v1452_v8 }
 0x395   :  { %v1392_v49 = vsel %vm1391_vm1, %v1390_v57, %v1385_v2 }
 0x396   :  { %v1337_v12 = vpop.xlane.xlu0 %1336  ;;  %v1455_v52 = vsel %vm1454_vm0, %v1453_v35, %v1448_v7 }
 0x397   :  { %v1361_v24 = vpop.xlane.xlu1 %1360  ;;  %v1397_v36 = vrot.slane %v1337_v12, %v1396_v21 }
 0x398   :  { %v1460_v53 = vrot.slane %v1361_v24, %v1459_v41 }
 0x399   :  { %v1399_v28 = vsel %vm1398_vm3, %v1397_v36, %v1392_v49 }
 0x39a   :  { %v1339_v1 = vpop.xlane.xlu0 %1338  ;;  %v1462_v30 = vsel %vm1461_vm2, %v1460_v53, %v1455_v52 }
 0x39b   :  { %v1404_v17 = vrot.slane %v1339_v1, %v1403_v26 }
 0x39d   :  { %v1363_v20 = vpop.xlane.xlu1 %1362  ;;  %v1406_v10 = vsel %vm1405_vm5, %v1404_v17, %v1399_v28 }
 0x39e   :  { %v1341_v32 = vpop.xlane.xlu0 %1340  ;;  %v1467_v9 = vrot.slane %v1363_v20, %v1466_v54  ;;  %v1501_v20 = vstv %s2999_s4 }
 0x39f   :  { %v1411_v60 = vrot.slane %v1341_v32, %v1410_v50 }
 0x3a0   :  { %v1469_v13 = vsel %vm1468_vm4, %v1467_v9, %v1462_v30 }
 0x3a1   :  { %v1365_v3 = vpop.xlane.xlu1 %1364  ;;  %v1413_v63 = vsel %vm1412_vm7, %v1411_v60, %v1406_v10 }
 0x3a2   :  { %v1343_v45 = vpop.xlane.xlu0 %1342  ;;  %v1474_v37 = vrot.slane %v1365_v3, %v1473_v43 }
 0x3a3   :  { %v1418_v15 = vrot.slane %v1343_v45, %v1417_v59 }
 0x3a4   :  { %v1476_v18 = vsel %vm1475_vm6, %v1474_v37, %v1469_v13 }
 0x3a5   :  { %v1367_v19 = vpop.xlane.xlu1 %1366  ;;  %v1420_v31 = vsel %vm1419_vm9, %v1418_v15, %v1413_v63 }
 0x3a6   :  { %v1345_v55 = vpop.xlane.xlu0 %1344  ;;  %v1481_v27 = vrot.slane %v1367_v19, %v1480_v25 }
 0x3a7   :  { %v1425_v23 = vrot.slane %v1345_v55, %v1424_v6 }
 0x3a8   :  { %v1483_v34 = vsel %vm1482_vm8, %v1481_v27, %v1476_v18 }
 0x3a9   :  { %v1369_v39 = vpop.xlane.xlu1 %1368  ;;  %v1427_v42 = vsel %vm1426_vm11, %v1425_v23, %v1420_v31 }
 0x3aa   :  { %v1488_v62 = vrot.slane %v1369_v39, %v1487_v16 }
 0x3ac   :  { %v1347_v12 = vpop.xlane.xlu0 %1346  ;;  %v1490_v0 = vsel %vm1489_vm10, %v1488_v62, %v1483_v34 }
 0x3ad   :  { %v1371_v24 = vpop.xlane.xlu1 %1370  ;;  %v1432_v4 = vrot.slane %v1347_v12, %v1431_v29 }
 0x3ae   :  { %v1495_v33 = vrot.slane %v1371_v24, %v1494_v61 }
 0x3af   :  { %v1434_v5 = vsel %vm1433_vm13, %v1432_v4, %v1427_v42 }
 0x3b0   :  { %v1497_v1 = vsel %vm1496_vm12, %v1495_v33, %v1490_v0 }
 0x3b1   :  { %v1500_v11 = vsel %vm1499_vm14, %v1434_v5, %v1497_v1 }
 0x3b2   :  { %v1502_v48 = vadd.f32 %v1501_v20, %v1500_v11 }
 0x3b4   :  { %1503 = vst [vmem:[%s3000_s5] sm:$0x1] %v1502_v48 }

</bundles_post_ra>
